<compile_context>
chip_gen: v7x
topology: tpu7x:2x2x1
jax: 0.10.0
libtpu: 0.0.40
codegen_flags: <defaults>
</compile_context>

<pallas_src>
import functools

import jax
import jax.numpy as jnp
from jax import lax
from jax.experimental import pallas as pl
from jax.experimental.pallas import tpu as pltpu

LEAKY_SLOPE = 0.2
BN_EPS = 1e-5


def _zero_index_map(i, *, ndim):
    return (0,) * ndim


# ------------------------------ Pallas kernel ------------------------------ #
def _encoder_kernel(*refs, plan, B, n_bn):
    """Fused forward pass over all conv/BN/LeakyReLU layers.

    refs layout: [x, w_0..w_{L-1}, gamma_(bn layers), beta_(bn layers),
                  out, buf_0..buf_{L-2}]
    """
    nl = len(plan)
    x_ref = refs[0]
    w_refs = refs[1:1 + nl]
    g_refs = refs[1 + nl:1 + nl + n_bn]
    b_refs = refs[1 + nl + n_bn:1 + nl + 2 * n_bn]
    o_ref = refs[1 + nl + 2 * n_bn]
    bufs = refs[2 + nl + 2 * n_bn:]

    cur = x_ref          # VMEM ref holding this layer's (padded) input rows
    bn_idx = 0
    for li, lp in enumerate(plan):
        k, s = lp["k"], lp["s"]
        Lp_in, L_out, C_out = lp["Lp_in"], lp["L_out"], lp["co"]
        w_ref = w_refs[li]

        # Conv as k accumulated matmuls over strided row slices.  Batches are
        # processed separately so their row segments never mix across strides.
        accs = []
        for b in range(B):
            base = b * Lp_in
            acc = None
            for j in range(k):
                if s == 1:
                    rows = cur[pl.ds(base + j, L_out), :]
                else:
                    rows = cur[pl.ds(base + j, L_out, stride=s), :]
                part = jnp.dot(rows.astype(jnp.bfloat16), w_ref[j],
                               preferred_element_type=jnp.float32)
                acc = part if acc is None else acc + part
            accs.append(acc)

        if lp["bn"]:
            # Training-mode BatchNorm1d: biased batch stats over (batch, length),
            # one-pass sum / sum-of-squares (var = E[x^2] - mean^2).
            inv_n = 1.0 / float(B * L_out)
            s1 = accs[0].sum(axis=0, keepdims=True)
            s2 = (accs[0] * accs[0]).sum(axis=0, keepdims=True)
            for a in accs[1:]:
                s1 = s1 + a.sum(axis=0, keepdims=True)
                s2 = s2 + (a * a).sum(axis=0, keepdims=True)
            mean = s1 * inv_n
            var = s2 * inv_n - mean * mean
            scale = lax.rsqrt(var + BN_EPS) * g_refs[bn_idx][...]
            shift = b_refs[bn_idx][...] - mean * scale
            accs = [a * scale + shift for a in accs]
            bn_idx += 1

        if lp["act"]:
            accs = [jnp.where(a > 0, a, LEAKY_SLOPE * a) for a in accs]

        if li + 1 < nl:
            # Write into the next layer's padded VMEM buffer (stays on-chip).
            dst = bufs[li]
            p_next, Lp_out = lp["p_next"], lp["Lp_out"]
            if p_next > 0:
                dst[...] = jnp.zeros(dst.shape, dst.dtype)   # zero padding rows
            for b in range(B):
                dst[pl.ds(b * Lp_out + p_next, L_out), :] = accs[b]
            cur = dst
        else:
            for b in range(B):
                o_ref[pl.ds(b * L_out, L_out), :] = accs[b].astype(o_ref.dtype)


# --------------------------------- wrapper --------------------------------- #
@functools.partial(jax.jit, static_argnames=("cfg",))
def encoder_forward(x_ncl, weights, gammas, betas, cfg):
    """x_ncl: (B, in_c, L) PyTorch NCL -> (B, latent_c, L_final) NCL.

    cfg: static tuple of (k, s, p, use_bn, use_act) per layer.
    weights[i]: (k, C_in, C_out) bf16; gammas/betas: (1, C) f32 (BN layers only).
    """
    B, C0, L0 = x_ncl.shape
    nl = len(cfg)

    # ---- static per-layer plan (lengths / padded row spans) ----
    plan = []
    L = L0
    for w, (k, s, p, bn, act) in zip(weights, cfg):
        _, ci, co = w.shape
        Lp = L + 2 * p
        L_out = (Lp - k) // s + 1
        plan.append(dict(k=k, s=s, p=p, ci=ci, co=co, Lp_in=Lp, L_out=L_out,
                         bn=bn, act=act))
        L = L_out
    for i in range(nl):
        p_next = plan[i + 1]["p"] if i + 1 < nl else 0
        plan[i]["p_next"] = p_next
        plan[i]["Lp_out"] = plan[i]["L_out"] + 2 * p_next

    # ---- layer-0 input: channels-last, padded, batch-major flattened rows ----
    p0 = plan[0]["p"]
    x = jnp.transpose(x_ncl, (0, 2, 1))                  # (B, L, C)
    x = jnp.pad(x, ((0, 0), (p0, p0), (0, 0)))
    x = x.reshape(B * (L0 + 2 * p0), C0)

    latent_c = plan[-1]["co"]
    L_final = plan[-1]["L_out"]
    out_rows = B * L_final

    inputs = [x, *weights, *gammas, *betas]
    in_specs = [
        pl.BlockSpec(a.shape, functools.partial(_zero_index_map, ndim=a.ndim))
        for a in inputs
    ]
    scratch = [pltpu.VMEM((B * lp["Lp_out"], lp["co"]), jnp.float32)
               for lp in plan[:-1]]

    kernel = functools.partial(_encoder_kernel, plan=plan, B=B, n_bn=len(gammas))
    out = pl.pallas_call(
        kernel,
        out_shape=jax.ShapeDtypeStruct((out_rows, latent_c), jnp.float32),
        grid=(1,),
        in_specs=in_specs,
        out_specs=pl.BlockSpec((out_rows, latent_c),
                               functools.partial(_zero_index_map, ndim=2)),
        scratch_shapes=scratch,
        compiler_params=pltpu.CompilerParams(dimension_semantics=("arbitrary",)),
    )(*inputs)

    # (B*L_final, latent_c) -> (B, latent_c, L_final) NCL
    return jnp.transpose(out.reshape(B, L_final, latent_c), (0, 2, 1))


# ----------------------------- parameter setup ----------------------------- #
def build_params(key, in_c, hc, latent_c):
    """Random parameters in PyTorch layout: w (C_out, C_in, k) + BN gamma/beta."""
    specs = [(in_c, hc, 4, 2, 1, False, True)]                 # block 0: no BN
    for c in (1, 2, 4, 8):                                     # blocks 1..4: BN
        specs.append((hc * c, hc * c * 2, 4, 2, 1, True, True))
    specs.append((hc * 16, latent_c, 10, 1, 0, False, False))  # final conv
    params = []
    for (ci, co, k, s, p, use_bn, use_act) in specs:
        key, kw, kg, kb = jax.random.split(key, 4)
        scale = 1.0 / jnp.sqrt(jnp.float32(ci * k))
        w = jax.random.normal(kw, (co, ci, k), jnp.float32) * scale
        gamma = 1.0 + 0.1 * jax.random.normal(kg, (co,), jnp.float32)
        beta = 0.1 * jax.random.normal(kb, (co,), jnp.float32)
        params.append((w, gamma, beta, k, s, p, use_bn, use_act))
    return params


def prepare_params(params):
    """One-time conversion to kernel layout (outside the forward path):
    w (C_out,C_in,k) -> (k,C_in,C_out) bf16; gamma/beta -> (1,C) f32 rows
    for BN layers only; static per-layer config tuple."""
    weights, gammas, betas, cfg = [], [], [], []
    for (w, gamma, beta, k, s, p, use_bn, use_act) in params:
        weights.append(jnp.transpose(w, (2, 1, 0)).astype(jnp.bfloat16))
        if use_bn:
            gammas.append(gamma.reshape(1, -1).astype(jnp.float32))
            betas.append(beta.reshape(1, -1).astype(jnp.float32))
        cfg.append((int(k), int(s), int(p), bool(use_bn), bool(use_act)))
    return weights, gammas, betas, tuple(cfg)


# ------------------------ pure-JAX reference (check) ------------------------ #
def encoder_reference(x_ncl, params):
    """Matches the kernel's numerics: bf16 conv inputs, f32 accumulation."""
    x = x_ncl
    for (w, gamma, beta, k, s, p, use_bn, use_act) in params:
        x = lax.conv_general_dilated(
            x.astype(jnp.bfloat16), w.astype(jnp.bfloat16),
            window_strides=(s,), padding=[(p, p)],
            dimension_numbers=("NCH", "OIH", "NCH"),
            preferred_element_type=jnp.float32,
        )
        if use_bn:
            mean = jnp.mean(x, axis=(0, 2), keepdims=True)
            var = jnp.mean((x - mean) ** 2, axis=(0, 2), keepdims=True)
            x = (x - mean) / jnp.sqrt(var + BN_EPS)
            x = x * gamma[None, :, None] + beta[None, :, None]
        if use_act:
            x = jnp.where(x > 0, x, LEAKY_SLOPE * x)
    return x


# ----------------------------------- main ----------------------------------- #
if __name__ == "__main__":
    B, in_c, hc, latent_c, L = 2, 4, 8, 16, 320   # 320->160->80->40->20->10->1
    key = jax.random.PRNGKey(0)
    key, kx = jax.random.split(key)
    x = jax.random.normal(kx, (B, in_c, L), jnp.float32)

    params = build_params(key, in_c, hc, latent_c)
    weights, gammas, betas, cfg = prepare_params(params)

    out = jax.block_until_ready(encoder_forward(x, weights, gammas, betas, cfg=cfg))
    ref = jax.block_until_ready(encoder_reference(x, params))

    assert out.shape == (B, latent_c, 1), out.shape
    max_err = float(jnp.max(jnp.abs(out - ref)))
    assert jnp.allclose(out, ref, rtol=1e-3, atol=1e-3), max_err
    print("KERNEL_OK")
</pallas_src>

<mosaic_0001>
module attributes {stable_mosaic.version = 11 : i64} {
  func.func @_encoder_kernel(%arg0: i32, %arg1: memref<644x4xf32, #tpu.memory_space<vmem>>, %arg2: memref<4x4x8xbf16, #tpu.memory_space<vmem>>, %arg3: memref<4x8x16xbf16, #tpu.memory_space<vmem>>, %arg4: memref<4x16x32xbf16, #tpu.memory_space<vmem>>, %arg5: memref<4x32x64xbf16, #tpu.memory_space<vmem>>, %arg6: memref<4x64x128xbf16, #tpu.memory_space<vmem>>, %arg7: memref<10x128x16xbf16, #tpu.memory_space<vmem>>, %arg8: memref<1x16xf32, #tpu.memory_space<vmem>>, %arg9: memref<1x32xf32, #tpu.memory_space<vmem>>, %arg10: memref<1x64xf32, #tpu.memory_space<vmem>>, %arg11: memref<1x128xf32, #tpu.memory_space<vmem>>, %arg12: memref<1x16xf32, #tpu.memory_space<vmem>>, %arg13: memref<1x32xf32, #tpu.memory_space<vmem>>, %arg14: memref<1x64xf32, #tpu.memory_space<vmem>>, %arg15: memref<1x128xf32, #tpu.memory_space<vmem>>, %arg16: memref<2x16xf32, #tpu.memory_space<vmem>>, %arg17: memref<324x8xf32, #tpu.memory_space<vmem>>, %arg18: memref<164x16xf32, #tpu.memory_space<vmem>>, %arg19: memref<84x32xf32, #tpu.memory_space<vmem>>, %arg20: memref<44x64xf32, #tpu.memory_space<vmem>>, %arg21: memref<20x128xf32, #tpu.memory_space<vmem>>) attributes {dimension_semantics = [#tpu.dimension_semantics<arbitrary>], iteration_bounds = array<i64: 1>, scalar_prefetch = 0 : i64, scratch_operands = 5 : i64, tpu.core_type = #tpu.core_type<tc>, window_params = [{pipeline_mode = #tpu.pipeline_mode<synchronous>, transform_indices = @transform_0, window_bounds = array<i64: 644, 4>}, {pipeline_mode = #tpu.pipeline_mode<synchronous>, transform_indices = @transform_1, window_bounds = array<i64: 4, 4, 8>}, {pipeline_mode = #tpu.pipeline_mode<synchronous>, transform_indices = @transform_2, window_bounds = array<i64: 4, 8, 16>}, {pipeline_mode = #tpu.pipeline_mode<synchronous>, transform_indices = @transform_3, window_bounds = array<i64: 4, 16, 32>}, {pipeline_mode = #tpu.pipeline_mode<synchronous>, transform_indices = @transform_4, window_bounds = array<i64: 4, 32, 64>}, {pipeline_mode = #tpu.pipeline_mode<synchronous>, transform_indices = @transform_5, window_bounds = array<i64: 4, 64, 128>}, {pipeline_mode = #tpu.pipeline_mode<synchronous>, transform_indices = @transform_6, window_bounds = array<i64: 10, 128, 16>}, {pipeline_mode = #tpu.pipeline_mode<synchronous>, transform_indices = @transform_7, window_bounds = array<i64: 1, 16>}, {pipeline_mode = #tpu.pipeline_mode<synchronous>, transform_indices = @transform_8, window_bounds = array<i64: 1, 32>}, {pipeline_mode = #tpu.pipeline_mode<synchronous>, transform_indices = @transform_9, window_bounds = array<i64: 1, 64>}, {pipeline_mode = #tpu.pipeline_mode<synchronous>, transform_indices = @transform_10, window_bounds = array<i64: 1, 128>}, {pipeline_mode = #tpu.pipeline_mode<synchronous>, transform_indices = @transform_11, window_bounds = array<i64: 1, 16>}, {pipeline_mode = #tpu.pipeline_mode<synchronous>, transform_indices = @transform_12, window_bounds = array<i64: 1, 32>}, {pipeline_mode = #tpu.pipeline_mode<synchronous>, transform_indices = @transform_13, window_bounds = array<i64: 1, 64>}, {pipeline_mode = #tpu.pipeline_mode<synchronous>, transform_indices = @transform_14, window_bounds = array<i64: 1, 128>}, {pipeline_mode = #tpu.pipeline_mode<synchronous>, transform_indices = @transform_15, window_bounds = array<i64: 2, 16>}]} {
    %c0 = arith.constant 0 : index
    %c0_0 = arith.constant 0 : index
    %0 = tpu.strided_load %arg1[%c0, %c0_0] {strides = array<i32: 2, 1>} : memref<644x4xf32, #tpu.memory_space<vmem>>, vector<160x4xf32>
    %1 = arith.truncf %0 : vector<160x4xf32> to vector<160x4xbf16>
    %c0_1 = arith.constant 0 : index
    %c0_2 = arith.constant 0 : index
    %c0_3 = arith.constant 0 : index
    %2 = vector.load %arg2[%c0_1, %c0_2, %c0_3] : memref<4x4x8xbf16, #tpu.memory_space<vmem>>, vector<1x4x8xbf16>
    %3 = vector.shape_cast %2 : vector<1x4x8xbf16> to vector<4x8xbf16>
    %cst = arith.constant dense<0.000000e+00> : vector<160x8xf32>
    %4 = tpu.matmul %1, %3, %cst {dimension_numbers = #tpu.dot_dimension_numbers<[1], [0], [0], [1], [0, 0, 1, 1], [], []>} : vector<160x4xbf16>, vector<4x8xbf16>, vector<160x8xf32> -> vector<160x8xf32>
    %c1 = arith.constant 1 : index
    %c0_4 = arith.constant 0 : index
    %5 = tpu.strided_load %arg1[%c1, %c0_4] {strides = array<i32: 2, 1>} : memref<644x4xf32, #tpu.memory_space<vmem>>, vector<160x4xf32>
    %6 = arith.truncf %5 : vector<160x4xf32> to vector<160x4xbf16>
    %c1_5 = arith.constant 1 : index
    %c0_6 = arith.constant 0 : index
    %c0_7 = arith.constant 0 : index
    %7 = vector.load %arg2[%c1_5, %c0_6, %c0_7] : memref<4x4x8xbf16, #tpu.memory_space<vmem>>, vector<1x4x8xbf16>
    %8 = vector.shape_cast %7 : vector<1x4x8xbf16> to vector<4x8xbf16>
    %cst_8 = arith.constant dense<0.000000e+00> : vector<160x8xf32>
    %9 = tpu.matmul %6, %8, %cst_8 {dimension_numbers = #tpu.dot_dimension_numbers<[1], [0], [0], [1], [0, 0, 1, 1], [], []>} : vector<160x4xbf16>, vector<4x8xbf16>, vector<160x8xf32> -> vector<160x8xf32>
    %10 = arith.addf %4, %9 : vector<160x8xf32>
    %c2 = arith.constant 2 : index
    %c0_9 = arith.constant 0 : index
    %11 = tpu.strided_load %arg1[%c2, %c0_9] {strides = array<i32: 2, 1>} : memref<644x4xf32, #tpu.memory_space<vmem>>, vector<160x4xf32>
    %12 = arith.truncf %11 : vector<160x4xf32> to vector<160x4xbf16>
    %c2_10 = arith.constant 2 : index
    %c0_11 = arith.constant 0 : index
    %c0_12 = arith.constant 0 : index
    %13 = vector.load %arg2[%c2_10, %c0_11, %c0_12] : memref<4x4x8xbf16, #tpu.memory_space<vmem>>, vector<1x4x8xbf16>
    %14 = vector.shape_cast %13 : vector<1x4x8xbf16> to vector<4x8xbf16>
    %cst_13 = arith.constant dense<0.000000e+00> : vector<160x8xf32>
    %15 = tpu.matmul %12, %14, %cst_13 {dimension_numbers = #tpu.dot_dimension_numbers<[1], [0], [0], [1], [0, 0, 1, 1], [], []>} : vector<160x4xbf16>, vector<4x8xbf16>, vector<160x8xf32> -> vector<160x8xf32>
    %16 = arith.addf %10, %15 : vector<160x8xf32>
    %c3 = arith.constant 3 : index
    %c0_14 = arith.constant 0 : index
    %17 = tpu.strided_load %arg1[%c3, %c0_14] {strides = array<i32: 2, 1>} : memref<644x4xf32, #tpu.memory_space<vmem>>, vector<160x4xf32>
    %18 = arith.truncf %17 : vector<160x4xf32> to vector<160x4xbf16>
    %c3_15 = arith.constant 3 : index
    %c0_16 = arith.constant 0 : index
    %c0_17 = arith.constant 0 : index
    %19 = vector.load %arg2[%c3_15, %c0_16, %c0_17] : memref<4x4x8xbf16, #tpu.memory_space<vmem>>, vector<1x4x8xbf16>
    %20 = vector.shape_cast %19 : vector<1x4x8xbf16> to vector<4x8xbf16>
    %cst_18 = arith.constant dense<0.000000e+00> : vector<160x8xf32>
    %21 = tpu.matmul %18, %20, %cst_18 {dimension_numbers = #tpu.dot_dimension_numbers<[1], [0], [0], [1], [0, 0, 1, 1], [], []>} : vector<160x4xbf16>, vector<4x8xbf16>, vector<160x8xf32> -> vector<160x8xf32>
    %22 = arith.addf %16, %21 : vector<160x8xf32>
    %c322 = arith.constant 322 : index
    %c0_19 = arith.constant 0 : index
    %23 = tpu.strided_load %arg1[%c322, %c0_19] {strides = array<i32: 2, 1>} : memref<644x4xf32, #tpu.memory_space<vmem>>, vector<160x4xf32>
    %24 = arith.truncf %23 : vector<160x4xf32> to vector<160x4xbf16>
    %c0_20 = arith.constant 0 : index
    %c0_21 = arith.constant 0 : index
    %c0_22 = arith.constant 0 : index
    %25 = vector.load %arg2[%c0_20, %c0_21, %c0_22] : memref<4x4x8xbf16, #tpu.memory_space<vmem>>, vector<1x4x8xbf16>
    %26 = vector.shape_cast %25 : vector<1x4x8xbf16> to vector<4x8xbf16>
    %cst_23 = arith.constant dense<0.000000e+00> : vector<160x8xf32>
    %27 = tpu.matmul %24, %26, %cst_23 {dimension_numbers = #tpu.dot_dimension_numbers<[1], [0], [0], [1], [0, 0, 1, 1], [], []>} : vector<160x4xbf16>, vector<4x8xbf16>, vector<160x8xf32> -> vector<160x8xf32>
    %c323 = arith.constant 323 : index
    %c0_24 = arith.constant 0 : index
    %28 = tpu.strided_load %arg1[%c323, %c0_24] {strides = array<i32: 2, 1>} : memref<644x4xf32, #tpu.memory_space<vmem>>, vector<160x4xf32>
    %29 = arith.truncf %28 : vector<160x4xf32> to vector<160x4xbf16>
    %c1_25 = arith.constant 1 : index
    %c0_26 = arith.constant 0 : index
    %c0_27 = arith.constant 0 : index
    %30 = vector.load %arg2[%c1_25, %c0_26, %c0_27] : memref<4x4x8xbf16, #tpu.memory_space<vmem>>, vector<1x4x8xbf16>
    %31 = vector.shape_cast %30 : vector<1x4x8xbf16> to vector<4x8xbf16>
    %cst_28 = arith.constant dense<0.000000e+00> : vector<160x8xf32>
    %32 = tpu.matmul %29, %31, %cst_28 {dimension_numbers = #tpu.dot_dimension_numbers<[1], [0], [0], [1], [0, 0, 1, 1], [], []>} : vector<160x4xbf16>, vector<4x8xbf16>, vector<160x8xf32> -> vector<160x8xf32>
    %33 = arith.addf %27, %32 : vector<160x8xf32>
    %c324 = arith.constant 324 : index
    %c0_29 = arith.constant 0 : index
    %34 = tpu.strided_load %arg1[%c324, %c0_29] {strides = array<i32: 2, 1>} : memref<644x4xf32, #tpu.memory_space<vmem>>, vector<160x4xf32>
    %35 = arith.truncf %34 : vector<160x4xf32> to vector<160x4xbf16>
    %c2_30 = arith.constant 2 : index
    %c0_31 = arith.constant 0 : index
    %c0_32 = arith.constant 0 : index
    %36 = vector.load %arg2[%c2_30, %c0_31, %c0_32] : memref<4x4x8xbf16, #tpu.memory_space<vmem>>, vector<1x4x8xbf16>
    %37 = vector.shape_cast %36 : vector<1x4x8xbf16> to vector<4x8xbf16>
    %cst_33 = arith.constant dense<0.000000e+00> : vector<160x8xf32>
    %38 = tpu.matmul %35, %37, %cst_33 {dimension_numbers = #tpu.dot_dimension_numbers<[1], [0], [0], [1], [0, 0, 1, 1], [], []>} : vector<160x4xbf16>, vector<4x8xbf16>, vector<160x8xf32> -> vector<160x8xf32>
    %39 = arith.addf %33, %38 : vector<160x8xf32>
    %c325 = arith.constant 325 : index
    %c0_34 = arith.constant 0 : index
    %40 = tpu.strided_load %arg1[%c325, %c0_34] {strides = array<i32: 2, 1>} : memref<644x4xf32, #tpu.memory_space<vmem>>, vector<160x4xf32>
    %41 = arith.truncf %40 : vector<160x4xf32> to vector<160x4xbf16>
    %c3_35 = arith.constant 3 : index
    %c0_36 = arith.constant 0 : index
    %c0_37 = arith.constant 0 : index
    %42 = vector.load %arg2[%c3_35, %c0_36, %c0_37] : memref<4x4x8xbf16, #tpu.memory_space<vmem>>, vector<1x4x8xbf16>
    %43 = vector.shape_cast %42 : vector<1x4x8xbf16> to vector<4x8xbf16>
    %cst_38 = arith.constant dense<0.000000e+00> : vector<160x8xf32>
    %44 = tpu.matmul %41, %43, %cst_38 {dimension_numbers = #tpu.dot_dimension_numbers<[1], [0], [0], [1], [0, 0, 1, 1], [], []>} : vector<160x4xbf16>, vector<4x8xbf16>, vector<160x8xf32> -> vector<160x8xf32>
    %45 = arith.addf %39, %44 : vector<160x8xf32>
    %cst_39 = arith.constant 0.000000e+00 : f32
    %46 = vector.broadcast %cst_39 : f32 to vector<160x8xf32>
    %47 = arith.cmpf ogt, %22, %46 : vector<160x8xf32>
    %cst_40 = arith.constant 2.000000e-01 : f32
    %48 = vector.broadcast %cst_40 : f32 to vector<160x8xf32>
    %49 = arith.mulf %48, %22 : vector<160x8xf32>
    %50 = arith.select %47, %22, %49 : vector<160x8xi1>, vector<160x8xf32>
    %cst_41 = arith.constant 0.000000e+00 : f32
    %51 = vector.broadcast %cst_41 : f32 to vector<160x8xf32>
    %52 = arith.cmpf ogt, %45, %51 : vector<160x8xf32>
    %cst_42 = arith.constant 2.000000e-01 : f32
    %53 = vector.broadcast %cst_42 : f32 to vector<160x8xf32>
    %54 = arith.mulf %53, %45 : vector<160x8xf32>
    %55 = arith.select %52, %45, %54 : vector<160x8xi1>, vector<160x8xf32>
    %cst_43 = arith.constant 0.000000e+00 : f32
    %56 = vector.broadcast %cst_43 : f32 to vector<324x8xf32>
    %c0_44 = arith.constant 0 : index
    %c0_45 = arith.constant 0 : index
    %57 = vector.load %arg17[%c0_44, %c0_45] : memref<324x8xf32, #tpu.memory_space<vmem>>, vector<324x8xf32>
    tpu.vector_store %arg17[%c0_44, %c0_45], %56 {strides = array<i32>} : memref<324x8xf32, #tpu.memory_space<vmem>>, vector<324x8xf32>,
    %c1_46 = arith.constant 1 : index
    %c0_47 = arith.constant 0 : index
    %58 = vector.load %arg17[%c1_46, %c0_47] : memref<324x8xf32, #tpu.memory_space<vmem>>, vector<160x8xf32>
    tpu.vector_store %arg17[%c1_46, %c0_47], %50 {strides = array<i32>} : memref<324x8xf32, #tpu.memory_space<vmem>>, vector<160x8xf32>,
    %c163 = arith.constant 163 : index
    %c0_48 = arith.constant 0 : index
    %59 = vector.load %arg17[%c163, %c0_48] : memref<324x8xf32, #tpu.memory_space<vmem>>, vector<160x8xf32>
    tpu.vector_store %arg17[%c163, %c0_48], %55 {strides = array<i32>} : memref<324x8xf32, #tpu.memory_space<vmem>>, vector<160x8xf32>,
    %c0_49 = arith.constant 0 : index
    %c0_50 = arith.constant 0 : index
    %60 = tpu.strided_load %arg17[%c0_49, %c0_50] {strides = array<i32: 2, 1>} : memref<324x8xf32, #tpu.memory_space<vmem>>, vector<80x8xf32>
    %61 = arith.truncf %60 : vector<80x8xf32> to vector<80x8xbf16>
    %c0_51 = arith.constant 0 : index
    %c0_52 = arith.constant 0 : index
    %c0_53 = arith.constant 0 : index
    %62 = vector.load %arg3[%c0_51, %c0_52, %c0_53] : memref<4x8x16xbf16, #tpu.memory_space<vmem>>, vector<1x8x16xbf16>
    %63 = vector.shape_cast %62 : vector<1x8x16xbf16> to vector<8x16xbf16>
    %cst_54 = arith.constant dense<0.000000e+00> : vector<80x16xf32>
    %64 = tpu.matmul %61, %63, %cst_54 {dimension_numbers = #tpu.dot_dimension_numbers<[1], [0], [0], [1], [0, 0, 1, 1], [], []>} : vector<80x8xbf16>, vector<8x16xbf16>, vector<80x16xf32> -> vector<80x16xf32>
    %c1_55 = arith.constant 1 : index
    %c0_56 = arith.constant 0 : index
    %65 = tpu.strided_load %arg17[%c1_55, %c0_56] {strides = array<i32: 2, 1>} : memref<324x8xf32, #tpu.memory_space<vmem>>, vector<80x8xf32>
    %66 = arith.truncf %65 : vector<80x8xf32> to vector<80x8xbf16>
    %c1_57 = arith.constant 1 : index
    %c0_58 = arith.constant 0 : index
    %c0_59 = arith.constant 0 : index
    %67 = vector.load %arg3[%c1_57, %c0_58, %c0_59] : memref<4x8x16xbf16, #tpu.memory_space<vmem>>, vector<1x8x16xbf16>
    %68 = vector.shape_cast %67 : vector<1x8x16xbf16> to vector<8x16xbf16>
    %cst_60 = arith.constant dense<0.000000e+00> : vector<80x16xf32>
    %69 = tpu.matmul %66, %68, %cst_60 {dimension_numbers = #tpu.dot_dimension_numbers<[1], [0], [0], [1], [0, 0, 1, 1], [], []>} : vector<80x8xbf16>, vector<8x16xbf16>, vector<80x16xf32> -> vector<80x16xf32>
    %70 = arith.addf %64, %69 : vector<80x16xf32>
    %c2_61 = arith.constant 2 : index
    %c0_62 = arith.constant 0 : index
    %71 = tpu.strided_load %arg17[%c2_61, %c0_62] {strides = array<i32: 2, 1>} : memref<324x8xf32, #tpu.memory_space<vmem>>, vector<80x8xf32>
    %72 = arith.truncf %71 : vector<80x8xf32> to vector<80x8xbf16>
    %c2_63 = arith.constant 2 : index
    %c0_64 = arith.constant 0 : index
    %c0_65 = arith.constant 0 : index
    %73 = vector.load %arg3[%c2_63, %c0_64, %c0_65] : memref<4x8x16xbf16, #tpu.memory_space<vmem>>, vector<1x8x16xbf16>
    %74 = vector.shape_cast %73 : vector<1x8x16xbf16> to vector<8x16xbf16>
    %cst_66 = arith.constant dense<0.000000e+00> : vector<80x16xf32>
    %75 = tpu.matmul %72, %74, %cst_66 {dimension_numbers = #tpu.dot_dimension_numbers<[1], [0], [0], [1], [0, 0, 1, 1], [], []>} : vector<80x8xbf16>, vector<8x16xbf16>, vector<80x16xf32> -> vector<80x16xf32>
    %76 = arith.addf %70, %75 : vector<80x16xf32>
    %c3_67 = arith.constant 3 : index
    %c0_68 = arith.constant 0 : index
    %77 = tpu.strided_load %arg17[%c3_67, %c0_68] {strides = array<i32: 2, 1>} : memref<324x8xf32, #tpu.memory_space<vmem>>, vector<80x8xf32>
    %78 = arith.truncf %77 : vector<80x8xf32> to vector<80x8xbf16>
    %c3_69 = arith.constant 3 : index
    %c0_70 = arith.constant 0 : index
    %c0_71 = arith.constant 0 : index
    %79 = vector.load %arg3[%c3_69, %c0_70, %c0_71] : memref<4x8x16xbf16, #tpu.memory_space<vmem>>, vector<1x8x16xbf16>
    %80 = vector.shape_cast %79 : vector<1x8x16xbf16> to vector<8x16xbf16>
    %cst_72 = arith.constant dense<0.000000e+00> : vector<80x16xf32>
    %81 = tpu.matmul %78, %80, %cst_72 {dimension_numbers = #tpu.dot_dimension_numbers<[1], [0], [0], [1], [0, 0, 1, 1], [], []>} : vector<80x8xbf16>, vector<8x16xbf16>, vector<80x16xf32> -> vector<80x16xf32>
    %82 = arith.addf %76, %81 : vector<80x16xf32>
    %c162 = arith.constant 162 : index
    %c0_73 = arith.constant 0 : index
    %83 = tpu.strided_load %arg17[%c162, %c0_73] {strides = array<i32: 2, 1>} : memref<324x8xf32, #tpu.memory_space<vmem>>, vector<80x8xf32>
    %84 = arith.truncf %83 : vector<80x8xf32> to vector<80x8xbf16>
    %c0_74 = arith.constant 0 : index
    %c0_75 = arith.constant 0 : index
    %c0_76 = arith.constant 0 : index
    %85 = vector.load %arg3[%c0_74, %c0_75, %c0_76] : memref<4x8x16xbf16, #tpu.memory_space<vmem>>, vector<1x8x16xbf16>
    %86 = vector.shape_cast %85 : vector<1x8x16xbf16> to vector<8x16xbf16>
    %cst_77 = arith.constant dense<0.000000e+00> : vector<80x16xf32>
    %87 = tpu.matmul %84, %86, %cst_77 {dimension_numbers = #tpu.dot_dimension_numbers<[1], [0], [0], [1], [0, 0, 1, 1], [], []>} : vector<80x8xbf16>, vector<8x16xbf16>, vector<80x16xf32> -> vector<80x16xf32>
    %c163_78 = arith.constant 163 : index
    %c0_79 = arith.constant 0 : index
    %88 = tpu.strided_load %arg17[%c163_78, %c0_79] {strides = array<i32: 2, 1>} : memref<324x8xf32, #tpu.memory_space<vmem>>, vector<80x8xf32>
    %89 = arith.truncf %88 : vector<80x8xf32> to vector<80x8xbf16>
    %c1_80 = arith.constant 1 : index
    %c0_81 = arith.constant 0 : index
    %c0_82 = arith.constant 0 : index
    %90 = vector.load %arg3[%c1_80, %c0_81, %c0_82] : memref<4x8x16xbf16, #tpu.memory_space<vmem>>, vector<1x8x16xbf16>
    %91 = vector.shape_cast %90 : vector<1x8x16xbf16> to vector<8x16xbf16>
    %cst_83 = arith.constant dense<0.000000e+00> : vector<80x16xf32>
    %92 = tpu.matmul %89, %91, %cst_83 {dimension_numbers = #tpu.dot_dimension_numbers<[1], [0], [0], [1], [0, 0, 1, 1], [], []>} : vector<80x8xbf16>, vector<8x16xbf16>, vector<80x16xf32> -> vector<80x16xf32>
    %93 = arith.addf %87, %92 : vector<80x16xf32>
    %c164 = arith.constant 164 : index
    %c0_84 = arith.constant 0 : index
    %94 = tpu.strided_load %arg17[%c164, %c0_84] {strides = array<i32: 2, 1>} : memref<324x8xf32, #tpu.memory_space<vmem>>, vector<80x8xf32>
    %95 = arith.truncf %94 : vector<80x8xf32> to vector<80x8xbf16>
    %c2_85 = arith.constant 2 : index
    %c0_86 = arith.constant 0 : index
    %c0_87 = arith.constant 0 : index
    %96 = vector.load %arg3[%c2_85, %c0_86, %c0_87] : memref<4x8x16xbf16, #tpu.memory_space<vmem>>, vector<1x8x16xbf16>
    %97 = vector.shape_cast %96 : vector<1x8x16xbf16> to vector<8x16xbf16>
    %cst_88 = arith.constant dense<0.000000e+00> : vector<80x16xf32>
    %98 = tpu.matmul %95, %97, %cst_88 {dimension_numbers = #tpu.dot_dimension_numbers<[1], [0], [0], [1], [0, 0, 1, 1], [], []>} : vector<80x8xbf16>, vector<8x16xbf16>, vector<80x16xf32> -> vector<80x16xf32>
    %99 = arith.addf %93, %98 : vector<80x16xf32>
    %c165 = arith.constant 165 : index
    %c0_89 = arith.constant 0 : index
    %100 = tpu.strided_load %arg17[%c165, %c0_89] {strides = array<i32: 2, 1>} : memref<324x8xf32, #tpu.memory_space<vmem>>, vector<80x8xf32>
    %101 = arith.truncf %100 : vector<80x8xf32> to vector<80x8xbf16>
    %c3_90 = arith.constant 3 : index
    %c0_91 = arith.constant 0 : index
    %c0_92 = arith.constant 0 : index
    %102 = vector.load %arg3[%c3_90, %c0_91, %c0_92] : memref<4x8x16xbf16, #tpu.memory_space<vmem>>, vector<1x8x16xbf16>
    %103 = vector.shape_cast %102 : vector<1x8x16xbf16> to vector<8x16xbf16>
    %cst_93 = arith.constant dense<0.000000e+00> : vector<80x16xf32>
    %104 = tpu.matmul %101, %103, %cst_93 {dimension_numbers = #tpu.dot_dimension_numbers<[1], [0], [0], [1], [0, 0, 1, 1], [], []>} : vector<80x8xbf16>, vector<8x16xbf16>, vector<80x16xf32> -> vector<80x16xf32>
    %105 = arith.addf %99, %104 : vector<80x16xf32>
    %cst_94 = arith.constant dense<0.000000e+00> : vector<16xf32>
    %106 = vector.multi_reduction <add>, %82, %cst_94 [0] : vector<80x16xf32> to vector<16xf32>
    %107 = vector.shape_cast %106 : vector<16xf32> to vector<1x16xf32>
    %108 = arith.mulf %82, %82 : vector<80x16xf32>
    %cst_95 = arith.constant dense<0.000000e+00> : vector<16xf32>
    %109 = vector.multi_reduction <add>, %108, %cst_95 [0] : vector<80x16xf32> to vector<16xf32>
    %110 = vector.shape_cast %109 : vector<16xf32> to vector<1x16xf32>
    %cst_96 = arith.constant dense<0.000000e+00> : vector<16xf32>
    %111 = vector.multi_reduction <add>, %105, %cst_96 [0] : vector<80x16xf32> to vector<16xf32>
    %112 = vector.shape_cast %111 : vector<16xf32> to vector<1x16xf32>
    %113 = arith.addf %107, %112 : vector<1x16xf32>
    %114 = arith.mulf %105, %105 : vector<80x16xf32>
    %cst_97 = arith.constant dense<0.000000e+00> : vector<16xf32>
    %115 = vector.multi_reduction <add>, %114, %cst_97 [0] : vector<80x16xf32> to vector<16xf32>
    %116 = vector.shape_cast %115 : vector<16xf32> to vector<1x16xf32>
    %117 = arith.addf %110, %116 : vector<1x16xf32>
    %cst_98 = arith.constant 6.250000e-03 : f32
    %118 = vector.broadcast %cst_98 : f32 to vector<1x16xf32>
    %119 = arith.mulf %113, %118 : vector<1x16xf32>
    %cst_99 = arith.constant 6.250000e-03 : f32
    %120 = vector.broadcast %cst_99 : f32 to vector<1x16xf32>
    %121 = arith.mulf %117, %120 : vector<1x16xf32>
    %122 = arith.mulf %119, %119 : vector<1x16xf32>
    %123 = arith.subf %121, %122 : vector<1x16xf32>
    %cst_100 = arith.constant 9.99999974E-6 : f32
    %124 = vector.broadcast %cst_100 : f32 to vector<1x16xf32>
    %125 = arith.addf %123, %124 : vector<1x16xf32>
    %126 = math.rsqrt %125 : vector<1x16xf32>
    %c0_101 = arith.constant 0 : index
    %c0_102 = arith.constant 0 : index
    %127 = vector.load %arg8[%c0_101, %c0_102] : memref<1x16xf32, #tpu.memory_space<vmem>>, vector<1x16xf32>
    %128 = arith.mulf %126, %127 : vector<1x16xf32>
    %c0_103 = arith.constant 0 : index
    %c0_104 = arith.constant 0 : index
    %129 = vector.load %arg12[%c0_103, %c0_104] : memref<1x16xf32, #tpu.memory_space<vmem>>, vector<1x16xf32>
    %130 = arith.mulf %119, %128 : vector<1x16xf32>
    %131 = arith.subf %129, %130 : vector<1x16xf32>
    %132 = vector.broadcast %128 : vector<1x16xf32> to vector<80x16xf32>
    %133 = arith.mulf %82, %132 : vector<80x16xf32>
    %134 = vector.broadcast %131 : vector<1x16xf32> to vector<80x16xf32>
    %135 = arith.addf %133, %134 : vector<80x16xf32>
    %136 = vector.broadcast %128 : vector<1x16xf32> to vector<80x16xf32>
    %137 = arith.mulf %105, %136 : vector<80x16xf32>
    %138 = vector.broadcast %131 : vector<1x16xf32> to vector<80x16xf32>
    %139 = arith.addf %137, %138 : vector<80x16xf32>
    %cst_105 = arith.constant 0.000000e+00 : f32
    %140 = vector.broadcast %cst_105 : f32 to vector<80x16xf32>
    %141 = arith.cmpf ogt, %135, %140 : vector<80x16xf32>
    %cst_106 = arith.constant 2.000000e-01 : f32
    %142 = vector.broadcast %cst_106 : f32 to vector<80x16xf32>
    %143 = arith.mulf %142, %135 : vector<80x16xf32>
    %144 = arith.select %141, %135, %143 : vector<80x16xi1>, vector<80x16xf32>
    %cst_107 = arith.constant 0.000000e+00 : f32
    %145 = vector.broadcast %cst_107 : f32 to vector<80x16xf32>
    %146 = arith.cmpf ogt, %139, %145 : vector<80x16xf32>
    %cst_108 = arith.constant 2.000000e-01 : f32
    %147 = vector.broadcast %cst_108 : f32 to vector<80x16xf32>
    %148 = arith.mulf %147, %139 : vector<80x16xf32>
    %149 = arith.select %146, %139, %148 : vector<80x16xi1>, vector<80x16xf32>
    %cst_109 = arith.constant 0.000000e+00 : f32
    %150 = vector.broadcast %cst_109 : f32 to vector<164x16xf32>
    %c0_110 = arith.constant 0 : index
    %c0_111 = arith.constant 0 : index
    %151 = vector.load %arg18[%c0_110, %c0_111] : memref<164x16xf32, #tpu.memory_space<vmem>>, vector<164x16xf32>
    tpu.vector_store %arg18[%c0_110, %c0_111], %150 {strides = array<i32>} : memref<164x16xf32, #tpu.memory_space<vmem>>, vector<164x16xf32>,
    %c1_112 = arith.constant 1 : index
    %c0_113 = arith.constant 0 : index
    %152 = vector.load %arg18[%c1_112, %c0_113] : memref<164x16xf32, #tpu.memory_space<vmem>>, vector<80x16xf32>
    tpu.vector_store %arg18[%c1_112, %c0_113], %144 {strides = array<i32>} : memref<164x16xf32, #tpu.memory_space<vmem>>, vector<80x16xf32>,
    %c83 = arith.constant 83 : index
    %c0_114 = arith.constant 0 : index
    %153 = vector.load %arg18[%c83, %c0_114] : memref<164x16xf32, #tpu.memory_space<vmem>>, vector<80x16xf32>
    tpu.vector_store %arg18[%c83, %c0_114], %149 {strides = array<i32>} : memref<164x16xf32, #tpu.memory_space<vmem>>, vector<80x16xf32>,
    %c0_115 = arith.constant 0 : index
    %c0_116 = arith.constant 0 : index
    %154 = tpu.strided_load %arg18[%c0_115, %c0_116] {strides = array<i32: 2, 1>} : memref<164x16xf32, #tpu.memory_space<vmem>>, vector<40x16xf32>
    %155 = arith.truncf %154 : vector<40x16xf32> to vector<40x16xbf16>
    %c0_117 = arith.constant 0 : index
    %c0_118 = arith.constant 0 : index
    %c0_119 = arith.constant 0 : index
    %156 = vector.load %arg4[%c0_117, %c0_118, %c0_119] : memref<4x16x32xbf16, #tpu.memory_space<vmem>>, vector<1x16x32xbf16>
    %157 = vector.shape_cast %156 : vector<1x16x32xbf16> to vector<16x32xbf16>
    %cst_120 = arith.constant dense<0.000000e+00> : vector<40x32xf32>
    %158 = tpu.matmul %155, %157, %cst_120 {dimension_numbers = #tpu.dot_dimension_numbers<[1], [0], [0], [1], [0, 0, 1, 1], [], []>} : vector<40x16xbf16>, vector<16x32xbf16>, vector<40x32xf32> -> vector<40x32xf32>
    %c1_121 = arith.constant 1 : index
    %c0_122 = arith.constant 0 : index
    %159 = tpu.strided_load %arg18[%c1_121, %c0_122] {strides = array<i32: 2, 1>} : memref<164x16xf32, #tpu.memory_space<vmem>>, vector<40x16xf32>
    %160 = arith.truncf %159 : vector<40x16xf32> to vector<40x16xbf16>
    %c1_123 = arith.constant 1 : index
    %c0_124 = arith.constant 0 : index
    %c0_125 = arith.constant 0 : index
    %161 = vector.load %arg4[%c1_123, %c0_124, %c0_125] : memref<4x16x32xbf16, #tpu.memory_space<vmem>>, vector<1x16x32xbf16>
    %162 = vector.shape_cast %161 : vector<1x16x32xbf16> to vector<16x32xbf16>
    %cst_126 = arith.constant dense<0.000000e+00> : vector<40x32xf32>
    %163 = tpu.matmul %160, %162, %cst_126 {dimension_numbers = #tpu.dot_dimension_numbers<[1], [0], [0], [1], [0, 0, 1, 1], [], []>} : vector<40x16xbf16>, vector<16x32xbf16>, vector<40x32xf32> -> vector<40x32xf32>
    %164 = arith.addf %158, %163 : vector<40x32xf32>
    %c2_127 = arith.constant 2 : index
    %c0_128 = arith.constant 0 : index
    %165 = tpu.strided_load %arg18[%c2_127, %c0_128] {strides = array<i32: 2, 1>} : memref<164x16xf32, #tpu.memory_space<vmem>>, vector<40x16xf32>
    %166 = arith.truncf %165 : vector<40x16xf32> to vector<40x16xbf16>
    %c2_129 = arith.constant 2 : index
    %c0_130 = arith.constant 0 : index
    %c0_131 = arith.constant 0 : index
    %167 = vector.load %arg4[%c2_129, %c0_130, %c0_131] : memref<4x16x32xbf16, #tpu.memory_space<vmem>>, vector<1x16x32xbf16>
    %168 = vector.shape_cast %167 : vector<1x16x32xbf16> to vector<16x32xbf16>
    %cst_132 = arith.constant dense<0.000000e+00> : vector<40x32xf32>
    %169 = tpu.matmul %166, %168, %cst_132 {dimension_numbers = #tpu.dot_dimension_numbers<[1], [0], [0], [1], [0, 0, 1, 1], [], []>} : vector<40x16xbf16>, vector<16x32xbf16>, vector<40x32xf32> -> vector<40x32xf32>
    %170 = arith.addf %164, %169 : vector<40x32xf32>
    %c3_133 = arith.constant 3 : index
    %c0_134 = arith.constant 0 : index
    %171 = tpu.strided_load %arg18[%c3_133, %c0_134] {strides = array<i32: 2, 1>} : memref<164x16xf32, #tpu.memory_space<vmem>>, vector<40x16xf32>
    %172 = arith.truncf %171 : vector<40x16xf32> to vector<40x16xbf16>
    %c3_135 = arith.constant 3 : index
    %c0_136 = arith.constant 0 : index
    %c0_137 = arith.constant 0 : index
    %173 = vector.load %arg4[%c3_135, %c0_136, %c0_137] : memref<4x16x32xbf16, #tpu.memory_space<vmem>>, vector<1x16x32xbf16>
    %174 = vector.shape_cast %173 : vector<1x16x32xbf16> to vector<16x32xbf16>
    %cst_138 = arith.constant dense<0.000000e+00> : vector<40x32xf32>
    %175 = tpu.matmul %172, %174, %cst_138 {dimension_numbers = #tpu.dot_dimension_numbers<[1], [0], [0], [1], [0, 0, 1, 1], [], []>} : vector<40x16xbf16>, vector<16x32xbf16>, vector<40x32xf32> -> vector<40x32xf32>
    %176 = arith.addf %170, %175 : vector<40x32xf32>
    %c82 = arith.constant 82 : index
    %c0_139 = arith.constant 0 : index
    %177 = tpu.strided_load %arg18[%c82, %c0_139] {strides = array<i32: 2, 1>} : memref<164x16xf32, #tpu.memory_space<vmem>>, vector<40x16xf32>
    %178 = arith.truncf %177 : vector<40x16xf32> to vector<40x16xbf16>
    %c0_140 = arith.constant 0 : index
    %c0_141 = arith.constant 0 : index
    %c0_142 = arith.constant 0 : index
    %179 = vector.load %arg4[%c0_140, %c0_141, %c0_142] : memref<4x16x32xbf16, #tpu.memory_space<vmem>>, vector<1x16x32xbf16>
    %180 = vector.shape_cast %179 : vector<1x16x32xbf16> to vector<16x32xbf16>
    %cst_143 = arith.constant dense<0.000000e+00> : vector<40x32xf32>
    %181 = tpu.matmul %178, %180, %cst_143 {dimension_numbers = #tpu.dot_dimension_numbers<[1], [0], [0], [1], [0, 0, 1, 1], [], []>} : vector<40x16xbf16>, vector<16x32xbf16>, vector<40x32xf32> -> vector<40x32xf32>
    %c83_144 = arith.constant 83 : index
    %c0_145 = arith.constant 0 : index
    %182 = tpu.strided_load %arg18[%c83_144, %c0_145] {strides = array<i32: 2, 1>} : memref<164x16xf32, #tpu.memory_space<vmem>>, vector<40x16xf32>
    %183 = arith.truncf %182 : vector<40x16xf32> to vector<40x16xbf16>
    %c1_146 = arith.constant 1 : index
    %c0_147 = arith.constant 0 : index
    %c0_148 = arith.constant 0 : index
    %184 = vector.load %arg4[%c1_146, %c0_147, %c0_148] : memref<4x16x32xbf16, #tpu.memory_space<vmem>>, vector<1x16x32xbf16>
    %185 = vector.shape_cast %184 : vector<1x16x32xbf16> to vector<16x32xbf16>
    %cst_149 = arith.constant dense<0.000000e+00> : vector<40x32xf32>
    %186 = tpu.matmul %183, %185, %cst_149 {dimension_numbers = #tpu.dot_dimension_numbers<[1], [0], [0], [1], [0, 0, 1, 1], [], []>} : vector<40x16xbf16>, vector<16x32xbf16>, vector<40x32xf32> -> vector<40x32xf32>
    %187 = arith.addf %181, %186 : vector<40x32xf32>
    %c84 = arith.constant 84 : index
    %c0_150 = arith.constant 0 : index
    %188 = tpu.strided_load %arg18[%c84, %c0_150] {strides = array<i32: 2, 1>} : memref<164x16xf32, #tpu.memory_space<vmem>>, vector<40x16xf32>
    %189 = arith.truncf %188 : vector<40x16xf32> to vector<40x16xbf16>
    %c2_151 = arith.constant 2 : index
    %c0_152 = arith.constant 0 : index
    %c0_153 = arith.constant 0 : index
    %190 = vector.load %arg4[%c2_151, %c0_152, %c0_153] : memref<4x16x32xbf16, #tpu.memory_space<vmem>>, vector<1x16x32xbf16>
    %191 = vector.shape_cast %190 : vector<1x16x32xbf16> to vector<16x32xbf16>
    %cst_154 = arith.constant dense<0.000000e+00> : vector<40x32xf32>
    %192 = tpu.matmul %189, %191, %cst_154 {dimension_numbers = #tpu.dot_dimension_numbers<[1], [0], [0], [1], [0, 0, 1, 1], [], []>} : vector<40x16xbf16>, vector<16x32xbf16>, vector<40x32xf32> -> vector<40x32xf32>
    %193 = arith.addf %187, %192 : vector<40x32xf32>
    %c85 = arith.constant 85 : index
    %c0_155 = arith.constant 0 : index
    %194 = tpu.strided_load %arg18[%c85, %c0_155] {strides = array<i32: 2, 1>} : memref<164x16xf32, #tpu.memory_space<vmem>>, vector<40x16xf32>
    %195 = arith.truncf %194 : vector<40x16xf32> to vector<40x16xbf16>
    %c3_156 = arith.constant 3 : index
    %c0_157 = arith.constant 0 : index
    %c0_158 = arith.constant 0 : index
    %196 = vector.load %arg4[%c3_156, %c0_157, %c0_158] : memref<4x16x32xbf16, #tpu.memory_space<vmem>>, vector<1x16x32xbf16>
    %197 = vector.shape_cast %196 : vector<1x16x32xbf16> to vector<16x32xbf16>
    %cst_159 = arith.constant dense<0.000000e+00> : vector<40x32xf32>
    %198 = tpu.matmul %195, %197, %cst_159 {dimension_numbers = #tpu.dot_dimension_numbers<[1], [0], [0], [1], [0, 0, 1, 1], [], []>} : vector<40x16xbf16>, vector<16x32xbf16>, vector<40x32xf32> -> vector<40x32xf32>
    %199 = arith.addf %193, %198 : vector<40x32xf32>
    %cst_160 = arith.constant dense<0.000000e+00> : vector<32xf32>
    %200 = vector.multi_reduction <add>, %176, %cst_160 [0] : vector<40x32xf32> to vector<32xf32>
    %201 = vector.shape_cast %200 : vector<32xf32> to vector<1x32xf32>
    %202 = arith.mulf %176, %176 : vector<40x32xf32>
    %cst_161 = arith.constant dense<0.000000e+00> : vector<32xf32>
    %203 = vector.multi_reduction <add>, %202, %cst_161 [0] : vector<40x32xf32> to vector<32xf32>
    %204 = vector.shape_cast %203 : vector<32xf32> to vector<1x32xf32>
    %cst_162 = arith.constant dense<0.000000e+00> : vector<32xf32>
    %205 = vector.multi_reduction <add>, %199, %cst_162 [0] : vector<40x32xf32> to vector<32xf32>
    %206 = vector.shape_cast %205 : vector<32xf32> to vector<1x32xf32>
    %207 = arith.addf %201, %206 : vector<1x32xf32>
    %208 = arith.mulf %199, %199 : vector<40x32xf32>
    %cst_163 = arith.constant dense<0.000000e+00> : vector<32xf32>
    %209 = vector.multi_reduction <add>, %208, %cst_163 [0] : vector<40x32xf32> to vector<32xf32>
    %210 = vector.shape_cast %209 : vector<32xf32> to vector<1x32xf32>
    %211 = arith.addf %204, %210 : vector<1x32xf32>
    %cst_164 = arith.constant 1.250000e-02 : f32
    %212 = vector.broadcast %cst_164 : f32 to vector<1x32xf32>
    %213 = arith.mulf %207, %212 : vector<1x32xf32>
    %cst_165 = arith.constant 1.250000e-02 : f32
    %214 = vector.broadcast %cst_165 : f32 to vector<1x32xf32>
    %215 = arith.mulf %211, %214 : vector<1x32xf32>
    %216 = arith.mulf %213, %213 : vector<1x32xf32>
    %217 = arith.subf %215, %216 : vector<1x32xf32>
    %cst_166 = arith.constant 9.99999974E-6 : f32
    %218 = vector.broadcast %cst_166 : f32 to vector<1x32xf32>
    %219 = arith.addf %217, %218 : vector<1x32xf32>
    %220 = math.rsqrt %219 : vector<1x32xf32>
    %c0_167 = arith.constant 0 : index
    %c0_168 = arith.constant 0 : index
    %221 = vector.load %arg9[%c0_167, %c0_168] : memref<1x32xf32, #tpu.memory_space<vmem>>, vector<1x32xf32>
    %222 = arith.mulf %220, %221 : vector<1x32xf32>
    %c0_169 = arith.constant 0 : index
    %c0_170 = arith.constant 0 : index
    %223 = vector.load %arg13[%c0_169, %c0_170] : memref<1x32xf32, #tpu.memory_space<vmem>>, vector<1x32xf32>
    %224 = arith.mulf %213, %222 : vector<1x32xf32>
    %225 = arith.subf %223, %224 : vector<1x32xf32>
    %226 = vector.broadcast %222 : vector<1x32xf32> to vector<40x32xf32>
    %227 = arith.mulf %176, %226 : vector<40x32xf32>
    %228 = vector.broadcast %225 : vector<1x32xf32> to vector<40x32xf32>
    %229 = arith.addf %227, %228 : vector<40x32xf32>
    %230 = vector.broadcast %222 : vector<1x32xf32> to vector<40x32xf32>
    %231 = arith.mulf %199, %230 : vector<40x32xf32>
    %232 = vector.broadcast %225 : vector<1x32xf32> to vector<40x32xf32>
    %233 = arith.addf %231, %232 : vector<40x32xf32>
    %cst_171 = arith.constant 0.000000e+00 : f32
    %234 = vector.broadcast %cst_171 : f32 to vector<40x32xf32>
    %235 = arith.cmpf ogt, %229, %234 : vector<40x32xf32>
    %cst_172 = arith.constant 2.000000e-01 : f32
    %236 = vector.broadcast %cst_172 : f32 to vector<40x32xf32>
    %237 = arith.mulf %236, %229 : vector<40x32xf32>
    %238 = arith.select %235, %229, %237 : vector<40x32xi1>, vector<40x32xf32>
    %cst_173 = arith.constant 0.000000e+00 : f32
    %239 = vector.broadcast %cst_173 : f32 to vector<40x32xf32>
    %240 = arith.cmpf ogt, %233, %239 : vector<40x32xf32>
    %cst_174 = arith.constant 2.000000e-01 : f32
    %241 = vector.broadcast %cst_174 : f32 to vector<40x32xf32>
    %242 = arith.mulf %241, %233 : vector<40x32xf32>
    %243 = arith.select %240, %233, %242 : vector<40x32xi1>, vector<40x32xf32>
    %cst_175 = arith.constant 0.000000e+00 : f32
    %244 = vector.broadcast %cst_175 : f32 to vector<84x32xf32>
    %c0_176 = arith.constant 0 : index
    %c0_177 = arith.constant 0 : index
    %245 = vector.load %arg19[%c0_176, %c0_177] : memref<84x32xf32, #tpu.memory_space<vmem>>, vector<84x32xf32>
    tpu.vector_store %arg19[%c0_176, %c0_177], %244 {strides = array<i32>} : memref<84x32xf32, #tpu.memory_space<vmem>>, vector<84x32xf32>,
    %c1_178 = arith.constant 1 : index
    %c0_179 = arith.constant 0 : index
    %246 = vector.load %arg19[%c1_178, %c0_179] : memref<84x32xf32, #tpu.memory_space<vmem>>, vector<40x32xf32>
    tpu.vector_store %arg19[%c1_178, %c0_179], %238 {strides = array<i32>} : memref<84x32xf32, #tpu.memory_space<vmem>>, vector<40x32xf32>,
    %c43 = arith.constant 43 : index
    %c0_180 = arith.constant 0 : index
    %247 = vector.load %arg19[%c43, %c0_180] : memref<84x32xf32, #tpu.memory_space<vmem>>, vector<40x32xf32>
    tpu.vector_store %arg19[%c43, %c0_180], %243 {strides = array<i32>} : memref<84x32xf32, #tpu.memory_space<vmem>>, vector<40x32xf32>,
    %c0_181 = arith.constant 0 : index
    %c0_182 = arith.constant 0 : index
    %248 = tpu.strided_load %arg19[%c0_181, %c0_182] {strides = array<i32: 2, 1>} : memref<84x32xf32, #tpu.memory_space<vmem>>, vector<20x32xf32>
    %249 = arith.truncf %248 : vector<20x32xf32> to vector<20x32xbf16>
    %c0_183 = arith.constant 0 : index
    %c0_184 = arith.constant 0 : index
    %c0_185 = arith.constant 0 : index
    %250 = vector.load %arg5[%c0_183, %c0_184, %c0_185] : memref<4x32x64xbf16, #tpu.memory_space<vmem>>, vector<1x32x64xbf16>
    %251 = vector.shape_cast %250 : vector<1x32x64xbf16> to vector<32x64xbf16>
    %cst_186 = arith.constant dense<0.000000e+00> : vector<20x64xf32>
    %252 = tpu.matmul %249, %251, %cst_186 {dimension_numbers = #tpu.dot_dimension_numbers<[1], [0], [0], [1], [0, 0, 1, 1], [], []>} : vector<20x32xbf16>, vector<32x64xbf16>, vector<20x64xf32> -> vector<20x64xf32>
    %c1_187 = arith.constant 1 : index
    %c0_188 = arith.constant 0 : index
    %253 = tpu.strided_load %arg19[%c1_187, %c0_188] {strides = array<i32: 2, 1>} : memref<84x32xf32, #tpu.memory_space<vmem>>, vector<20x32xf32>
    %254 = arith.truncf %253 : vector<20x32xf32> to vector<20x32xbf16>
    %c1_189 = arith.constant 1 : index
    %c0_190 = arith.constant 0 : index
    %c0_191 = arith.constant 0 : index
    %255 = vector.load %arg5[%c1_189, %c0_190, %c0_191] : memref<4x32x64xbf16, #tpu.memory_space<vmem>>, vector<1x32x64xbf16>
    %256 = vector.shape_cast %255 : vector<1x32x64xbf16> to vector<32x64xbf16>
    %cst_192 = arith.constant dense<0.000000e+00> : vector<20x64xf32>
    %257 = tpu.matmul %254, %256, %cst_192 {dimension_numbers = #tpu.dot_dimension_numbers<[1], [0], [0], [1], [0, 0, 1, 1], [], []>} : vector<20x32xbf16>, vector<32x64xbf16>, vector<20x64xf32> -> vector<20x64xf32>
    %258 = arith.addf %252, %257 : vector<20x64xf32>
    %c2_193 = arith.constant 2 : index
    %c0_194 = arith.constant 0 : index
    %259 = tpu.strided_load %arg19[%c2_193, %c0_194] {strides = array<i32: 2, 1>} : memref<84x32xf32, #tpu.memory_space<vmem>>, vector<20x32xf32>
    %260 = arith.truncf %259 : vector<20x32xf32> to vector<20x32xbf16>
    %c2_195 = arith.constant 2 : index
    %c0_196 = arith.constant 0 : index
    %c0_197 = arith.constant 0 : index
    %261 = vector.load %arg5[%c2_195, %c0_196, %c0_197] : memref<4x32x64xbf16, #tpu.memory_space<vmem>>, vector<1x32x64xbf16>
    %262 = vector.shape_cast %261 : vector<1x32x64xbf16> to vector<32x64xbf16>
    %cst_198 = arith.constant dense<0.000000e+00> : vector<20x64xf32>
    %263 = tpu.matmul %260, %262, %cst_198 {dimension_numbers = #tpu.dot_dimension_numbers<[1], [0], [0], [1], [0, 0, 1, 1], [], []>} : vector<20x32xbf16>, vector<32x64xbf16>, vector<20x64xf32> -> vector<20x64xf32>
    %264 = arith.addf %258, %263 : vector<20x64xf32>
    %c3_199 = arith.constant 3 : index
    %c0_200 = arith.constant 0 : index
    %265 = tpu.strided_load %arg19[%c3_199, %c0_200] {strides = array<i32: 2, 1>} : memref<84x32xf32, #tpu.memory_space<vmem>>, vector<20x32xf32>
    %266 = arith.truncf %265 : vector<20x32xf32> to vector<20x32xbf16>
    %c3_201 = arith.constant 3 : index
    %c0_202 = arith.constant 0 : index
    %c0_203 = arith.constant 0 : index
    %267 = vector.load %arg5[%c3_201, %c0_202, %c0_203] : memref<4x32x64xbf16, #tpu.memory_space<vmem>>, vector<1x32x64xbf16>
    %268 = vector.shape_cast %267 : vector<1x32x64xbf16> to vector<32x64xbf16>
    %cst_204 = arith.constant dense<0.000000e+00> : vector<20x64xf32>
    %269 = tpu.matmul %266, %268, %cst_204 {dimension_numbers = #tpu.dot_dimension_numbers<[1], [0], [0], [1], [0, 0, 1, 1], [], []>} : vector<20x32xbf16>, vector<32x64xbf16>, vector<20x64xf32> -> vector<20x64xf32>
    %270 = arith.addf %264, %269 : vector<20x64xf32>
    %c42 = arith.constant 42 : index
    %c0_205 = arith.constant 0 : index
    %271 = tpu.strided_load %arg19[%c42, %c0_205] {strides = array<i32: 2, 1>} : memref<84x32xf32, #tpu.memory_space<vmem>>, vector<20x32xf32>
    %272 = arith.truncf %271 : vector<20x32xf32> to vector<20x32xbf16>
    %c0_206 = arith.constant 0 : index
    %c0_207 = arith.constant 0 : index
    %c0_208 = arith.constant 0 : index
    %273 = vector.load %arg5[%c0_206, %c0_207, %c0_208] : memref<4x32x64xbf16, #tpu.memory_space<vmem>>, vector<1x32x64xbf16>
    %274 = vector.shape_cast %273 : vector<1x32x64xbf16> to vector<32x64xbf16>
    %cst_209 = arith.constant dense<0.000000e+00> : vector<20x64xf32>
    %275 = tpu.matmul %272, %274, %cst_209 {dimension_numbers = #tpu.dot_dimension_numbers<[1], [0], [0], [1], [0, 0, 1, 1], [], []>} : vector<20x32xbf16>, vector<32x64xbf16>, vector<20x64xf32> -> vector<20x64xf32>
    %c43_210 = arith.constant 43 : index
    %c0_211 = arith.constant 0 : index
    %276 = tpu.strided_load %arg19[%c43_210, %c0_211] {strides = array<i32: 2, 1>} : memref<84x32xf32, #tpu.memory_space<vmem>>, vector<20x32xf32>
    %277 = arith.truncf %276 : vector<20x32xf32> to vector<20x32xbf16>
    %c1_212 = arith.constant 1 : index
    %c0_213 = arith.constant 0 : index
    %c0_214 = arith.constant 0 : index
    %278 = vector.load %arg5[%c1_212, %c0_213, %c0_214] : memref<4x32x64xbf16, #tpu.memory_space<vmem>>, vector<1x32x64xbf16>
    %279 = vector.shape_cast %278 : vector<1x32x64xbf16> to vector<32x64xbf16>
    %cst_215 = arith.constant dense<0.000000e+00> : vector<20x64xf32>
    %280 = tpu.matmul %277, %279, %cst_215 {dimension_numbers = #tpu.dot_dimension_numbers<[1], [0], [0], [1], [0, 0, 1, 1], [], []>} : vector<20x32xbf16>, vector<32x64xbf16>, vector<20x64xf32> -> vector<20x64xf32>
    %281 = arith.addf %275, %280 : vector<20x64xf32>
    %c44 = arith.constant 44 : index
    %c0_216 = arith.constant 0 : index
    %282 = tpu.strided_load %arg19[%c44, %c0_216] {strides = array<i32: 2, 1>} : memref<84x32xf32, #tpu.memory_space<vmem>>, vector<20x32xf32>
    %283 = arith.truncf %282 : vector<20x32xf32> to vector<20x32xbf16>
    %c2_217 = arith.constant 2 : index
    %c0_218 = arith.constant 0 : index
    %c0_219 = arith.constant 0 : index
    %284 = vector.load %arg5[%c2_217, %c0_218, %c0_219] : memref<4x32x64xbf16, #tpu.memory_space<vmem>>, vector<1x32x64xbf16>
    %285 = vector.shape_cast %284 : vector<1x32x64xbf16> to vector<32x64xbf16>
    %cst_220 = arith.constant dense<0.000000e+00> : vector<20x64xf32>
    %286 = tpu.matmul %283, %285, %cst_220 {dimension_numbers = #tpu.dot_dimension_numbers<[1], [0], [0], [1], [0, 0, 1, 1], [], []>} : vector<20x32xbf16>, vector<32x64xbf16>, vector<20x64xf32> -> vector<20x64xf32>
    %287 = arith.addf %281, %286 : vector<20x64xf32>
    %c45 = arith.constant 45 : index
    %c0_221 = arith.constant 0 : index
    %288 = tpu.strided_load %arg19[%c45, %c0_221] {strides = array<i32: 2, 1>} : memref<84x32xf32, #tpu.memory_space<vmem>>, vector<20x32xf32>
    %289 = arith.truncf %288 : vector<20x32xf32> to vector<20x32xbf16>
    %c3_222 = arith.constant 3 : index
    %c0_223 = arith.constant 0 : index
    %c0_224 = arith.constant 0 : index
    %290 = vector.load %arg5[%c3_222, %c0_223, %c0_224] : memref<4x32x64xbf16, #tpu.memory_space<vmem>>, vector<1x32x64xbf16>
    %291 = vector.shape_cast %290 : vector<1x32x64xbf16> to vector<32x64xbf16>
    %cst_225 = arith.constant dense<0.000000e+00> : vector<20x64xf32>
    %292 = tpu.matmul %289, %291, %cst_225 {dimension_numbers = #tpu.dot_dimension_numbers<[1], [0], [0], [1], [0, 0, 1, 1], [], []>} : vector<20x32xbf16>, vector<32x64xbf16>, vector<20x64xf32> -> vector<20x64xf32>
    %293 = arith.addf %287, %292 : vector<20x64xf32>
    %cst_226 = arith.constant dense<0.000000e+00> : vector<64xf32>
    %294 = vector.multi_reduction <add>, %270, %cst_226 [0] : vector<20x64xf32> to vector<64xf32>
    %295 = vector.shape_cast %294 : vector<64xf32> to vector<1x64xf32>
    %296 = arith.mulf %270, %270 : vector<20x64xf32>
    %cst_227 = arith.constant dense<0.000000e+00> : vector<64xf32>
    %297 = vector.multi_reduction <add>, %296, %cst_227 [0] : vector<20x64xf32> to vector<64xf32>
    %298 = vector.shape_cast %297 : vector<64xf32> to vector<1x64xf32>
    %cst_228 = arith.constant dense<0.000000e+00> : vector<64xf32>
    %299 = vector.multi_reduction <add>, %293, %cst_228 [0] : vector<20x64xf32> to vector<64xf32>
    %300 = vector.shape_cast %299 : vector<64xf32> to vector<1x64xf32>
    %301 = arith.addf %295, %300 : vector<1x64xf32>
    %302 = arith.mulf %293, %293 : vector<20x64xf32>
    %cst_229 = arith.constant dense<0.000000e+00> : vector<64xf32>
    %303 = vector.multi_reduction <add>, %302, %cst_229 [0] : vector<20x64xf32> to vector<64xf32>
    %304 = vector.shape_cast %303 : vector<64xf32> to vector<1x64xf32>
    %305 = arith.addf %298, %304 : vector<1x64xf32>
    %cst_230 = arith.constant 2.500000e-02 : f32
    %306 = vector.broadcast %cst_230 : f32 to vector<1x64xf32>
    %307 = arith.mulf %301, %306 : vector<1x64xf32>
    %cst_231 = arith.constant 2.500000e-02 : f32
    %308 = vector.broadcast %cst_231 : f32 to vector<1x64xf32>
    %309 = arith.mulf %305, %308 : vector<1x64xf32>
    %310 = arith.mulf %307, %307 : vector<1x64xf32>
    %311 = arith.subf %309, %310 : vector<1x64xf32>
    %cst_232 = arith.constant 9.99999974E-6 : f32
    %312 = vector.broadcast %cst_232 : f32 to vector<1x64xf32>
    %313 = arith.addf %311, %312 : vector<1x64xf32>
    %314 = math.rsqrt %313 : vector<1x64xf32>
    %c0_233 = arith.constant 0 : index
    %c0_234 = arith.constant 0 : index
    %315 = vector.load %arg10[%c0_233, %c0_234] : memref<1x64xf32, #tpu.memory_space<vmem>>, vector<1x64xf32>
    %316 = arith.mulf %314, %315 : vector<1x64xf32>
    %c0_235 = arith.constant 0 : index
    %c0_236 = arith.constant 0 : index
    %317 = vector.load %arg14[%c0_235, %c0_236] : memref<1x64xf32, #tpu.memory_space<vmem>>, vector<1x64xf32>
    %318 = arith.mulf %307, %316 : vector<1x64xf32>
    %319 = arith.subf %317, %318 : vector<1x64xf32>
    %320 = vector.broadcast %316 : vector<1x64xf32> to vector<20x64xf32>
    %321 = arith.mulf %270, %320 : vector<20x64xf32>
    %322 = vector.broadcast %319 : vector<1x64xf32> to vector<20x64xf32>
    %323 = arith.addf %321, %322 : vector<20x64xf32>
    %324 = vector.broadcast %316 : vector<1x64xf32> to vector<20x64xf32>
    %325 = arith.mulf %293, %324 : vector<20x64xf32>
    %326 = vector.broadcast %319 : vector<1x64xf32> to vector<20x64xf32>
    %327 = arith.addf %325, %326 : vector<20x64xf32>
    %cst_237 = arith.constant 0.000000e+00 : f32
    %328 = vector.broadcast %cst_237 : f32 to vector<20x64xf32>
    %329 = arith.cmpf ogt, %323, %328 : vector<20x64xf32>
    %cst_238 = arith.constant 2.000000e-01 : f32
    %330 = vector.broadcast %cst_238 : f32 to vector<20x64xf32>
    %331 = arith.mulf %330, %323 : vector<20x64xf32>
    %332 = arith.select %329, %323, %331 : vector<20x64xi1>, vector<20x64xf32>
    %cst_239 = arith.constant 0.000000e+00 : f32
    %333 = vector.broadcast %cst_239 : f32 to vector<20x64xf32>
    %334 = arith.cmpf ogt, %327, %333 : vector<20x64xf32>
    %cst_240 = arith.constant 2.000000e-01 : f32
    %335 = vector.broadcast %cst_240 : f32 to vector<20x64xf32>
    %336 = arith.mulf %335, %327 : vector<20x64xf32>
    %337 = arith.select %334, %327, %336 : vector<20x64xi1>, vector<20x64xf32>
    %cst_241 = arith.constant 0.000000e+00 : f32
    %338 = vector.broadcast %cst_241 : f32 to vector<44x64xf32>
    %c0_242 = arith.constant 0 : index
    %c0_243 = arith.constant 0 : index
    %339 = vector.load %arg20[%c0_242, %c0_243] : memref<44x64xf32, #tpu.memory_space<vmem>>, vector<44x64xf32>
    tpu.vector_store %arg20[%c0_242, %c0_243], %338 {strides = array<i32>} : memref<44x64xf32, #tpu.memory_space<vmem>>, vector<44x64xf32>,
    %c1_244 = arith.constant 1 : index
    %c0_245 = arith.constant 0 : index
    %340 = vector.load %arg20[%c1_244, %c0_245] : memref<44x64xf32, #tpu.memory_space<vmem>>, vector<20x64xf32>
    tpu.vector_store %arg20[%c1_244, %c0_245], %332 {strides = array<i32>} : memref<44x64xf32, #tpu.memory_space<vmem>>, vector<20x64xf32>,
    %c23 = arith.constant 23 : index
    %c0_246 = arith.constant 0 : index
    %341 = vector.load %arg20[%c23, %c0_246] : memref<44x64xf32, #tpu.memory_space<vmem>>, vector<20x64xf32>
    tpu.vector_store %arg20[%c23, %c0_246], %337 {strides = array<i32>} : memref<44x64xf32, #tpu.memory_space<vmem>>, vector<20x64xf32>,
    %c0_247 = arith.constant 0 : index
    %c0_248 = arith.constant 0 : index
    %342 = tpu.strided_load %arg20[%c0_247, %c0_248] {strides = array<i32: 2, 1>} : memref<44x64xf32, #tpu.memory_space<vmem>>, vector<10x64xf32>
    %343 = arith.truncf %342 : vector<10x64xf32> to vector<10x64xbf16>
    %c0_249 = arith.constant 0 : index
    %c0_250 = arith.constant 0 : index
    %c0_251 = arith.constant 0 : index
    %344 = vector.load %arg6[%c0_249, %c0_250, %c0_251] : memref<4x64x128xbf16, #tpu.memory_space<vmem>>, vector<1x64x128xbf16>
    %345 = vector.shape_cast %344 : vector<1x64x128xbf16> to vector<64x128xbf16>
    %cst_252 = arith.constant dense<0.000000e+00> : vector<10x128xf32>
    %346 = tpu.matmul %343, %345, %cst_252 {dimension_numbers = #tpu.dot_dimension_numbers<[1], [0], [0], [1], [0, 0, 1, 1], [], []>} : vector<10x64xbf16>, vector<64x128xbf16>, vector<10x128xf32> -> vector<10x128xf32>
    %c1_253 = arith.constant 1 : index
    %c0_254 = arith.constant 0 : index
    %347 = tpu.strided_load %arg20[%c1_253, %c0_254] {strides = array<i32: 2, 1>} : memref<44x64xf32, #tpu.memory_space<vmem>>, vector<10x64xf32>
    %348 = arith.truncf %347 : vector<10x64xf32> to vector<10x64xbf16>
    %c1_255 = arith.constant 1 : index
    %c0_256 = arith.constant 0 : index
    %c0_257 = arith.constant 0 : index
    %349 = vector.load %arg6[%c1_255, %c0_256, %c0_257] : memref<4x64x128xbf16, #tpu.memory_space<vmem>>, vector<1x64x128xbf16>
    %350 = vector.shape_cast %349 : vector<1x64x128xbf16> to vector<64x128xbf16>
    %cst_258 = arith.constant dense<0.000000e+00> : vector<10x128xf32>
    %351 = tpu.matmul %348, %350, %cst_258 {dimension_numbers = #tpu.dot_dimension_numbers<[1], [0], [0], [1], [0, 0, 1, 1], [], []>} : vector<10x64xbf16>, vector<64x128xbf16>, vector<10x128xf32> -> vector<10x128xf32>
    %352 = arith.addf %346, %351 : vector<10x128xf32>
    %c2_259 = arith.constant 2 : index
    %c0_260 = arith.constant 0 : index
    %353 = tpu.strided_load %arg20[%c2_259, %c0_260] {strides = array<i32: 2, 1>} : memref<44x64xf32, #tpu.memory_space<vmem>>, vector<10x64xf32>
    %354 = arith.truncf %353 : vector<10x64xf32> to vector<10x64xbf16>
    %c2_261 = arith.constant 2 : index
    %c0_262 = arith.constant 0 : index
    %c0_263 = arith.constant 0 : index
    %355 = vector.load %arg6[%c2_261, %c0_262, %c0_263] : memref<4x64x128xbf16, #tpu.memory_space<vmem>>, vector<1x64x128xbf16>
    %356 = vector.shape_cast %355 : vector<1x64x128xbf16> to vector<64x128xbf16>
    %cst_264 = arith.constant dense<0.000000e+00> : vector<10x128xf32>
    %357 = tpu.matmul %354, %356, %cst_264 {dimension_numbers = #tpu.dot_dimension_numbers<[1], [0], [0], [1], [0, 0, 1, 1], [], []>} : vector<10x64xbf16>, vector<64x128xbf16>, vector<10x128xf32> -> vector<10x128xf32>
    %358 = arith.addf %352, %357 : vector<10x128xf32>
    %c3_265 = arith.constant 3 : index
    %c0_266 = arith.constant 0 : index
    %359 = tpu.strided_load %arg20[%c3_265, %c0_266] {strides = array<i32: 2, 1>} : memref<44x64xf32, #tpu.memory_space<vmem>>, vector<10x64xf32>
    %360 = arith.truncf %359 : vector<10x64xf32> to vector<10x64xbf16>
    %c3_267 = arith.constant 3 : index
    %c0_268 = arith.constant 0 : index
    %c0_269 = arith.constant 0 : index
    %361 = vector.load %arg6[%c3_267, %c0_268, %c0_269] : memref<4x64x128xbf16, #tpu.memory_space<vmem>>, vector<1x64x128xbf16>
    %362 = vector.shape_cast %361 : vector<1x64x128xbf16> to vector<64x128xbf16>
    %cst_270 = arith.constant dense<0.000000e+00> : vector<10x128xf32>
    %363 = tpu.matmul %360, %362, %cst_270 {dimension_numbers = #tpu.dot_dimension_numbers<[1], [0], [0], [1], [0, 0, 1, 1], [], []>} : vector<10x64xbf16>, vector<64x128xbf16>, vector<10x128xf32> -> vector<10x128xf32>
    %364 = arith.addf %358, %363 : vector<10x128xf32>
    %c22 = arith.constant 22 : index
    %c0_271 = arith.constant 0 : index
    %365 = tpu.strided_load %arg20[%c22, %c0_271] {strides = array<i32: 2, 1>} : memref<44x64xf32, #tpu.memory_space<vmem>>, vector<10x64xf32>
    %366 = arith.truncf %365 : vector<10x64xf32> to vector<10x64xbf16>
    %c0_272 = arith.constant 0 : index
    %c0_273 = arith.constant 0 : index
    %c0_274 = arith.constant 0 : index
    %367 = vector.load %arg6[%c0_272, %c0_273, %c0_274] : memref<4x64x128xbf16, #tpu.memory_space<vmem>>, vector<1x64x128xbf16>
    %368 = vector.shape_cast %367 : vector<1x64x128xbf16> to vector<64x128xbf16>
    %cst_275 = arith.constant dense<0.000000e+00> : vector<10x128xf32>
    %369 = tpu.matmul %366, %368, %cst_275 {dimension_numbers = #tpu.dot_dimension_numbers<[1], [0], [0], [1], [0, 0, 1, 1], [], []>} : vector<10x64xbf16>, vector<64x128xbf16>, vector<10x128xf32> -> vector<10x128xf32>
    %c23_276 = arith.constant 23 : index
    %c0_277 = arith.constant 0 : index
    %370 = tpu.strided_load %arg20[%c23_276, %c0_277] {strides = array<i32: 2, 1>} : memref<44x64xf32, #tpu.memory_space<vmem>>, vector<10x64xf32>
    %371 = arith.truncf %370 : vector<10x64xf32> to vector<10x64xbf16>
    %c1_278 = arith.constant 1 : index
    %c0_279 = arith.constant 0 : index
    %c0_280 = arith.constant 0 : index
    %372 = vector.load %arg6[%c1_278, %c0_279, %c0_280] : memref<4x64x128xbf16, #tpu.memory_space<vmem>>, vector<1x64x128xbf16>
    %373 = vector.shape_cast %372 : vector<1x64x128xbf16> to vector<64x128xbf16>
    %cst_281 = arith.constant dense<0.000000e+00> : vector<10x128xf32>
    %374 = tpu.matmul %371, %373, %cst_281 {dimension_numbers = #tpu.dot_dimension_numbers<[1], [0], [0], [1], [0, 0, 1, 1], [], []>} : vector<10x64xbf16>, vector<64x128xbf16>, vector<10x128xf32> -> vector<10x128xf32>
    %375 = arith.addf %369, %374 : vector<10x128xf32>
    %c24 = arith.constant 24 : index
    %c0_282 = arith.constant 0 : index
    %376 = tpu.strided_load %arg20[%c24, %c0_282] {strides = array<i32: 2, 1>} : memref<44x64xf32, #tpu.memory_space<vmem>>, vector<10x64xf32>
    %377 = arith.truncf %376 : vector<10x64xf32> to vector<10x64xbf16>
    %c2_283 = arith.constant 2 : index
    %c0_284 = arith.constant 0 : index
    %c0_285 = arith.constant 0 : index
    %378 = vector.load %arg6[%c2_283, %c0_284, %c0_285] : memref<4x64x128xbf16, #tpu.memory_space<vmem>>, vector<1x64x128xbf16>
    %379 = vector.shape_cast %378 : vector<1x64x128xbf16> to vector<64x128xbf16>
    %cst_286 = arith.constant dense<0.000000e+00> : vector<10x128xf32>
    %380 = tpu.matmul %377, %379, %cst_286 {dimension_numbers = #tpu.dot_dimension_numbers<[1], [0], [0], [1], [0, 0, 1, 1], [], []>} : vector<10x64xbf16>, vector<64x128xbf16>, vector<10x128xf32> -> vector<10x128xf32>
    %381 = arith.addf %375, %380 : vector<10x128xf32>
    %c25 = arith.constant 25 : index
    %c0_287 = arith.constant 0 : index
    %382 = tpu.strided_load %arg20[%c25, %c0_287] {strides = array<i32: 2, 1>} : memref<44x64xf32, #tpu.memory_space<vmem>>, vector<10x64xf32>
    %383 = arith.truncf %382 : vector<10x64xf32> to vector<10x64xbf16>
    %c3_288 = arith.constant 3 : index
    %c0_289 = arith.constant 0 : index
    %c0_290 = arith.constant 0 : index
    %384 = vector.load %arg6[%c3_288, %c0_289, %c0_290] : memref<4x64x128xbf16, #tpu.memory_space<vmem>>, vector<1x64x128xbf16>
    %385 = vector.shape_cast %384 : vector<1x64x128xbf16> to vector<64x128xbf16>
    %cst_291 = arith.constant dense<0.000000e+00> : vector<10x128xf32>
    %386 = tpu.matmul %383, %385, %cst_291 {dimension_numbers = #tpu.dot_dimension_numbers<[1], [0], [0], [1], [0, 0, 1, 1], [], []>} : vector<10x64xbf16>, vector<64x128xbf16>, vector<10x128xf32> -> vector<10x128xf32>
    %387 = arith.addf %381, %386 : vector<10x128xf32>
    %cst_292 = arith.constant dense<0.000000e+00> : vector<128xf32>
    %388 = vector.multi_reduction <add>, %364, %cst_292 [0] : vector<10x128xf32> to vector<128xf32>
    %389 = vector.shape_cast %388 : vector<128xf32> to vector<1x128xf32>
    %390 = arith.mulf %364, %364 : vector<10x128xf32>
    %cst_293 = arith.constant dense<0.000000e+00> : vector<128xf32>
    %391 = vector.multi_reduction <add>, %390, %cst_293 [0] : vector<10x128xf32> to vector<128xf32>
    %392 = vector.shape_cast %391 : vector<128xf32> to vector<1x128xf32>
    %cst_294 = arith.constant dense<0.000000e+00> : vector<128xf32>
    %393 = vector.multi_reduction <add>, %387, %cst_294 [0] : vector<10x128xf32> to vector<128xf32>
    %394 = vector.shape_cast %393 : vector<128xf32> to vector<1x128xf32>
    %395 = arith.addf %389, %394 : vector<1x128xf32>
    %396 = arith.mulf %387, %387 : vector<10x128xf32>
    %cst_295 = arith.constant dense<0.000000e+00> : vector<128xf32>
    %397 = vector.multi_reduction <add>, %396, %cst_295 [0] : vector<10x128xf32> to vector<128xf32>
    %398 = vector.shape_cast %397 : vector<128xf32> to vector<1x128xf32>
    %399 = arith.addf %392, %398 : vector<1x128xf32>
    %cst_296 = arith.constant 5.000000e-02 : f32
    %400 = vector.broadcast %cst_296 : f32 to vector<1x128xf32>
    %401 = arith.mulf %395, %400 : vector<1x128xf32>
    %cst_297 = arith.constant 5.000000e-02 : f32
    %402 = vector.broadcast %cst_297 : f32 to vector<1x128xf32>
    %403 = arith.mulf %399, %402 : vector<1x128xf32>
    %404 = arith.mulf %401, %401 : vector<1x128xf32>
    %405 = arith.subf %403, %404 : vector<1x128xf32>
    %cst_298 = arith.constant 9.99999974E-6 : f32
    %406 = vector.broadcast %cst_298 : f32 to vector<1x128xf32>
    %407 = arith.addf %405, %406 : vector<1x128xf32>
    %408 = math.rsqrt %407 : vector<1x128xf32>
    %c0_299 = arith.constant 0 : index
    %c0_300 = arith.constant 0 : index
    %409 = vector.load %arg11[%c0_299, %c0_300] : memref<1x128xf32, #tpu.memory_space<vmem>>, vector<1x128xf32>
    %410 = arith.mulf %408, %409 : vector<1x128xf32>
    %c0_301 = arith.constant 0 : index
    %c0_302 = arith.constant 0 : index
    %411 = vector.load %arg15[%c0_301, %c0_302] : memref<1x128xf32, #tpu.memory_space<vmem>>, vector<1x128xf32>
    %412 = arith.mulf %401, %410 : vector<1x128xf32>
    %413 = arith.subf %411, %412 : vector<1x128xf32>
    %414 = vector.broadcast %410 : vector<1x128xf32> to vector<10x128xf32>
    %415 = arith.mulf %364, %414 : vector<10x128xf32>
    %416 = vector.broadcast %413 : vector<1x128xf32> to vector<10x128xf32>
    %417 = arith.addf %415, %416 : vector<10x128xf32>
    %418 = vector.broadcast %410 : vector<1x128xf32> to vector<10x128xf32>
    %419 = arith.mulf %387, %418 : vector<10x128xf32>
    %420 = vector.broadcast %413 : vector<1x128xf32> to vector<10x128xf32>
    %421 = arith.addf %419, %420 : vector<10x128xf32>
    %cst_303 = arith.constant 0.000000e+00 : f32
    %422 = vector.broadcast %cst_303 : f32 to vector<10x128xf32>
    %423 = arith.cmpf ogt, %417, %422 : vector<10x128xf32>
    %cst_304 = arith.constant 2.000000e-01 : f32
    %424 = vector.broadcast %cst_304 : f32 to vector<10x128xf32>
    %425 = arith.mulf %424, %417 : vector<10x128xf32>
    %426 = arith.select %423, %417, %425 : vector<10x128xi1>, vector<10x128xf32>
    %cst_305 = arith.constant 0.000000e+00 : f32
    %427 = vector.broadcast %cst_305 : f32 to vector<10x128xf32>
    %428 = arith.cmpf ogt, %421, %427 : vector<10x128xf32>
    %cst_306 = arith.constant 2.000000e-01 : f32
    %429 = vector.broadcast %cst_306 : f32 to vector<10x128xf32>
    %430 = arith.mulf %429, %421 : vector<10x128xf32>
    %431 = arith.select %428, %421, %430 : vector<10x128xi1>, vector<10x128xf32>
    %c0_307 = arith.constant 0 : index
    %c0_308 = arith.constant 0 : index
    %432 = vector.load %arg21[%c0_307, %c0_308] : memref<20x128xf32, #tpu.memory_space<vmem>>, vector<10x128xf32>
    tpu.vector_store %arg21[%c0_307, %c0_308], %426 {strides = array<i32>} : memref<20x128xf32, #tpu.memory_space<vmem>>, vector<10x128xf32>,
    %c10 = arith.constant 10 : index
    %c0_309 = arith.constant 0 : index
    %433 = vector.load %arg21[%c10, %c0_309] : memref<20x128xf32, #tpu.memory_space<vmem>>, vector<10x128xf32>
    tpu.vector_store %arg21[%c10, %c0_309], %431 {strides = array<i32>} : memref<20x128xf32, #tpu.memory_space<vmem>>, vector<10x128xf32>,
    %c0_310 = arith.constant 0 : index
    %c0_311 = arith.constant 0 : index
    %434 = vector.load %arg21[%c0_310, %c0_311] : memref<20x128xf32, #tpu.memory_space<vmem>>, vector<1x128xf32>
    %435 = arith.truncf %434 : vector<1x128xf32> to vector<1x128xbf16>
    %c0_312 = arith.constant 0 : index
    %c0_313 = arith.constant 0 : index
    %c0_314 = arith.constant 0 : index
    %436 = vector.load %arg7[%c0_312, %c0_313, %c0_314] : memref<10x128x16xbf16, #tpu.memory_space<vmem>>, vector<1x128x16xbf16>
    %437 = vector.shape_cast %436 : vector<1x128x16xbf16> to vector<128x16xbf16>
    %cst_315 = arith.constant dense<0.000000e+00> : vector<1x16xf32>
    %438 = tpu.matmul %435, %437, %cst_315 {dimension_numbers = #tpu.dot_dimension_numbers<[1], [0], [0], [1], [0, 0, 1, 1], [], []>} : vector<1x128xbf16>, vector<128x16xbf16>, vector<1x16xf32> -> vector<1x16xf32>
    %c1_316 = arith.constant 1 : index
    %c0_317 = arith.constant 0 : index
    %439 = vector.load %arg21[%c1_316, %c0_317] : memref<20x128xf32, #tpu.memory_space<vmem>>, vector<1x128xf32>
    %440 = arith.truncf %439 : vector<1x128xf32> to vector<1x128xbf16>
    %c1_318 = arith.constant 1 : index
    %c0_319 = arith.constant 0 : index
    %c0_320 = arith.constant 0 : index
    %441 = vector.load %arg7[%c1_318, %c0_319, %c0_320] : memref<10x128x16xbf16, #tpu.memory_space<vmem>>, vector<1x128x16xbf16>
    %442 = vector.shape_cast %441 : vector<1x128x16xbf16> to vector<128x16xbf16>
    %cst_321 = arith.constant dense<0.000000e+00> : vector<1x16xf32>
    %443 = tpu.matmul %440, %442, %cst_321 {dimension_numbers = #tpu.dot_dimension_numbers<[1], [0], [0], [1], [0, 0, 1, 1], [], []>} : vector<1x128xbf16>, vector<128x16xbf16>, vector<1x16xf32> -> vector<1x16xf32>
    %444 = arith.addf %438, %443 : vector<1x16xf32>
    %c2_322 = arith.constant 2 : index
    %c0_323 = arith.constant 0 : index
    %445 = vector.load %arg21[%c2_322, %c0_323] : memref<20x128xf32, #tpu.memory_space<vmem>>, vector<1x128xf32>
    %446 = arith.truncf %445 : vector<1x128xf32> to vector<1x128xbf16>
    %c2_324 = arith.constant 2 : index
    %c0_325 = arith.constant 0 : index
    %c0_326 = arith.constant 0 : index
    %447 = vector.load %arg7[%c2_324, %c0_325, %c0_326] : memref<10x128x16xbf16, #tpu.memory_space<vmem>>, vector<1x128x16xbf16>
    %448 = vector.shape_cast %447 : vector<1x128x16xbf16> to vector<128x16xbf16>
    %cst_327 = arith.constant dense<0.000000e+00> : vector<1x16xf32>
    %449 = tpu.matmul %446, %448, %cst_327 {dimension_numbers = #tpu.dot_dimension_numbers<[1], [0], [0], [1], [0, 0, 1, 1], [], []>} : vector<1x128xbf16>, vector<128x16xbf16>, vector<1x16xf32> -> vector<1x16xf32>
    %450 = arith.addf %444, %449 : vector<1x16xf32>
    %c3_328 = arith.constant 3 : index
    %c0_329 = arith.constant 0 : index
    %451 = vector.load %arg21[%c3_328, %c0_329] : memref<20x128xf32, #tpu.memory_space<vmem>>, vector<1x128xf32>
    %452 = arith.truncf %451 : vector<1x128xf32> to vector<1x128xbf16>
    %c3_330 = arith.constant 3 : index
    %c0_331 = arith.constant 0 : index
    %c0_332 = arith.constant 0 : index
    %453 = vector.load %arg7[%c3_330, %c0_331, %c0_332] : memref<10x128x16xbf16, #tpu.memory_space<vmem>>, vector<1x128x16xbf16>
    %454 = vector.shape_cast %453 : vector<1x128x16xbf16> to vector<128x16xbf16>
    %cst_333 = arith.constant dense<0.000000e+00> : vector<1x16xf32>
    %455 = tpu.matmul %452, %454, %cst_333 {dimension_numbers = #tpu.dot_dimension_numbers<[1], [0], [0], [1], [0, 0, 1, 1], [], []>} : vector<1x128xbf16>, vector<128x16xbf16>, vector<1x16xf32> -> vector<1x16xf32>
    %456 = arith.addf %450, %455 : vector<1x16xf32>
    %c4 = arith.constant 4 : index
    %c0_334 = arith.constant 0 : index
    %457 = vector.load %arg21[%c4, %c0_334] : memref<20x128xf32, #tpu.memory_space<vmem>>, vector<1x128xf32>
    %458 = arith.truncf %457 : vector<1x128xf32> to vector<1x128xbf16>
    %c4_335 = arith.constant 4 : index
    %c0_336 = arith.constant 0 : index
    %c0_337 = arith.constant 0 : index
    %459 = vector.load %arg7[%c4_335, %c0_336, %c0_337] : memref<10x128x16xbf16, #tpu.memory_space<vmem>>, vector<1x128x16xbf16>
    %460 = vector.shape_cast %459 : vector<1x128x16xbf16> to vector<128x16xbf16>
    %cst_338 = arith.constant dense<0.000000e+00> : vector<1x16xf32>
    %461 = tpu.matmul %458, %460, %cst_338 {dimension_numbers = #tpu.dot_dimension_numbers<[1], [0], [0], [1], [0, 0, 1, 1], [], []>} : vector<1x128xbf16>, vector<128x16xbf16>, vector<1x16xf32> -> vector<1x16xf32>
    %462 = arith.addf %456, %461 : vector<1x16xf32>
    %c5 = arith.constant 5 : index
    %c0_339 = arith.constant 0 : index
    %463 = vector.load %arg21[%c5, %c0_339] : memref<20x128xf32, #tpu.memory_space<vmem>>, vector<1x128xf32>
    %464 = arith.truncf %463 : vector<1x128xf32> to vector<1x128xbf16>
    %c5_340 = arith.constant 5 : index
    %c0_341 = arith.constant 0 : index
    %c0_342 = arith.constant 0 : index
    %465 = vector.load %arg7[%c5_340, %c0_341, %c0_342] : memref<10x128x16xbf16, #tpu.memory_space<vmem>>, vector<1x128x16xbf16>
    %466 = vector.shape_cast %465 : vector<1x128x16xbf16> to vector<128x16xbf16>
    %cst_343 = arith.constant dense<0.000000e+00> : vector<1x16xf32>
    %467 = tpu.matmul %464, %466, %cst_343 {dimension_numbers = #tpu.dot_dimension_numbers<[1], [0], [0], [1], [0, 0, 1, 1], [], []>} : vector<1x128xbf16>, vector<128x16xbf16>, vector<1x16xf32> -> vector<1x16xf32>
    %468 = arith.addf %462, %467 : vector<1x16xf32>
    %c6 = arith.constant 6 : index
    %c0_344 = arith.constant 0 : index
    %469 = vector.load %arg21[%c6, %c0_344] : memref<20x128xf32, #tpu.memory_space<vmem>>, vector<1x128xf32>
    %470 = arith.truncf %469 : vector<1x128xf32> to vector<1x128xbf16>
    %c6_345 = arith.constant 6 : index
    %c0_346 = arith.constant 0 : index
    %c0_347 = arith.constant 0 : index
    %471 = vector.load %arg7[%c6_345, %c0_346, %c0_347] : memref<10x128x16xbf16, #tpu.memory_space<vmem>>, vector<1x128x16xbf16>
    %472 = vector.shape_cast %471 : vector<1x128x16xbf16> to vector<128x16xbf16>
    %cst_348 = arith.constant dense<0.000000e+00> : vector<1x16xf32>
    %473 = tpu.matmul %470, %472, %cst_348 {dimension_numbers = #tpu.dot_dimension_numbers<[1], [0], [0], [1], [0, 0, 1, 1], [], []>} : vector<1x128xbf16>, vector<128x16xbf16>, vector<1x16xf32> -> vector<1x16xf32>
    %474 = arith.addf %468, %473 : vector<1x16xf32>
    %c7 = arith.constant 7 : index
    %c0_349 = arith.constant 0 : index
    %475 = vector.load %arg21[%c7, %c0_349] : memref<20x128xf32, #tpu.memory_space<vmem>>, vector<1x128xf32>
    %476 = arith.truncf %475 : vector<1x128xf32> to vector<1x128xbf16>
    %c7_350 = arith.constant 7 : index
    %c0_351 = arith.constant 0 : index
    %c0_352 = arith.constant 0 : index
    %477 = vector.load %arg7[%c7_350, %c0_351, %c0_352] : memref<10x128x16xbf16, #tpu.memory_space<vmem>>, vector<1x128x16xbf16>
    %478 = vector.shape_cast %477 : vector<1x128x16xbf16> to vector<128x16xbf16>
    %cst_353 = arith.constant dense<0.000000e+00> : vector<1x16xf32>
    %479 = tpu.matmul %476, %478, %cst_353 {dimension_numbers = #tpu.dot_dimension_numbers<[1], [0], [0], [1], [0, 0, 1, 1], [], []>} : vector<1x128xbf16>, vector<128x16xbf16>, vector<1x16xf32> -> vector<1x16xf32>
    %480 = arith.addf %474, %479 : vector<1x16xf32>
    %c8 = arith.constant 8 : index
    %c0_354 = arith.constant 0 : index
    %481 = vector.load %arg21[%c8, %c0_354] : memref<20x128xf32, #tpu.memory_space<vmem>>, vector<1x128xf32>
    %482 = arith.truncf %481 : vector<1x128xf32> to vector<1x128xbf16>
    %c8_355 = arith.constant 8 : index
    %c0_356 = arith.constant 0 : index
    %c0_357 = arith.constant 0 : index
    %483 = vector.load %arg7[%c8_355, %c0_356, %c0_357] : memref<10x128x16xbf16, #tpu.memory_space<vmem>>, vector<1x128x16xbf16>
    %484 = vector.shape_cast %483 : vector<1x128x16xbf16> to vector<128x16xbf16>
    %cst_358 = arith.constant dense<0.000000e+00> : vector<1x16xf32>
    %485 = tpu.matmul %482, %484, %cst_358 {dimension_numbers = #tpu.dot_dimension_numbers<[1], [0], [0], [1], [0, 0, 1, 1], [], []>} : vector<1x128xbf16>, vector<128x16xbf16>, vector<1x16xf32> -> vector<1x16xf32>
    %486 = arith.addf %480, %485 : vector<1x16xf32>
    %c9 = arith.constant 9 : index
    %c0_359 = arith.constant 0 : index
    %487 = vector.load %arg21[%c9, %c0_359] : memref<20x128xf32, #tpu.memory_space<vmem>>, vector<1x128xf32>
    %488 = arith.truncf %487 : vector<1x128xf32> to vector<1x128xbf16>
    %c9_360 = arith.constant 9 : index
    %c0_361 = arith.constant 0 : index
    %c0_362 = arith.constant 0 : index
    %489 = vector.load %arg7[%c9_360, %c0_361, %c0_362] : memref<10x128x16xbf16, #tpu.memory_space<vmem>>, vector<1x128x16xbf16>
    %490 = vector.shape_cast %489 : vector<1x128x16xbf16> to vector<128x16xbf16>
    %cst_363 = arith.constant dense<0.000000e+00> : vector<1x16xf32>
    %491 = tpu.matmul %488, %490, %cst_363 {dimension_numbers = #tpu.dot_dimension_numbers<[1], [0], [0], [1], [0, 0, 1, 1], [], []>} : vector<1x128xbf16>, vector<128x16xbf16>, vector<1x16xf32> -> vector<1x16xf32>
    %492 = arith.addf %486, %491 : vector<1x16xf32>
    %c10_364 = arith.constant 10 : index
    %c0_365 = arith.constant 0 : index
    %493 = vector.load %arg21[%c10_364, %c0_365] : memref<20x128xf32, #tpu.memory_space<vmem>>, vector<1x128xf32>
    %494 = arith.truncf %493 : vector<1x128xf32> to vector<1x128xbf16>
    %c0_366 = arith.constant 0 : index
    %c0_367 = arith.constant 0 : index
    %c0_368 = arith.constant 0 : index
    %495 = vector.load %arg7[%c0_366, %c0_367, %c0_368] : memref<10x128x16xbf16, #tpu.memory_space<vmem>>, vector<1x128x16xbf16>
    %496 = vector.shape_cast %495 : vector<1x128x16xbf16> to vector<128x16xbf16>
    %cst_369 = arith.constant dense<0.000000e+00> : vector<1x16xf32>
    %497 = tpu.matmul %494, %496, %cst_369 {dimension_numbers = #tpu.dot_dimension_numbers<[1], [0], [0], [1], [0, 0, 1, 1], [], []>} : vector<1x128xbf16>, vector<128x16xbf16>, vector<1x16xf32> -> vector<1x16xf32>
    %c11 = arith.constant 11 : index
    %c0_370 = arith.constant 0 : index
    %498 = vector.load %arg21[%c11, %c0_370] : memref<20x128xf32, #tpu.memory_space<vmem>>, vector<1x128xf32>
    %499 = arith.truncf %498 : vector<1x128xf32> to vector<1x128xbf16>
    %c1_371 = arith.constant 1 : index
    %c0_372 = arith.constant 0 : index
    %c0_373 = arith.constant 0 : index
    %500 = vector.load %arg7[%c1_371, %c0_372, %c0_373] : memref<10x128x16xbf16, #tpu.memory_space<vmem>>, vector<1x128x16xbf16>
    %501 = vector.shape_cast %500 : vector<1x128x16xbf16> to vector<128x16xbf16>
    %cst_374 = arith.constant dense<0.000000e+00> : vector<1x16xf32>
    %502 = tpu.matmul %499, %501, %cst_374 {dimension_numbers = #tpu.dot_dimension_numbers<[1], [0], [0], [1], [0, 0, 1, 1], [], []>} : vector<1x128xbf16>, vector<128x16xbf16>, vector<1x16xf32> -> vector<1x16xf32>
    %503 = arith.addf %497, %502 : vector<1x16xf32>
    %c12 = arith.constant 12 : index
    %c0_375 = arith.constant 0 : index
    %504 = vector.load %arg21[%c12, %c0_375] : memref<20x128xf32, #tpu.memory_space<vmem>>, vector<1x128xf32>
    %505 = arith.truncf %504 : vector<1x128xf32> to vector<1x128xbf16>
    %c2_376 = arith.constant 2 : index
    %c0_377 = arith.constant 0 : index
    %c0_378 = arith.constant 0 : index
    %506 = vector.load %arg7[%c2_376, %c0_377, %c0_378] : memref<10x128x16xbf16, #tpu.memory_space<vmem>>, vector<1x128x16xbf16>
    %507 = vector.shape_cast %506 : vector<1x128x16xbf16> to vector<128x16xbf16>
    %cst_379 = arith.constant dense<0.000000e+00> : vector<1x16xf32>
    %508 = tpu.matmul %505, %507, %cst_379 {dimension_numbers = #tpu.dot_dimension_numbers<[1], [0], [0], [1], [0, 0, 1, 1], [], []>} : vector<1x128xbf16>, vector<128x16xbf16>, vector<1x16xf32> -> vector<1x16xf32>
    %509 = arith.addf %503, %508 : vector<1x16xf32>
    %c13 = arith.constant 13 : index
    %c0_380 = arith.constant 0 : index
    %510 = vector.load %arg21[%c13, %c0_380] : memref<20x128xf32, #tpu.memory_space<vmem>>, vector<1x128xf32>
    %511 = arith.truncf %510 : vector<1x128xf32> to vector<1x128xbf16>
    %c3_381 = arith.constant 3 : index
    %c0_382 = arith.constant 0 : index
    %c0_383 = arith.constant 0 : index
    %512 = vector.load %arg7[%c3_381, %c0_382, %c0_383] : memref<10x128x16xbf16, #tpu.memory_space<vmem>>, vector<1x128x16xbf16>
    %513 = vector.shape_cast %512 : vector<1x128x16xbf16> to vector<128x16xbf16>
    %cst_384 = arith.constant dense<0.000000e+00> : vector<1x16xf32>
    %514 = tpu.matmul %511, %513, %cst_384 {dimension_numbers = #tpu.dot_dimension_numbers<[1], [0], [0], [1], [0, 0, 1, 1], [], []>} : vector<1x128xbf16>, vector<128x16xbf16>, vector<1x16xf32> -> vector<1x16xf32>
    %515 = arith.addf %509, %514 : vector<1x16xf32>
    %c14 = arith.constant 14 : index
    %c0_385 = arith.constant 0 : index
    %516 = vector.load %arg21[%c14, %c0_385] : memref<20x128xf32, #tpu.memory_space<vmem>>, vector<1x128xf32>
    %517 = arith.truncf %516 : vector<1x128xf32> to vector<1x128xbf16>
    %c4_386 = arith.constant 4 : index
    %c0_387 = arith.constant 0 : index
    %c0_388 = arith.constant 0 : index
    %518 = vector.load %arg7[%c4_386, %c0_387, %c0_388] : memref<10x128x16xbf16, #tpu.memory_space<vmem>>, vector<1x128x16xbf16>
    %519 = vector.shape_cast %518 : vector<1x128x16xbf16> to vector<128x16xbf16>
    %cst_389 = arith.constant dense<0.000000e+00> : vector<1x16xf32>
    %520 = tpu.matmul %517, %519, %cst_389 {dimension_numbers = #tpu.dot_dimension_numbers<[1], [0], [0], [1], [0, 0, 1, 1], [], []>} : vector<1x128xbf16>, vector<128x16xbf16>, vector<1x16xf32> -> vector<1x16xf32>
    %521 = arith.addf %515, %520 : vector<1x16xf32>
    %c15 = arith.constant 15 : index
    %c0_390 = arith.constant 0 : index
    %522 = vector.load %arg21[%c15, %c0_390] : memref<20x128xf32, #tpu.memory_space<vmem>>, vector<1x128xf32>
    %523 = arith.truncf %522 : vector<1x128xf32> to vector<1x128xbf16>
    %c5_391 = arith.constant 5 : index
    %c0_392 = arith.constant 0 : index
    %c0_393 = arith.constant 0 : index
    %524 = vector.load %arg7[%c5_391, %c0_392, %c0_393] : memref<10x128x16xbf16, #tpu.memory_space<vmem>>, vector<1x128x16xbf16>
    %525 = vector.shape_cast %524 : vector<1x128x16xbf16> to vector<128x16xbf16>
    %cst_394 = arith.constant dense<0.000000e+00> : vector<1x16xf32>
    %526 = tpu.matmul %523, %525, %cst_394 {dimension_numbers = #tpu.dot_dimension_numbers<[1], [0], [0], [1], [0, 0, 1, 1], [], []>} : vector<1x128xbf16>, vector<128x16xbf16>, vector<1x16xf32> -> vector<1x16xf32>
    %527 = arith.addf %521, %526 : vector<1x16xf32>
    %c16 = arith.constant 16 : index
    %c0_395 = arith.constant 0 : index
    %528 = vector.load %arg21[%c16, %c0_395] : memref<20x128xf32, #tpu.memory_space<vmem>>, vector<1x128xf32>
    %529 = arith.truncf %528 : vector<1x128xf32> to vector<1x128xbf16>
    %c6_396 = arith.constant 6 : index
    %c0_397 = arith.constant 0 : index
    %c0_398 = arith.constant 0 : index
    %530 = vector.load %arg7[%c6_396, %c0_397, %c0_398] : memref<10x128x16xbf16, #tpu.memory_space<vmem>>, vector<1x128x16xbf16>
    %531 = vector.shape_cast %530 : vector<1x128x16xbf16> to vector<128x16xbf16>
    %cst_399 = arith.constant dense<0.000000e+00> : vector<1x16xf32>
    %532 = tpu.matmul %529, %531, %cst_399 {dimension_numbers = #tpu.dot_dimension_numbers<[1], [0], [0], [1], [0, 0, 1, 1], [], []>} : vector<1x128xbf16>, vector<128x16xbf16>, vector<1x16xf32> -> vector<1x16xf32>
    %533 = arith.addf %527, %532 : vector<1x16xf32>
    %c17 = arith.constant 17 : index
    %c0_400 = arith.constant 0 : index
    %534 = vector.load %arg21[%c17, %c0_400] : memref<20x128xf32, #tpu.memory_space<vmem>>, vector<1x128xf32>
    %535 = arith.truncf %534 : vector<1x128xf32> to vector<1x128xbf16>
    %c7_401 = arith.constant 7 : index
    %c0_402 = arith.constant 0 : index
    %c0_403 = arith.constant 0 : index
    %536 = vector.load %arg7[%c7_401, %c0_402, %c0_403] : memref<10x128x16xbf16, #tpu.memory_space<vmem>>, vector<1x128x16xbf16>
    %537 = vector.shape_cast %536 : vector<1x128x16xbf16> to vector<128x16xbf16>
    %cst_404 = arith.constant dense<0.000000e+00> : vector<1x16xf32>
    %538 = tpu.matmul %535, %537, %cst_404 {dimension_numbers = #tpu.dot_dimension_numbers<[1], [0], [0], [1], [0, 0, 1, 1], [], []>} : vector<1x128xbf16>, vector<128x16xbf16>, vector<1x16xf32> -> vector<1x16xf32>
    %539 = arith.addf %533, %538 : vector<1x16xf32>
    %c18 = arith.constant 18 : index
    %c0_405 = arith.constant 0 : index
    %540 = vector.load %arg21[%c18, %c0_405] : memref<20x128xf32, #tpu.memory_space<vmem>>, vector<1x128xf32>
    %541 = arith.truncf %540 : vector<1x128xf32> to vector<1x128xbf16>
    %c8_406 = arith.constant 8 : index
    %c0_407 = arith.constant 0 : index
    %c0_408 = arith.constant 0 : index
    %542 = vector.load %arg7[%c8_406, %c0_407, %c0_408] : memref<10x128x16xbf16, #tpu.memory_space<vmem>>, vector<1x128x16xbf16>
    %543 = vector.shape_cast %542 : vector<1x128x16xbf16> to vector<128x16xbf16>
    %cst_409 = arith.constant dense<0.000000e+00> : vector<1x16xf32>
    %544 = tpu.matmul %541, %543, %cst_409 {dimension_numbers = #tpu.dot_dimension_numbers<[1], [0], [0], [1], [0, 0, 1, 1], [], []>} : vector<1x128xbf16>, vector<128x16xbf16>, vector<1x16xf32> -> vector<1x16xf32>
    %545 = arith.addf %539, %544 : vector<1x16xf32>
    %c19 = arith.constant 19 : index
    %c0_410 = arith.constant 0 : index
    %546 = vector.load %arg21[%c19, %c0_410] : memref<20x128xf32, #tpu.memory_space<vmem>>, vector<1x128xf32>
    %547 = arith.truncf %546 : vector<1x128xf32> to vector<1x128xbf16>
    %c9_411 = arith.constant 9 : index
    %c0_412 = arith.constant 0 : index
    %c0_413 = arith.constant 0 : index
    %548 = vector.load %arg7[%c9_411, %c0_412, %c0_413] : memref<10x128x16xbf16, #tpu.memory_space<vmem>>, vector<1x128x16xbf16>
    %549 = vector.shape_cast %548 : vector<1x128x16xbf16> to vector<128x16xbf16>
    %cst_414 = arith.constant dense<0.000000e+00> : vector<1x16xf32>
    %550 = tpu.matmul %547, %549, %cst_414 {dimension_numbers = #tpu.dot_dimension_numbers<[1], [0], [0], [1], [0, 0, 1, 1], [], []>} : vector<1x128xbf16>, vector<128x16xbf16>, vector<1x16xf32> -> vector<1x16xf32>
    %551 = arith.addf %545, %550 : vector<1x16xf32>
    %c0_415 = arith.constant 0 : index
    %c0_416 = arith.constant 0 : index
    %552 = vector.load %arg16[%c0_415, %c0_416] : memref<2x16xf32, #tpu.memory_space<vmem>>, vector<1x16xf32>
    tpu.vector_store %arg16[%c0_415, %c0_416], %492 {strides = array<i32>} : memref<2x16xf32, #tpu.memory_space<vmem>>, vector<1x16xf32>,
    %c1_417 = arith.constant 1 : index
    %c0_418 = arith.constant 0 : index
    %553 = vector.load %arg16[%c1_417, %c0_418] : memref<2x16xf32, #tpu.memory_space<vmem>>, vector<1x16xf32>
    tpu.vector_store %arg16[%c1_417, %c0_418], %551 {strides = array<i32>} : memref<2x16xf32, #tpu.memory_space<vmem>>, vector<1x16xf32>,
    return
  }
  func.func @transform_0(%arg0: i32) -> (i32, i32) {
    %c0_i32 = arith.constant 0 : i32
    %c0_i32_0 = arith.constant 0 : i32
    %c0_i32_1 = arith.constant 0 : i32
    return %c0_i32, %c0_i32_0 : i32, i32
  }
  func.func @transform_1(%arg0: i32) -> (i32, i32, i32) {
    %c0_i32 = arith.constant 0 : i32
    %c0_i32_0 = arith.constant 0 : i32
    %c0_i32_1 = arith.constant 0 : i32
    %c0_i32_2 = arith.constant 0 : i32
    return %c0_i32, %c0_i32_0, %c0_i32_1 : i32, i32, i32
  }
  func.func @transform_2(%arg0: i32) -> (i32, i32, i32) {
    %c0_i32 = arith.constant 0 : i32
    %c0_i32_0 = arith.constant 0 : i32
    %c0_i32_1 = arith.constant 0 : i32
    %c0_i32_2 = arith.constant 0 : i32
    return %c0_i32, %c0_i32_0, %c0_i32_1 : i32, i32, i32
  }
  func.func @transform_3(%arg0: i32) -> (i32, i32, i32) {
    %c0_i32 = arith.constant 0 : i32
    %c0_i32_0 = arith.constant 0 : i32
    %c0_i32_1 = arith.constant 0 : i32
    %c0_i32_2 = arith.constant 0 : i32
    return %c0_i32, %c0_i32_0, %c0_i32_1 : i32, i32, i32
  }
  func.func @transform_4(%arg0: i32) -> (i32, i32, i32) {
    %c0_i32 = arith.constant 0 : i32
    %c0_i32_0 = arith.constant 0 : i32
    %c0_i32_1 = arith.constant 0 : i32
    %c0_i32_2 = arith.constant 0 : i32
    return %c0_i32, %c0_i32_0, %c0_i32_1 : i32, i32, i32
  }
  func.func @transform_5(%arg0: i32) -> (i32, i32, i32) {
    %c0_i32 = arith.constant 0 : i32
    %c0_i32_0 = arith.constant 0 : i32
    %c0_i32_1 = arith.constant 0 : i32
    %c0_i32_2 = arith.constant 0 : i32
    return %c0_i32, %c0_i32_0, %c0_i32_1 : i32, i32, i32
  }
  func.func @transform_6(%arg0: i32) -> (i32, i32, i32) {
    %c0_i32 = arith.constant 0 : i32
    %c0_i32_0 = arith.constant 0 : i32
    %c0_i32_1 = arith.constant 0 : i32
    %c0_i32_2 = arith.constant 0 : i32
    return %c0_i32, %c0_i32_0, %c0_i32_1 : i32, i32, i32
  }
  func.func @transform_7(%arg0: i32) -> (i32, i32) {
    %c0_i32 = arith.constant 0 : i32
    %c0_i32_0 = arith.constant 0 : i32
    %c0_i32_1 = arith.constant 0 : i32
    return %c0_i32, %c0_i32_0 : i32, i32
  }
  func.func @transform_8(%arg0: i32) -> (i32, i32) {
    %c0_i32 = arith.constant 0 : i32
    %c0_i32_0 = arith.constant 0 : i32
    %c0_i32_1 = arith.constant 0 : i32
    return %c0_i32, %c0_i32_0 : i32, i32
  }
  func.func @transform_9(%arg0: i32) -> (i32, i32) {
    %c0_i32 = arith.constant 0 : i32
    %c0_i32_0 = arith.constant 0 : i32
    %c0_i32_1 = arith.constant 0 : i32
    return %c0_i32, %c0_i32_0 : i32, i32
  }
  func.func @transform_10(%arg0: i32) -> (i32, i32) {
    %c0_i32 = arith.constant 0 : i32
    %c0_i32_0 = arith.constant 0 : i32
    %c0_i32_1 = arith.constant 0 : i32
    return %c0_i32, %c0_i32_0 : i32, i32
  }
  func.func @transform_11(%arg0: i32) -> (i32, i32) {
    %c0_i32 = arith.constant 0 : i32
    %c0_i32_0 = arith.constant 0 : i32
    %c0_i32_1 = arith.constant 0 : i32
    return %c0_i32, %c0_i32_0 : i32, i32
  }
  func.func @transform_12(%arg0: i32) -> (i32, i32) {
    %c0_i32 = arith.constant 0 : i32
    %c0_i32_0 = arith.constant 0 : i32
    %c0_i32_1 = arith.constant 0 : i32
    return %c0_i32, %c0_i32_0 : i32, i32
  }
  func.func @transform_13(%arg0: i32) -> (i32, i32) {
    %c0_i32 = arith.constant 0 : i32
    %c0_i32_0 = arith.constant 0 : i32
    %c0_i32_1 = arith.constant 0 : i32
    return %c0_i32, %c0_i32_0 : i32, i32
  }
  func.func @transform_14(%arg0: i32) -> (i32, i32) {
    %c0_i32 = arith.constant 0 : i32
    %c0_i32_0 = arith.constant 0 : i32
    %c0_i32_1 = arith.constant 0 : i32
    return %c0_i32, %c0_i32_0 : i32, i32
  }
  func.func @transform_15(%arg0: i32) -> (i32, i32) {
    %c0_i32 = arith.constant 0 : i32
    %c0_i32_0 = arith.constant 0 : i32
    %c0_i32_1 = arith.constant 0 : i32
    return %c0_i32, %c0_i32_0 : i32, i32
  }
}

</mosaic_0001>

<bundles_post_ra>
// kernel: encoder_forward.1
= control target key start
LH: loop header
LB: loop body
LE: loop exit
PB: predicated region body
PF: predicated region fallthrough
CT: control target
= control target key end

     0   :  { %vm185_vm0 = vcmask 1041408   ;;  %vm154_vm1 = vcmask 31744   ;;  %vm1966_vm2 = vcmask 1043456   ;;  %s11571_s0 = inlined_call_operand.vmem [shape: f32[644,4], index: 0, kind: input, shape index: {}]   ;;  %s11572_s1 = inlined_call_operand.vmem [shape: bf16[4,4,8], index: 1, kind: input, shape index: {}]   ;;  %s11573_s2 = inlined_call_operand.vmem [shape: bf16[4,8,16], index: 2, kind: input, shape index: {}]   ;;  %s11574_s3 = inlined_call_operand.vmem [shape: bf16[4,16,32], index: 3, kind: input, shape index: {}]   ;;  %s11575_s4 = inlined_call_operand.vmem [shape: bf16[4,32,64], index: 4, kind: input, shape index: {}]   ;;  %s11576_s5 = inlined_call_operand.vmem [shape: bf16[4,64,128], index: 5, kind: input, shape index: {}]   ;;  %s11577_s6 = inlined_call_operand.vmem [shape: bf16[10,128,16], index: 6, kind: input, shape index: {}]   ;;  %s11578_s7 = inlined_call_operand.vmem [shape: f32[1,16], index: 7, kind: input, shape index: {}]   ;;  %s11579_s8 = inlined_call_operand.vmem [shape: f32[1,32], index: 8, kind: input, shape index: {}]   ;;  %s11580_s9 = inlined_call_operand.vmem [shape: f32[1,64], index: 9, kind: input, shape index: {}]   ;;  %s11581_s10 = inlined_call_operand.vmem [shape: f32[1,128], index: 10, kind: input, shape index: {}]   ;;  %s11582_s11 = inlined_call_operand.vmem [shape: f32[1,16], index: 11, kind: input, shape index: {}]   ;;  %s11583_s12 = inlined_call_operand.vmem [shape: f32[1,32], index: 12, kind: input, shape index: {}]   ;;  %s11584_s13 = inlined_call_operand.vmem [shape: f32[1,64], index: 13, kind: input, shape index: {}]   ;;  %s11585_s14 = inlined_call_operand.vmem [shape: f32[1,128], index: 14, kind: input, shape index: {}]   ;;  %s11586_s15 = inlined_call_operand.hbm [shape: f32[2,16], index: 15, kind: output, shape index: {}]  }
   0x1   :  { %v6857_v0 = vld [vmem:[%s11572_s1 + $0x2] sm:$0x3]  ;;  %v6838_v3 = vld [vmem:[%s11571_s0 + $0x11] ss:$2 sm:$0xff]  ;;  %v101_v11 = vld [vmem:[%s11572_s1] sm:$0x3] }
   0x2   :  { %v6837_v1 = vld [vmem:[%s11571_s0 + $0x1] ss:$2 sm:$0xff]  ;;  %9321 = vmatprep.subr.msk.bf16.mxu0 %vm185_vm0, %v6857_v0  ;;  %9325 = vmatprep.subr.msk.bf16.mxu1 %vm185_vm0, %v6857_v0  ;;  %v187_v2 = vsel %vm185_vm0, %v6857_v0, 0  ;;  %v6840_v8 = vld [vmem:[%s11571_s0 + $0x31] ss:$2 sm:$0xff]  ;;  %v333_v15 = vsel %vm185_vm0, %v101_v11, 0 }
   0x3   :  { %v6960_v4 = vld [vmem:[%s11571_s0 + $0x143] ss:$2 sm:$0xff]  ;;  %7866 = vmatpush3.bf16.msra.mxu0 %v187_v2  ;;  %7954 = vmatpush3.bf16.msra.mxu1 %v187_v2  ;;  %v142_v5 = vpack.c.bf16 %v6838_v3, %v6837_v1  ;;  %v6961_v6 = vld [vmem:[%s11571_s0 + $0x153] ss:$2 sm:$0xff]  ;;  %v52_v63 = vld [vmem:[%s11571_s0] ss:$2 sm:$0xff] }
   0x4   :  { %v6839_v7 = vld [vmem:[%s11571_s0 + $0x21] ss:$2 sm:$0xff]  ;;  %v974_v9 = vpack.c.bf16 %v6961_v6, %v6960_v4  ;;  %9322 = vmatprep.subr.msk.bf16.mxu0 %vm185_vm0, %v101_v11  ;;  %v6842_v17 = vld [vmem:[%s11571_s0 + $0x51] ss:$2 sm:$0xff]  ;;  %9326 = vmatprep.subr.msk.bf16.mxu1 %vm185_vm0, %v101_v11  ;;  %v6818_v0 = vld [vmem:[%s11571_s0 + $0x10] ss:$2 sm:$0xff] }
   0x5   :  { %v143_v10 = vpack.c.bf16 %v6840_v8, %v6839_v7  ;;  %v6962_v12 = vld [vmem:[%s11571_s0 + $0x163] ss:$2 sm:$0xff]  ;;  %v6963_v13 = vld [vmem:[%s11571_s0 + $0x173] ss:$2 sm:$0xff]  ;;  %7867 = vmatprep.mubr.msk.bf16.mxu0 %vm154_vm1, %v142_v5  ;;  %v6940_v1 = vld [vmem:[%s11571_s0 + $0x142] ss:$2 sm:$0xff]  ;;  %v91_v5 = vpack.c.bf16 %v6818_v0, %v52_v63 }
   0x6   :  { %v975_v14 = vpack.c.bf16 %v6963_v13, %v6962_v12  ;;  %v6841_v16 = vld [vmem:[%s11571_s0 + $0x41] ss:$2 sm:$0xff]  ;;  %7955 = vmatprep.mubr.msk.bf16.mxu1 %vm154_vm1, %v974_v9  ;;  %v6844_v23 = vld [vmem:[%s11571_s0 + $0x71] ss:$2 sm:$0xff]  ;;  %v6941_v2 = vld [vmem:[%s11571_s0 + $0x152] ss:$2 sm:$0xff] }
   0x7   :  { %7868 = vmatmul.mubr.msk.bf16.vlgmr.msra.gmra.mrb[0].mxu0 %vm154_vm1, %v143_v10  ;;  %v144_v18 = vpack.c.bf16 %v6842_v17, %v6841_v16  ;;  %v6964_v19 = vld [vmem:[%s11571_s0 + $0x183] ss:$2 sm:$0xff]  ;;  %v6965_v20 = vld [vmem:[%s11571_s0 + $0x193] ss:$2 sm:$0xff]  ;;  %v924_v6 = vpack.c.bf16 %v6941_v2, %v6940_v1  ;;  %v6819_v7 = vld [vmem:[%s11571_s0 + $0x20] ss:$2 sm:$0xff] }
   0x8   :  { %7956 = vmatmul.mubr.msk.bf16.vlgmr.msra.gmra.mrb[0].mxu1 %vm154_vm1, %v975_v14  ;;  %v976_v21 = vpack.c.bf16 %v6965_v20, %v6964_v19  ;;  %v6843_v22 = vld [vmem:[%s11571_s0 + $0x61] ss:$2 sm:$0xff]  ;;  %7888 = vmatpush3.bf16.msra.mxu0 %v333_v15  ;;  %v6846_v27 = vld [vmem:[%s11571_s0 + $0x91] ss:$2 sm:$0xff]  ;;  %v6820_v8 = vld [vmem:[%s11571_s0 + $0x30] ss:$2 sm:$0xff] }
   0x9   :  { %v6966_v24 = vld [vmem:[%s11571_s0 + $0x1a3] ss:$2 sm:$0xff]  ;;  %7976 = vmatpush3.bf16.msra.mxu1 %v333_v15  ;;  %v6967_v25 = vld [vmem:[%s11571_s0 + $0x1b3] ss:$2 sm:$0xff]  ;;  %7871 = vmatprep.mubr.msk.bf16.mxu0 %vm154_vm1, %v144_v18  ;;  %v145_v30 = vpack.c.bf16 %v6844_v23, %v6843_v22  ;;  %v6942_v9 = vld [vmem:[%s11571_s0 + $0x162] ss:$2 sm:$0xff]  ;;  %v92_v13 = vpack.c.bf16 %v6820_v8, %v6819_v7 }
   0xa   :  { %v6845_v26 = vld [vmem:[%s11571_s0 + $0x81] ss:$2 sm:$0xff]  ;;  %7959 = vmatprep.mubr.msk.bf16.mxu1 %vm154_vm1, %v976_v21  ;;  %v977_v31 = vpack.c.bf16 %v6967_v25, %v6966_v24  ;;  %v6848_v35 = vld [vmem:[%s11571_s0 + $0xb1] ss:$2 sm:$0xff]  ;;  %v6943_v10 = vld [vmem:[%s11571_s0 + $0x172] ss:$2 sm:$0xff] }
   0xb   :  { %v6968_v28 = vld [vmem:[%s11571_s0 + $0x1c3] ss:$2 sm:$0xff]  ;;  %v6969_v29 = vld [vmem:[%s11571_s0 + $0x1d3] ss:$2 sm:$0xff]  ;;  %v146_v32 = vpack.c.bf16 %v6846_v27, %v6845_v26  ;;  %v6821_v11 = vld [vmem:[%s11571_s0 + $0x40] ss:$2 sm:$0xff]  ;;  %v925_v16 = vpack.c.bf16 %v6943_v10, %v6942_v9 }
   0xc   :  { %v978_v33 = vpack.c.bf16 %v6969_v29, %v6968_v28  ;;  %v6847_v34 = vld [vmem:[%s11571_s0 + $0xa1] ss:$2 sm:$0xff]  ;;  %v6850_v39 = vld [vmem:[%s11571_s0 + $0xd1] ss:$2 sm:$0xff]  ;;  %v6822_v12 = vld [vmem:[%s11571_s0 + $0x50] ss:$2 sm:$0xff] }
   0xd   :  { %v6970_v36 = vld [vmem:[%s11571_s0 + $0x1e3] ss:$2 sm:$0xff]  ;;  %v6971_v37 = vld [vmem:[%s11571_s0 + $0x1f3] ss:$2 sm:$0xff]  ;;  %v147_v42 = vpack.c.bf16 %v6848_v35, %v6847_v34  ;;  %v6944_v14 = vld [vmem:[%s11571_s0 + $0x182] ss:$2 sm:$0xff]  ;;  %v93_v18 = vpack.c.bf16 %v6822_v12, %v6821_v11 }
   0xe   :  { %v6849_v38 = vld [vmem:[%s11571_s0 + $0xc1] ss:$2 sm:$0xff]  ;;  %v979_v44 = vpack.c.bf16 %v6971_v37, %v6970_v36  ;;  %v6852_v48 = vld [vmem:[%s11571_s0 + $0xf1] ss:$2 sm:$0xff]  ;;  %v6945_v15 = vld [vmem:[%s11571_s0 + $0x192] ss:$2 sm:$0xff] }
   0xf   :  { %7872 = vmatmul.mubr.msk.bf16.gmra.mrb[4].mxu0 %vm154_vm1, %v145_v30  ;;  %v6972_v40 = vld [vmem:[%s11571_s0 + $0x203] ss:$2 sm:$0xff]  ;;  %v6973_v41 = vld [vmem:[%s11571_s0 + $0x213] ss:$2 sm:$0xff]  ;;  %v148_v45 = vpack.c.bf16 %v6850_v39, %v6849_v38  ;;  %v926_v19 = vpack.c.bf16 %v6945_v15, %v6944_v14  ;;  %v6823_v21 = vld [vmem:[%s11571_s0 + $0x60] ss:$2 sm:$0xff] }
  0x10   :  { %7960 = vmatmul.mubr.msk.bf16.gmra.mrb[4].mxu1 %vm154_vm1, %v977_v31  ;;  %7875 = vmatprep.mubr.msk.bf16.mxu0 %vm154_vm1, %v146_v32  ;;  %v6898_v43 = vld [vmem:[%s11572_s1 + $0x4] sm:$0x3]  ;;  %v980_v46 = vpack.c.bf16 %v6973_v41, %v6972_v40  ;;  %v6975_v50 = vld [vmem:[%s11571_s0 + $0x233] ss:$2 sm:$0xff]  ;;  %v6929_v20 = vld [vmem:[%s11572_s1 + $0x6] sm:$0x3] }
  0x11   :  { %7963 = vmatprep.mubr.msk.bf16.mxu1 %vm154_vm1, %v978_v33  ;;  %9323 = vmatprep.subr.msk.bf16.mxu0 %vm185_vm0, %v6898_v43  ;;  %v6851_v47 = vld [vmem:[%s11571_s0 + $0xe1] ss:$2 sm:$0xff]  ;;  %v6854_v52 = vld [vmem:[%s11571_s0 + $0x111] ss:$2 sm:$0xff]  ;;  %v531_v17 = vsel %vm185_vm0, %v6898_v43, 0  ;;  %v9813_v41 = vsel %vm185_vm0, %v6929_v20, 0 }
  0x12   :  { %9327 = vmatprep.subr.msk.bf16.mxu1 %vm185_vm0, %v6898_v43  ;;  %v6974_v49 = vld [vmem:[%s11571_s0 + $0x223] ss:$2 sm:$0xff]  ;;  %v6977_v54 = vld [vmem:[%s11571_s0 + $0x253] ss:$2 sm:$0xff]  ;;  %v149_v55 = vpack.c.bf16 %v6852_v48, %v6851_v47  ;;  %v6824_v22 = vld [vmem:[%s11571_s0 + $0x70] ss:$2 sm:$0xff] }
  0x13   :  { %v6853_v51 = vld [vmem:[%s11571_s0 + $0x101] ss:$2 sm:$0xff]  ;;  %v981_v56 = vpack.c.bf16 %v6975_v50, %v6974_v49  ;;  %v6856_v60 = vld [vmem:[%s11571_s0 + $0x131] ss:$2 sm:$0xff]  ;;  %v6946_v23 = vld [vmem:[%s11571_s0 + $0x1a2] ss:$2 sm:$0xff]  ;;  %v94_v29 = vpack.c.bf16 %v6824_v22, %v6823_v21 }
  0x14   :  { %v6976_v53 = vld [vmem:[%s11571_s0 + $0x243] ss:$2 sm:$0xff]  ;;  %v150_v57 = vpack.c.bf16 %v6854_v52, %v6853_v51  ;;  %v6979_v62 = vld [vmem:[%s11571_s0 + $0x273] ss:$2 sm:$0xff]  ;;  %v6947_v24 = vld [vmem:[%s11571_s0 + $0x1b2] ss:$2 sm:$0xff] }
  0x15   :  { %v982_v58 = vpack.c.bf16 %v6977_v54, %v6976_v53  ;;  %v6855_v59 = vld [vmem:[%s11571_s0 + $0x121] ss:$2 sm:$0xff]  ;;  %v6825_v25 = vld [vmem:[%s11571_s0 + $0x80] ss:$2 sm:$0xff]  ;;  %v6826_v26 = vld [vmem:[%s11571_s0 + $0x90] ss:$2 sm:$0xff]  ;;  %v927_v30 = vpack.c.bf16 %v6947_v24, %v6946_v23 }
  0x16   :  { %v6978_v61 = vld [vmem:[%s11571_s0 + $0x263] ss:$2 sm:$0xff]  ;;  %v151_v3 = vpack.c.bf16 %v6856_v60, %v6855_v59  ;;  %v6948_v27 = vld [vmem:[%s11571_s0 + $0x1c2] ss:$2 sm:$0xff]  ;;  %v6949_v28 = vld [vmem:[%s11571_s0 + $0x1d2] ss:$2 sm:$0xff]  ;;  %v95_v31 = vpack.c.bf16 %v6826_v26, %v6825_v25 }
  0x17   :  { %7876 = vmatmul.mubr.msk.bf16.gmra.mrb[8].mxu0 %vm154_vm1, %v147_v42  ;;  %v983_v4 = vpack.c.bf16 %v6979_v62, %v6978_v61  ;;  %v928_v32 = vpack.c.bf16 %v6949_v28, %v6948_v27  ;;  %v6827_v33 = vld [vmem:[%s11571_s0 + $0xa0] ss:$2 sm:$0xff]  ;;  %v6828_v34 = vld [vmem:[%s11571_s0 + $0xb0] ss:$2 sm:$0xff]  ;;  %v9472_v28 = vmov 0.0  }
  0x18   :  { %7964 = vmatmul.mubr.msk.bf16.gmra.mrb[8].mxu1 %vm154_vm1, %v979_v44  ;;  %7879 = vmatprep.mubr.msk.bf16.mxu0 %vm154_vm1, %v148_v45  ;;  %v6950_v35 = vld [vmem:[%s11571_s0 + $0x1e2] ss:$2 sm:$0xff]  ;;  %v6951_v36 = vld [vmem:[%s11571_s0 + $0x1f2] ss:$2 sm:$0xff]  ;;  %v96_v43 = vpack.c.bf16 %v6828_v34, %v6827_v33 }
  0x19   :  { %7967 = vmatprep.mubr.msk.bf16.mxu1 %vm154_vm1, %v980_v46  ;;  %v6829_v37 = vld [vmem:[%s11571_s0 + $0xc0] ss:$2 sm:$0xff]  ;;  %v6830_v38 = vld [vmem:[%s11571_s0 + $0xd0] ss:$2 sm:$0xff]  ;;  %v929_v45 = vpack.c.bf16 %v6951_v36, %v6950_v35 }
  0x1a   :  { %v6952_v39 = vld [vmem:[%s11571_s0 + $0x202] ss:$2 sm:$0xff]  ;;  %v6953_v40 = vld [vmem:[%s11571_s0 + $0x212] ss:$2 sm:$0xff]  ;;  %v97_v46 = vpack.c.bf16 %v6830_v38, %v6829_v37 }
  0x1b   :  { %v7060_v42 = vld [vmem:[%s11573_s2 + $0x4] sm:$0xf]  ;;  %v930_v47 = vpack.c.bf16 %v6953_v40, %v6952_v39  ;;  %v6832_v49 = vld [vmem:[%s11571_s0 + $0xf0] ss:$2 sm:$0xff] }
  0x1c   :  { %v9819_v44 = vsel %vm1966_vm2, %v7060_v42, 0  ;;  %v6831_v48 = vld [vmem:[%s11571_s0 + $0xe0] ss:$2 sm:$0xff]  ;;  %v6834_v53 = vld [vmem:[%s11571_s0 + $0x110] ss:$2 sm:$0xff] }
  0x1d   :  { %v6954_v50 = vld [vmem:[%s11571_s0 + $0x222] ss:$2 sm:$0xff]  ;;  %v6955_v51 = vld [vmem:[%s11571_s0 + $0x232] ss:$2 sm:$0xff] }
  0x1e   :  { %v6833_v52 = vld [vmem:[%s11571_s0 + $0x100] ss:$2 sm:$0xff]  ;;  %v6836_v61 = vld [vmem:[%s11571_s0 + $0x130] ss:$2 sm:$0xff] }
  0x1f   :  { %7880 = vmatmul.mubr.msk.bf16.gmra.mrb[12].mxu0 %vm154_vm1, %v149_v55  ;;  %v6956_v54 = vld [vmem:[%s11571_s0 + $0x242] ss:$2 sm:$0xff]  ;;  %v6957_v55 = vld [vmem:[%s11571_s0 + $0x252] ss:$2 sm:$0xff] }
  0x20   :  { %7968 = vmatmul.mubr.msk.bf16.gmra.mrb[12].mxu1 %vm154_vm1, %v981_v56  ;;  %7883 = vmatprep.mubr.msk.bf16.mxu0 %vm154_vm1, %v150_v57  ;;  %v98_v56 = vpack.c.bf16 %v6832_v49, %v6831_v48  ;;  %v931_v57 = vpack.c.bf16 %v6955_v51, %v6954_v50  ;;  %v932_v59 = vpack.c.bf16 %v6957_v55, %v6956_v54  ;;  %v6835_v60 = vld [vmem:[%s11571_s0 + $0x120] ss:$2 sm:$0xff] }
  0x21   :  { %7971 = vmatprep.mubr.msk.bf16.mxu1 %vm154_vm1, %v982_v58  ;;  %v99_v58 = vpack.c.bf16 %v6834_v53, %v6833_v52  ;;  %v6958_v62 = vld [vmem:[%s11571_s0 + $0x262] ss:$2 sm:$0xff]  ;;  %v6959_v63 = vld [vmem:[%s11571_s0 + $0x272] ss:$2 sm:$0xff] }
  0x22   :  { %v6878_v0 = vld [vmem:[%s11571_s0 + $0x2] ss:$2 sm:$0xff]  ;;  %v6879_v1 = vld [vmem:[%s11571_s0 + $0x12] ss:$2 sm:$0xff] }
  0x23   :  { %v7000_v2 = vld [vmem:[%s11571_s0 + $0x144] ss:$2 sm:$0xff]  ;;  %v7003_v11 = vld [vmem:[%s11571_s0 + $0x174] ss:$2 sm:$0xff] }
  0x24   :  { %v6880_v8 = vld [vmem:[%s11571_s0 + $0x22] ss:$2 sm:$0xff]  ;;  %v6881_v9 = vld [vmem:[%s11571_s0 + $0x32] ss:$2 sm:$0xff] }
  0x25   :  { %v7002_v10 = vld [vmem:[%s11571_s0 + $0x164] ss:$2 sm:$0xff]  ;;  %v7005_v15 = vld [vmem:[%s11571_s0 + $0x194] ss:$2 sm:$0xff] }
  0x26   :  { %v6882_v12 = vld [vmem:[%s11571_s0 + $0x42] ss:$2 sm:$0xff]  ;;  %v6885_v21 = vld [vmem:[%s11571_s0 + $0x72] ss:$2 sm:$0xff] }
  0x27   :  { %7884 = vmatmul.mubr.msk.bf16.gmra.mrb[16].mxu0 %vm154_vm1, %v151_v3  ;;  %v7001_v3 = vld [vmem:[%s11571_s0 + $0x154] ss:$2 sm:$0xff]  ;;  %v7004_v14 = vld [vmem:[%s11571_s0 + $0x184] ss:$2 sm:$0xff] }
  0x28   :  { %7972 = vmatmul.mubr.msk.bf16.gmra.mrb[16].mxu1 %vm154_vm1, %v983_v4  ;;  %7889 = vmatprep.mubr.msk.bf16.mxu0 %vm154_vm1, %v91_v5  ;;  %v100_v4 = vpack.c.bf16 %v6836_v61, %v6835_v60  ;;  %v933_v5 = vpack.c.bf16 %v6959_v63, %v6958_v62  ;;  %v1310_v7 = vpack.c.bf16 %v7001_v3, %v7000_v2  ;;  %v7006_v22 = vld [vmem:[%s11571_s0 + $0x1a4] ss:$2 sm:$0xff]  ;;  %v7007_v23 = vld [vmem:[%s11571_s0 + $0x1b4] ss:$2 sm:$0xff]  ;;  %v6909_v62 = vld [vmem:[%s11571_s0 + $0x3] ss:$2 sm:$0xff] }
  0x29   :  { %7977 = vmatprep.mubr.msk.bf16.mxu1 %vm154_vm1, %v924_v6  ;;  %v488_v6 = vpack.c.bf16 %v6879_v1, %v6878_v0  ;;  %v6886_v24 = vld [vmem:[%s11571_s0 + $0x82] ss:$2 sm:$0xff]  ;;  %v6887_v25 = vld [vmem:[%s11571_s0 + $0x92] ss:$2 sm:$0xff]  ;;  %v6910_v63 = vld [vmem:[%s11571_s0 + $0x13] ss:$2 sm:$0xff] }
  0x2a   :  { %v7008_v26 = vld [vmem:[%s11571_s0 + $0x1c4] ss:$2 sm:$0xff]  ;;  %v7009_v27 = vld [vmem:[%s11571_s0 + $0x1d4] ss:$2 sm:$0xff]  ;;  %v7030_v0 = vld [vmem:[%s11571_s0 + $0x145] ss:$2 sm:$0xff] }
  0x2b   :  { %v6888_v33 = vld [vmem:[%s11571_s0 + $0xa2] ss:$2 sm:$0xff]  ;;  %v6889_v34 = vld [vmem:[%s11571_s0 + $0xb2] ss:$2 sm:$0xff]  ;;  %v7031_v1 = vld [vmem:[%s11571_s0 + $0x155] ss:$2 sm:$0xff] }
  0x2c   :  { %v7010_v35 = vld [vmem:[%s11571_s0 + $0x1e4] ss:$2 sm:$0xff]  ;;  %v7011_v36 = vld [vmem:[%s11571_s0 + $0x1f4] ss:$2 sm:$0xff] }
  0x2d   :  { %v6890_v37 = vld [vmem:[%s11571_s0 + $0xc2] ss:$2 sm:$0xff]  ;;  %v6891_v38 = vld [vmem:[%s11571_s0 + $0xd2] ss:$2 sm:$0xff]  ;;  %v1315_v42 = vpack.c.bf16 %v7011_v36, %v7010_v35 }
  0x2e   :  { %v7012_v39 = vld [vmem:[%s11571_s0 + $0x204] ss:$2 sm:$0xff]  ;;  %v7013_v40 = vld [vmem:[%s11571_s0 + $0x214] ss:$2 sm:$0xff] }
  0x2f   :  { %7890 = vmatmul.mubr.msk.bf16.vlgmr.msra.gmra.mrb[0].mxu0 %vm154_vm1, %v92_v13  ;;  %v6883_v13 = vld [vmem:[%s11571_s0 + $0x52] ss:$2 sm:$0xff]  ;;  %v6894_v50 = vld [vmem:[%s11571_s0 + $0x102] ss:$2 sm:$0xff] }
  0x30   :  { %7978 = vmatmul.mubr.msk.bf16.vlgmr.msra.gmra.mrb[0].mxu1 %vm154_vm1, %v925_v16  ;;  %7910 = vmatpush3.bf16.msra.mxu0 %v531_v17  ;;  %v489_v16 = vpack.c.bf16 %v6881_v9, %v6880_v8  ;;  %v7014_v48 = vld [vmem:[%s11571_s0 + $0x224] ss:$2 sm:$0xff]  ;;  %v7015_v49 = vld [vmem:[%s11571_s0 + $0x234] ss:$2 sm:$0xff]  ;;  %v7032_v8 = vld [vmem:[%s11571_s0 + $0x165] ss:$2 sm:$0xff] }
  0x31   :  { %7998 = vmatpush3.bf16.msra.mxu1 %v531_v17  ;;  %7893 = vmatprep.mubr.msk.bf16.mxu0 %vm154_vm1, %v93_v18  ;;  %v1311_v17 = vpack.c.bf16 %v7003_v11, %v7002_v10  ;;  %v490_v18 = vpack.c.bf16 %v6883_v13, %v6882_v12  ;;  %v6895_v51 = vld [vmem:[%s11571_s0 + $0x112] ss:$2 sm:$0xff]  ;;  %v1317_v55 = vpack.c.bf16 %v7015_v49, %v7014_v48  ;;  %v7033_v9 = vld [vmem:[%s11571_s0 + $0x175] ss:$2 sm:$0xff]  ;;  %v7034_v12 = vld [vmem:[%s11571_s0 + $0x185] ss:$2 sm:$0xff] }
  0x32   :  { %7981 = vmatprep.mubr.msk.bf16.mxu1 %vm154_vm1, %v926_v19  ;;  %9324 = vmatprep.subr.msk.bf16.mxu0 %vm185_vm0, %v6929_v20  ;;  %v1312_v19 = vpack.c.bf16 %v7005_v15, %v7004_v14  ;;  %v7016_v52 = vld [vmem:[%s11571_s0 + $0x244] ss:$2 sm:$0xff]  ;;  %v7017_v53 = vld [vmem:[%s11571_s0 + $0x254] ss:$2 sm:$0xff]  ;;  %v6913_v10 = vld [vmem:[%s11571_s0 + $0x43] ss:$2 sm:$0xff]  ;;  %v1524_v15 = vpack.c.bf16 %v7033_v9, %v7032_v8 }
  0x33   :  { %9328 = vmatprep.subr.msk.bf16.mxu1 %vm185_vm0, %v6929_v20  ;;  %v6884_v20 = vld [vmem:[%s11571_s0 + $0x62] ss:$2 sm:$0xff]  ;;  %v6914_v11 = vld [vmem:[%s11571_s0 + $0x53] ss:$2 sm:$0xff] }
  0x34   :  { %v7018_v60 = vld [vmem:[%s11571_s0 + $0x264] ss:$2 sm:$0xff]  ;;  %v7019_v61 = vld [vmem:[%s11571_s0 + $0x274] ss:$2 sm:$0xff]  ;;  %v7035_v13 = vld [vmem:[%s11571_s0 + $0x195] ss:$2 sm:$0xff] }
  0x35   :  { %v1319_v3 = vpack.c.bf16 %v7019_v61, %v7018_v60 }
  0x37   :  { %7894 = vmatmul.mubr.msk.bf16.gmra.mrb[4].mxu0 %vm154_vm1, %v94_v29  ;;  %v491_v29 = vpack.c.bf16 %v6885_v21, %v6884_v20  ;;  %v7036_v20 = vld [vmem:[%s11571_s0 + $0x1a5] ss:$2 sm:$0xff]  ;;  %v7037_v21 = vld [vmem:[%s11571_s0 + $0x1b5] ss:$2 sm:$0xff] }
  0x38   :  { %7982 = vmatmul.mubr.msk.bf16.gmra.mrb[4].mxu1 %vm154_vm1, %v927_v30  ;;  %7897 = vmatprep.mubr.msk.bf16.mxu0 %vm154_vm1, %v95_v31  ;;  %v1313_v30 = vpack.c.bf16 %v7007_v23, %v7006_v22  ;;  %v492_v31 = vpack.c.bf16 %v6887_v25, %v6886_v24  ;;  %v6917_v22 = vld [vmem:[%s11571_s0 + $0x83] ss:$2 sm:$0xff]  ;;  %v6918_v23 = vld [vmem:[%s11571_s0 + $0x93] ss:$2 sm:$0xff] }
  0x39   :  { %7985 = vmatprep.mubr.msk.bf16.mxu1 %vm154_vm1, %v928_v32  ;;  %v1314_v32 = vpack.c.bf16 %v7009_v27, %v7008_v26  ;;  %v7038_v24 = vld [vmem:[%s11571_s0 + $0x1c5] ss:$2 sm:$0xff]  ;;  %v7039_v25 = vld [vmem:[%s11571_s0 + $0x1d5] ss:$2 sm:$0xff] }
  0x3f   :  { %7898 = vmatmul.mubr.msk.bf16.gmra.mrb[8].mxu0 %vm154_vm1, %v96_v43  ;;  %v494_v43 = vpack.c.bf16 %v6891_v38, %v6890_v37 }
  0x40   :  { %7986 = vmatmul.mubr.msk.bf16.gmra.mrb[8].mxu1 %vm154_vm1, %v929_v45  ;;  %7901 = vmatprep.mubr.msk.bf16.mxu0 %vm154_vm1, %v97_v46  ;;  %v1316_v45 = vpack.c.bf16 %v7013_v40, %v7012_v39  ;;  %v6892_v46 = vld [vmem:[%s11571_s0 + $0xe2] ss:$2 sm:$0xff] }
  0x41   :  { %7989 = vmatprep.mubr.msk.bf16.mxu1 %vm154_vm1, %v930_v47  ;;  %v6893_v47 = vld [vmem:[%s11571_s0 + $0xf2] ss:$2 sm:$0xff] }
  0x42   :  { %v495_v54 = vpack.c.bf16 %v6893_v47, %v6892_v46 }
  0x47   :  { %7902 = vmatmul.mubr.msk.bf16.gmra.mrb[12].mxu0 %vm154_vm1, %v98_v56  ;;  %v496_v56 = vpack.c.bf16 %v6895_v51, %v6894_v50 }
  0x48   :  { %7990 = vmatmul.mubr.msk.bf16.gmra.mrb[12].mxu1 %vm154_vm1, %v931_v57  ;;  %7905 = vmatprep.mubr.msk.bf16.mxu0 %vm154_vm1, %v99_v58  ;;  %v1318_v57 = vpack.c.bf16 %v7017_v53, %v7016_v52  ;;  %v6896_v58 = vld [vmem:[%s11571_s0 + $0x122] ss:$2 sm:$0xff] }
  0x49   :  { %7993 = vmatprep.mubr.msk.bf16.mxu1 %vm154_vm1, %v932_v59  ;;  %v6897_v59 = vld [vmem:[%s11571_s0 + $0x132] ss:$2 sm:$0xff] }
  0x4a   :  { %v497_v2 = vpack.c.bf16 %v6897_v59, %v6896_v58 }
  0x4f   :  { %7906 = vmatmul.mubr.msk.bf16.gmra.mrb[16].mxu0 %vm154_vm1, %v100_v4  ;;  %v706_v4 = vpack.c.bf16 %v6910_v63, %v6909_v62 }
  0x50   :  { %7994 = vmatmul.mubr.msk.bf16.gmra.mrb[16].mxu1 %vm154_vm1, %v933_v5  ;;  %7911 = vmatprep.mubr.msk.bf16.mxu0 %vm154_vm1, %v488_v6  ;;  %v1523_v5 = vpack.c.bf16 %v7031_v1, %v7030_v0  ;;  %v6911_v6 = vld [vmem:[%s11571_s0 + $0x23] ss:$2 sm:$0xff] }
  0x51   :  { %7999 = vmatprep.mubr.msk.bf16.mxu1 %vm154_vm1, %v1310_v7  ;;  %v6912_v7 = vld [vmem:[%s11571_s0 + $0x33] ss:$2 sm:$0xff] }
  0x52   :  { %v707_v14 = vpack.c.bf16 %v6912_v7, %v6911_v6 }
  0x57   :  { %7912 = vmatmul.mubr.msk.bf16.vlgmr.msra.gmra.mrb[0].mxu0 %vm154_vm1, %v489_v16  ;;  %v708_v16 = vpack.c.bf16 %v6914_v11, %v6913_v10 }
  0x58   :  { %8000 = vmatmul.mubr.msk.bf16.vlgmr.msra.gmra.mrb[0].mxu1 %vm154_vm1, %v1311_v17  ;;  %7932 = vmatpush3.bf16.msra.mxu0 %v9813_v41  ;;  %v1525_v17 = vpack.c.bf16 %v7035_v13, %v7034_v12 }
  0x59   :  { %8020 = vmatpush3.bf16.msra.mxu1 %v9813_v41  ;;  %7915 = vmatprep.mubr.msk.bf16.mxu0 %vm154_vm1, %v490_v18  ;;  %v493_v41 = vpack.c.bf16 %v6889_v34, %v6888_v33  ;;  %v6915_v18 = vld [vmem:[%s11571_s0 + $0x63] ss:$2 sm:$0xff] }
  0x5a   :  { %8003 = vmatprep.mubr.msk.bf16.mxu1 %vm154_vm1, %v1312_v19  ;;  %8041 = vmatprep.subr.bf16.mxu0 %v9472_v28  ;;  %v6916_v19 = vld [vmem:[%s11571_s0 + $0x73] ss:$2 sm:$0xff] }
  0x5b   :  { %8129 = vmatprep.subr.bf16.mxu1 %v9472_v28  ;;  %v709_v26 = vpack.c.bf16 %v6916_v19, %v6915_v18 }
  0x5f   :  { %7916 = vmatmul.mubr.msk.bf16.gmra.mrb[4].mxu0 %vm154_vm1, %v491_v29 }
  0x60   :  { %8004 = vmatmul.mubr.msk.bf16.gmra.mrb[4].mxu1 %vm154_vm1, %v1313_v30  ;;  %7919 = vmatprep.mubr.msk.bf16.mxu0 %vm154_vm1, %v492_v31 }
  0x61   :  { %8007 = vmatprep.mubr.msk.bf16.mxu1 %vm154_vm1, %v1314_v32 }
  0x67   :  { %7920 = vmatmul.mubr.msk.bf16.gmra.mrb[8].mxu0 %vm154_vm1, %v493_v41 }
  0x68   :  { %8008 = vmatmul.mubr.msk.bf16.gmra.mrb[8].mxu1 %vm154_vm1, %v1315_v42  ;;  %7923 = vmatprep.mubr.msk.bf16.mxu0 %vm154_vm1, %v494_v43 }
  0x69   :  { %8011 = vmatprep.mubr.msk.bf16.mxu1 %vm154_vm1, %v1316_v45 }
  0x6f   :  { %7924 = vmatmul.mubr.msk.bf16.gmra.mrb[12].mxu0 %vm154_vm1, %v495_v54 }
  0x70   :  { %8012 = vmatmul.mubr.msk.bf16.gmra.mrb[12].mxu1 %vm154_vm1, %v1317_v55  ;;  %7927 = vmatprep.mubr.msk.bf16.mxu0 %vm154_vm1, %v496_v56 }
  0x71   :  { %8015 = vmatprep.mubr.msk.bf16.mxu1 %vm154_vm1, %v1318_v57 }
  0x77   :  { %7928 = vmatmul.mubr.msk.bf16.gmra.mrb[16].mxu0 %vm154_vm1, %v497_v2 }
  0x78   :  { %8016 = vmatmul.mubr.msk.bf16.gmra.mrb[16].mxu1 %vm154_vm1, %v1319_v3  ;;  %7933 = vmatprep.mubr.msk.bf16.mxu0 %vm154_vm1, %v706_v4 }
  0x79   :  { %8021 = vmatprep.mubr.msk.bf16.mxu1 %vm154_vm1, %v1523_v5 }
  0x7f   :  { %7934 = vmatmul.mubr.msk.bf16.vlgmr.msra.gmra.mrb[0].mxu0 %vm154_vm1, %v707_v14 }
  0x80   :  { %8022 = vmatmul.mubr.msk.bf16.vlgmr.msra.gmra.mrb[0].mxu1 %vm154_vm1, %v1524_v15  ;;  %7937 = vmatprep.mubr.msk.bf16.mxu0 %vm154_vm1, %v708_v16 }
  0x81   :  { %8025 = vmatprep.mubr.msk.bf16.mxu1 %vm154_vm1, %v1525_v17  ;;  %8042 = vmatpush3.bf16.msra.mxu0 %v9819_v44 }
  0x82   :  { %8130 = vmatpush3.bf16.msra.mxu1 %v9819_v44  ;;  %8063 = vmatprep.subr.bf16.mxu0 %v9472_v28 }
  0x83   :  { %8151 = vmatprep.subr.bf16.mxu1 %v9472_v28 }
  0x84   :  { %20 = vsyncpa [#allocation8], 0  ;;  %v1526_v27 = vpack.c.bf16 %v7037_v21, %v7036_v20  ;;  %v710_v29 = vpack.c.bf16 %v6918_v23, %v6917_v22  ;;  %v1527_v30 = vpack.c.bf16 %v7039_v25, %v7038_v24  ;;  %v6919_v31 = vld [vmem:[%s11571_s0 + $0xa3] ss:$2 sm:$0xff]  ;;  %v6920_v44 = vld [vmem:[%s11571_s0 + $0xb3] ss:$2 sm:$0xff] }
  0x85   :  { %v7040_v32 = vld [vmem:[%s11571_s0 + $0x1e5] ss:$2 sm:$0xff]  ;;  %v7041_v33 = vld [vmem:[%s11571_s0 + $0x1f5] ss:$2 sm:$0xff]  ;;  %v711_v38 = vpack.c.bf16 %v6920_v44, %v6919_v31  ;;  %vm1816_vm3 = vcmask 64512   ;;  %vm9473_vm4 = vmmov 0  }
  0x86   :  { %v6921_v34 = vld [vmem:[%s11571_s0 + $0xc3] ss:$2 sm:$0xff]  ;;  %v6922_v35 = vld [vmem:[%s11571_s0 + $0xd3] ss:$2 sm:$0xff]  ;;  %v1528_v39 = vpack.c.bf16 %v7041_v33, %v7040_v32  ;;  %1819 = vst.msk [vmem:[#allocation2 + $0x10] sm:$0xff] %vm1816_vm3, %v9472_v28  ;;  %1820 = vst.msk [vmem:[#allocation2 + $0x18] sm:$0xff] %vm1816_vm3, %v9472_v28 }
  0x87   :  { %7938 = vmatmul.mubr.msk.bf16.gmra.mrb[4].mxu0 %vm154_vm1, %v709_v26  ;;  %v7042_v36 = vld [vmem:[%s11571_s0 + $0x205] ss:$2 sm:$0xff]  ;;  %v7043_v37 = vld [vmem:[%s11571_s0 + $0x215] ss:$2 sm:$0xff]  ;;  %v712_v40 = vpack.c.bf16 %v6922_v35, %v6921_v34  ;;  %1817 = vst.msk [vmem:[#allocation2] sm:$0xff] %vm1816_vm3, %v9472_v28  ;;  %1818 = vst.msk [vmem:[#allocation2 + $0x8] sm:$0xff] %vm1816_vm3, %v9472_v28 }
  0x88   :  { %8026 = vmatmul.mubr.msk.bf16.gmra.mrb[4].mxu1 %vm154_vm1, %v1526_v27  ;;  %7941 = vmatprep.mubr.msk.bf16.mxu0 %vm154_vm1, %v710_v29  ;;  %v1529_v41 = vpack.c.bf16 %v7043_v37, %v7042_v36  ;;  %v6923_v42 = vld [vmem:[%s11571_s0 + $0xe3] ss:$2 sm:$0xff]  ;;  %v6924_v43 = vld [vmem:[%s11571_s0 + $0xf3] ss:$2 sm:$0xff]  ;;  %1821 = vst.msk [vmem:[#allocation2 + $0x20] sm:$0xff] %vm1816_vm3, %v9472_v28  ;;  %1822 = vst.msk [vmem:[#allocation2 + $0x28] sm:$0xff] %vm1816_vm3, %v9472_v28 }
  0x89   :  { %8029 = vmatprep.mubr.msk.bf16.mxu1 %vm154_vm1, %v1527_v30  ;;  %v7044_v45 = vld [vmem:[%s11571_s0 + $0x225] ss:$2 sm:$0xff]  ;;  %v7045_v46 = vld [vmem:[%s11571_s0 + $0x235] ss:$2 sm:$0xff]  ;;  %v713_v51 = vpack.c.bf16 %v6924_v43, %v6923_v42  ;;  %1823 = vst.msk [vmem:[#allocation2 + $0x30] sm:$0xff] %vm1816_vm3, %v9472_v28  ;;  %1824 = vst.msk [vmem:[#allocation2 + $0x38] sm:$0xff] %vm1816_vm3, %v9472_v28 }
  0x8a   :  { %v6925_v47 = vld [vmem:[%s11571_s0 + $0x103] ss:$2 sm:$0xff]  ;;  %v6926_v48 = vld [vmem:[%s11571_s0 + $0x113] ss:$2 sm:$0xff]  ;;  %v1530_v52 = vpack.c.bf16 %v7045_v46, %v7044_v45  ;;  %1825 = vst.msk [vmem:[#allocation2 + $0x40] sm:$0xff] %vm1816_vm3, %v9472_v28  ;;  %1826 = vst.msk [vmem:[#allocation2 + $0x48] sm:$0xff] %vm1816_vm3, %v9472_v28 }
  0x8b   :  { %v7046_v49 = vld [vmem:[%s11571_s0 + $0x245] ss:$2 sm:$0xff]  ;;  %v7047_v50 = vld [vmem:[%s11571_s0 + $0x255] ss:$2 sm:$0xff]  ;;  %v714_v53 = vpack.c.bf16 %v6926_v48, %v6925_v47  ;;  %1827 = vst.msk [vmem:[#allocation2 + $0x50] sm:$0xff] %vm1816_vm3, %v9472_v28  ;;  %1828 = vst.msk [vmem:[#allocation2 + $0x58] sm:$0xff] %vm1816_vm3, %v9472_v28 }
  0x8c   :  { %v1531_v54 = vpack.c.bf16 %v7047_v50, %v7046_v49  ;;  %v6927_v55 = vld [vmem:[%s11571_s0 + $0x123] ss:$2 sm:$0xff]  ;;  %v6928_v56 = vld [vmem:[%s11571_s0 + $0x133] ss:$2 sm:$0xff]  ;;  %1829 = vst.msk [vmem:[#allocation2 + $0x60] sm:$0xff] %vm1816_vm3, %v9472_v28  ;;  %1830 = vst.msk [vmem:[#allocation2 + $0x68] sm:$0xff] %vm1816_vm3, %v9472_v28 }
  0x8d   :  { %v7048_v57 = vld [vmem:[%s11571_s0 + $0x265] ss:$2 sm:$0xff]  ;;  %v7049_v58 = vld [vmem:[%s11571_s0 + $0x275] ss:$2 sm:$0xff]  ;;  %v715_v59 = vpack.c.bf16 %v6928_v56, %v6927_v55  ;;  %1831 = vst.msk [vmem:[#allocation2 + $0x70] sm:$0xff] %vm1816_vm3, %v9472_v28  ;;  %1832 = vst.msk [vmem:[#allocation2 + $0x78] sm:$0xff] %vm1816_vm3, %v9472_v28 }
  0x8e   :  { %v1532_v60 = vpack.c.bf16 %v7049_v58, %v7048_v57  ;;  %1833 = vst.msk [vmem:[#allocation2 + $0x80] sm:$0xff] %vm1816_vm3, %v9472_v28  ;;  %1834 = vst.msk [vmem:[#allocation2 + $0x88] sm:$0xff] %vm1816_vm3, %v9472_v28  ;;  %vm1857_vm5 = vcmask 60416   ;;  %v1923_v31 = vld [vmem:[%s11573_s2] sm:$0xf]  ;;  %s9474_s16 = smov [#allocation7]  }
  0x8f   :  { %7942 = vmatmul.mubr.msk.bf16.gmra.mrb[8].mxu0 %vm154_vm1, %v711_v38  ;;  %1835 = vst.msk [vmem:[#allocation2 + $0x90] sm:$0xff] %vm1816_vm3, %v9472_v28  ;;  %1836 = vst.msk [vmem:[#allocation2 + $0x98] sm:$0xff] %vm1816_vm3, %v9472_v28  ;;  %v2059_v50 = vsel %vm1966_vm2, %v1923_v31, 0 }
  0x90   :  { %8030 = vmatmul.mubr.msk.bf16.gmra.mrb[8].mxu1 %vm154_vm1, %v1528_v39  ;;  %7945 = vmatprep.mubr.msk.bf16.mxu0 %vm154_vm1, %v712_v40  ;;  %1837 = vst.msk [vmem:[#allocation2 + $0xa0] sm:$0xff] %vm1816_vm3, %v9472_v28  ;;  %1838 = vst.msk [vmem:[#allocation2 + $0xa8] sm:$0xff] %vm1816_vm3, %v9472_v28 }
  0x91   :  { %8033 = vmatprep.mubr.msk.bf16.mxu1 %vm154_vm1, %v1529_v41  ;;  %1839 = vst.msk [vmem:[#allocation2 + $0xb0] sm:$0xff] %vm1816_vm3, %v9472_v28  ;;  %1840 = vst.msk [vmem:[#allocation2 + $0xb8] sm:$0xff] %vm1816_vm3, %v9472_v28 }
  0x92   :  { %1841 = vst.msk [vmem:[#allocation2 + $0xc0] sm:$0xff] %vm1816_vm3, %v9472_v28  ;;  %1842 = vst.msk [vmem:[#allocation2 + $0xc8] sm:$0xff] %vm1816_vm3, %v9472_v28 }
  0x93   :  { %1843 = vst.msk [vmem:[#allocation2 + $0xd0] sm:$0xff] %vm1816_vm3, %v9472_v28  ;;  %1844 = vst.msk [vmem:[#allocation2 + $0xd8] sm:$0xff] %vm1816_vm3, %v9472_v28 }
  0x94   :  { %1845 = vst.msk [vmem:[#allocation2 + $0xe0] sm:$0xff] %vm1816_vm3, %v9472_v28  ;;  %1846 = vst.msk [vmem:[#allocation2 + $0xe8] sm:$0xff] %vm1816_vm3, %v9472_v28 }
  0x95   :  { %1847 = vst.msk [vmem:[#allocation2 + $0xf0] sm:$0xff] %vm1816_vm3, %v9472_v28  ;;  %1848 = vst.msk [vmem:[#allocation2 + $0xf8] sm:$0xff] %vm1816_vm3, %v9472_v28 }
  0x96   :  { %1849 = vst.msk [vmem:[#allocation2 + $0x100] sm:$0xff] %vm1816_vm3, %v9472_v28  ;;  %1850 = vst.msk [vmem:[#allocation2 + $0x108] sm:$0xff] %vm1816_vm3, %v9472_v28 }
  0x97   :  { %7946 = vmatmul.mubr.msk.bf16.gmra.mrb[12].mxu0 %vm154_vm1, %v713_v51  ;;  %1851 = vst.msk [vmem:[#allocation2 + $0x110] sm:$0xff] %vm1816_vm3, %v9472_v28  ;;  %1852 = vst.msk [vmem:[#allocation2 + $0x118] sm:$0xff] %vm1816_vm3, %v9472_v28 }
  0x98   :  { %8034 = vmatmul.mubr.msk.bf16.gmra.mrb[12].mxu1 %vm154_vm1, %v1530_v52  ;;  %7949 = vmatprep.mubr.msk.bf16.mxu0 %vm154_vm1, %v714_v53  ;;  %1853 = vst.msk [vmem:[#allocation2 + $0x120] sm:$0xff] %vm1816_vm3, %v9472_v28  ;;  %1854 = vst.msk [vmem:[#allocation2 + $0x128] sm:$0xff] %vm1816_vm3, %v9472_v28 }
  0x99   :  { %8037 = vmatprep.mubr.msk.bf16.mxu1 %vm154_vm1, %v1531_v54  ;;  %1855 = vst.msk [vmem:[#allocation2 + $0x130] sm:$0xff] %vm1816_vm3, %v9472_v28  ;;  %1856 = vst.msk [vmem:[#allocation2 + $0x138] sm:$0xff] %vm1816_vm3, %v9472_v28 }
  0x9a   :  { %1858 = vst.msk [vmem:[#allocation2 + $0x140] sm:$0xf] %vm1857_vm5, %v9472_v28 }
  0x9f   :  { %7950 = vmatmul.mubr.msk.bf16.gmra.mrb[16].mxu0 %vm154_vm1, %v715_v59 }
  0xa0   :  { %8038 = vmatmul.mubr.msk.bf16.gmra.mrb[16].mxu1 %vm154_vm1, %v1532_v60  ;;  %8043 = vmatprep.mubr.msk.bf16.mxu0 %vm9473_vm4, %v9472_v28 }
  0xa1   :  { %8131 = vmatprep.mubr.msk.bf16.mxu1 %vm9473_vm4, %v9472_v28 }
 0x152   :  { %v7935_v61 = vpop.f32.mrb[0].mxu0 }
 0x153   :  { %vm1698_vm6 = vcmp.gt.f32.partialorder %v7935_v61, 0.0  ;;  %v1718_v62 = vmul.f32 0.2, %v7935_v61  ;;  %v8023_v63 = vpop.f32.mrb[0].mxu1  ;;  %v785_v0 = vpop.f32.mrb[1].mxu0 }
 0x154   :  { %vm1758_vm7 = vcmp.gt.f32.partialorder %v8023_v63, 0.0  ;;  %v1778_v1 = vmul.f32 0.2, %v8023_v63  ;;  %vm1696_vm8 = vcmp.gt.f32.partialorder %v785_v0, 0.0  ;;  %v1716_v2 = vmul.f32 0.2, %v785_v0 }
 0x155   :  { %v1738_v3 = vsel %vm1698_vm6, %v7935_v61, %v1718_v62  ;;  %v1597_v4 = vpop.f32.mrb[1].mxu1  ;;  %v7936_v5 = vpop.f32.mrb[2].mxu0 }
 0x156   :  { %1861 = vst.msk [vmem:[#allocation2 + $0x11] sm:$0xff] %vm1816_vm3, %v1738_v3  ;;  %v1798_v6 = vsel %vm1758_vm7, %v8023_v63, %v1778_v1  ;;  %v1736_v7 = vsel %vm1696_vm8, %v785_v0, %v1716_v2  ;;  %vm1756_vm9 = vcmp.gt.f32.partialorder %v1597_v4, 0.0  ;;  %v1776_v8 = vmul.f32 0.2, %v1597_v4  ;;  %v8024_v9 = vpop.f32.mrb[2].mxu1  ;;  %v788_v10 = vpop.f32.mrb[3].mxu0 }
 0x157   :  { %1881 = vst.msk [vmem:[#allocation2 + $0xb3] sm:$0xff] %vm1816_vm3, %v1798_v6  ;;  %1859 = vst.msk [vmem:[#allocation2 + $0x1] sm:$0xff] %vm1816_vm3, %v1736_v7  ;;  %vm1699_vm10 = vcmp.gt.f32.partialorder %v7936_v5, 0.0  ;;  %v1719_v11 = vmul.f32 0.2, %v7936_v5  ;;  %vm1759_vm11 = vcmp.gt.f32.partialorder %v8024_v9, 0.0 }
 0x158   :  { %v1779_v12 = vmul.f32 0.2, %v8024_v9  ;;  %v1796_v13 = vsel %vm1756_vm9, %v1597_v4, %v1776_v8  ;;  %vm1697_vm12 = vcmp.gt.f32.partialorder %v788_v10, 0.0  ;;  %v1717_v14 = vmul.f32 0.2, %v788_v10  ;;  %v1600_v15 = vpop.f32.mrb[3].mxu1 }
 0x159   :  { %1879 = vst.msk [vmem:[#allocation2 + $0xa3] sm:$0xff] %vm1816_vm3, %v1796_v13  ;;  %v1739_v16 = vsel %vm1699_vm10, %v7936_v5, %v1719_v11  ;;  %vm1757_vm13 = vcmp.gt.f32.partialorder %v1600_v15, 0.0  ;;  %v1777_v18 = vmul.f32 0.2, %v1600_v15 }
 0x15a   :  { %v1799_v17 = vsel %vm1759_vm11, %v8024_v9, %v1779_v12  ;;  %1862 = vst.msk [vmem:[#allocation2 + $0x19] sm:$0xff] %vm1816_vm3, %v1739_v16  ;;  %v1737_v19 = vsel %vm1697_vm12, %v788_v10, %v1717_v14  ;;  %v7939_v20 = vpop.f32.mrb[4].mxu0 }
 0x15b   :  { %1882 = vst.msk [vmem:[#allocation2 + $0xbb] sm:$0xff] %vm1816_vm3, %v1799_v17  ;;  %1860 = vst.msk [vmem:[#allocation2 + $0x9] sm:$0xff] %vm1816_vm3, %v1737_v19  ;;  %v1797_v21 = vsel %vm1757_vm13, %v1600_v15, %v1777_v18  ;;  %vm1702_vm14 = vcmp.gt.f32.partialorder %v7939_v20, 0.0  ;;  %v1722_v22 = vmul.f32 0.2, %v7939_v20  ;;  %v8027_v23 = vpop.f32.mrb[4].mxu1 }
 0x15c   :  { %v801_v24 = vpop.f32.mrb[5].mxu0  ;;  %1880 = vst.msk [vmem:[#allocation2 + $0xab] sm:$0xff] %vm1816_vm3, %v1797_v21  ;;  %vm1762_vm15 = vcmp.gt.f32.partialorder %v8027_v23, 0.0  ;;  %v1782_v25 = vmul.f32 0.2, %v8027_v23  ;;  %v1613_v29 = vpop.f32.mrb[5].mxu1 }
 0x15d   :  { %vm1700_vm1 = vcmp.gt.f32.partialorder %v801_v24, 0.0  ;;  %v1720_v26 = vmul.f32 0.2, %v801_v24  ;;  %v1742_v27 = vsel %vm1702_vm14, %v7939_v20, %v1722_v22  ;;  %v7940_v30 = vpop.f32.mrb[6].mxu0  ;;  %vm1760_vm5 = vcmp.gt.f32.partialorder %v1613_v29, 0.0  ;;  %v8028_v34 = vpop.f32.mrb[6].mxu1 }
 0x15e   :  { %1865 = vst.msk [vmem:[#allocation2 + $0x31] sm:$0xff] %vm1816_vm3, %v1742_v27  ;;  %v1802_v44 = vsel %vm1762_vm15, %v8027_v23, %v1782_v25  ;;  %v1780_v33 = vmul.f32 0.2, %v1613_v29  ;;  %v804_v35 = vpop.f32.mrb[7].mxu0  ;;  %vm1703_vm6 = vcmp.gt.f32.partialorder %v7940_v30, 0.0  ;;  %vm1763_vm7 = vcmp.gt.f32.partialorder %v8028_v34, 0.0 }
 0x15f   :  { %v1740_v32 = vsel %vm1700_vm1, %v801_v24, %v1720_v26  ;;  %1885 = vst.msk [vmem:[#allocation2 + $0xd3] sm:$0xff] %vm1816_vm3, %v1802_v44  ;;  %v1723_v36 = vmul.f32 0.2, %v7940_v30  ;;  %v1783_v37 = vmul.f32 0.2, %v8028_v34  ;;  %vm1701_vm8 = vcmp.gt.f32.partialorder %v804_v35, 0.0 }
 0x160   :  { %1863 = vst.msk [vmem:[#allocation2 + $0x21] sm:$0xff] %vm1816_vm3, %v1740_v32  ;;  %v1800_v38 = vsel %vm1760_vm5, %v1613_v29, %v1780_v33  ;;  %v1721_v39 = vmul.f32 0.2, %v804_v35  ;;  %v1616_v40 = vpop.f32.mrb[7].mxu1 }
 0x161   :  { %1883 = vst.msk [vmem:[#allocation2 + $0xc3] sm:$0xff] %vm1816_vm3, %v1800_v38  ;;  %v1743_v41 = vsel %vm1703_vm6, %v7940_v30, %v1723_v36  ;;  %v1803_v42 = vsel %vm1763_vm7, %v8028_v34, %v1783_v37  ;;  %vm1761_vm9 = vcmp.gt.f32.partialorder %v1616_v40, 0.0  ;;  %v1781_v43 = vmul.f32 0.2, %v1616_v40  ;;  %v1927_v45 = vld [vmem:[#allocation2 + $0x11] ss:$2 sm:$0xff] }
 0x162   :  { %1866 = vst.msk [vmem:[#allocation2 + $0x39] sm:$0xff] %vm1816_vm3, %v1743_v41  ;;  %1886 = vst.msk [vmem:[#allocation2 + $0xdb] sm:$0xff] %vm1816_vm3, %v1803_v42  ;;  %v1741_v46 = vsel %vm1701_vm8, %v804_v35, %v1721_v39  ;;  %v7943_v47 = vpop.f32.mrb[8].mxu0  ;;  %v1925_v48 = vld [vmem:[#allocation2 + $0x1] ss:$2 sm:$0xff] }
 0x163   :  { %v2418_v49 = vld [vmem:[#allocation2 + $0xb3] ss:$2 sm:$0xff]  ;;  %1864 = vst.msk [vmem:[#allocation2 + $0x29] sm:$0xff] %vm1816_vm3, %v1741_v46  ;;  %v1801_v51 = vsel %vm1761_vm9, %v1616_v40, %v1781_v43  ;;  %vm1706_vm10 = vcmp.gt.f32.partialorder %v7943_v47, 0.0  ;;  %v1726_v52 = vmul.f32 0.2, %v7943_v47  ;;  %v1944_v55 = vpack.c.bf16 %v1927_v45, %v1925_v48 }
 0x164   :  { %v8031_v53 = vpop.f32.mrb[8].mxu1  ;;  %v817_v54 = vpop.f32.mrb[9].mxu0  ;;  %1884 = vst.msk [vmem:[#allocation2 + $0xcb] sm:$0xff] %vm1816_vm3, %v1801_v51  ;;  %v2416_v60 = vld [vmem:[#allocation2 + $0xa3] ss:$2 sm:$0xff] }
 0x165   :  { %vm1766_vm11 = vcmp.gt.f32.partialorder %v8031_v53, 0.0  ;;  %v1786_v56 = vmul.f32 0.2, %v8031_v53  ;;  %vm1704_vm12 = vcmp.gt.f32.partialorder %v817_v54, 0.0  ;;  %v1724_v57 = vmul.f32 0.2, %v817_v54  ;;  %8044 = vmatmul.mubr.msk.bf16.vlgmr.msra.gmra.mrb[20].mxu0 %vm1816_vm3, %v1944_v55 }
 0x166   :  { %v1746_v58 = vsel %vm1706_vm10, %v7943_v47, %v1726_v52  ;;  %v1629_v59 = vpop.f32.mrb[9].mxu1  ;;  %v7944_v61 = vpop.f32.mrb[10].mxu0  ;;  %8064 = vmatpush3.bf16.msra.mxu0 %v2059_v50  ;;  %8047 = vmatprep.mubr.msk.bf16.mxu0 %vm9473_vm4, %v9472_v28  ;;  %v2435_v3 = vpack.c.bf16 %v2418_v49, %v2416_v60 }
 0x167   :  { %1869 = vst.msk [vmem:[#allocation2 + $0x51] sm:$0xff] %vm1816_vm3, %v1746_v58  ;;  %v1806_v62 = vsel %vm1766_vm11, %v8031_v53, %v1786_v56  ;;  %v1744_v63 = vsel %vm1704_vm12, %v817_v54, %v1724_v57  ;;  %vm1764_vm13 = vcmp.gt.f32.partialorder %v1629_v59, 0.0  ;;  %v1784_v0 = vmul.f32 0.2, %v1629_v59  ;;  %v8032_v1 = vpop.f32.mrb[10].mxu1  ;;  %v820_v2 = vpop.f32.mrb[11].mxu0  ;;  %8085 = vmatprep.subr.bf16.mxu0 %v9472_v28 }
 0x168   :  { %1889 = vst.msk [vmem:[#allocation2 + $0xf3] sm:$0xff] %vm1816_vm3, %v1806_v62  ;;  %1867 = vst.msk [vmem:[#allocation2 + $0x41] sm:$0xff] %vm1816_vm3, %v1744_v63  ;;  %vm1707_vm14 = vcmp.gt.f32.partialorder %v7944_v61, 0.0  ;;  %v1727_v4 = vmul.f32 0.2, %v7944_v61  ;;  %vm1767_vm15 = vcmp.gt.f32.partialorder %v8032_v1, 0.0  ;;  %8132 = vmatmul.mubr.msk.bf16.vlgmr.msra.gmra.mrb[20].mxu1 %vm1816_vm3, %v2435_v3 }
 0x169   :  { %v1632_v5 = vpop.f32.mrb[11].mxu1  ;;  %v1804_v6 = vsel %vm1764_vm13, %v1629_v59, %v1784_v0  ;;  %v1787_v7 = vmul.f32 0.2, %v8032_v1  ;;  %vm1705_vm1 = vcmp.gt.f32.partialorder %v820_v2, 0.0  ;;  %v1725_v8 = vmul.f32 0.2, %v820_v2  ;;  %8152 = vmatpush3.bf16.msra.mxu1 %v2059_v50  ;;  %8135 = vmatprep.mubr.msk.bf16.mxu1 %vm9473_vm4, %v9472_v28 }
 0x16a   :  { %1887 = vst.msk [vmem:[#allocation2 + $0xe3] sm:$0xff] %vm1816_vm3, %v1804_v6  ;;  %v1747_v9 = vsel %vm1707_vm14, %v7944_v61, %v1727_v4  ;;  %vm1765_vm5 = vcmp.gt.f32.partialorder %v1632_v5, 0.0  ;;  %v1785_v10 = vmul.f32 0.2, %v1632_v5  ;;  %v1931_v11 = vld [vmem:[#allocation2 + $0x31] ss:$2 sm:$0xff]  ;;  %8173 = vmatprep.subr.bf16.mxu1 %v9472_v28 }
 0x16b   :  { %1870 = vst.msk [vmem:[#allocation2 + $0x59] sm:$0xff] %vm1816_vm3, %v1747_v9  ;;  %v1807_v12 = vsel %vm1767_vm15, %v8032_v1, %v1787_v7  ;;  %v1745_v13 = vsel %vm1705_vm1, %v820_v2, %v1725_v8  ;;  %v7947_v14 = vpop.f32.mrb[12].mxu0  ;;  %v1929_v15 = vld [vmem:[#allocation2 + $0x21] ss:$2 sm:$0xff]  ;;  %v8035_v19 = vpop.f32.mrb[12].mxu1 }
 0x16c   :  { %v2422_v16 = vld [vmem:[#allocation2 + $0xd3] ss:$2 sm:$0xff]  ;;  %1890 = vst.msk [vmem:[#allocation2 + $0xfb] sm:$0xff] %vm1816_vm3, %v1807_v12  ;;  %1868 = vst.msk [vmem:[#allocation2 + $0x49] sm:$0xff] %vm1816_vm3, %v1745_v13  ;;  %v1805_v17 = vsel %vm1765_vm5, %v1632_v5, %v1785_v10  ;;  %vm1710_vm6 = vcmp.gt.f32.partialorder %v7947_v14, 0.0  ;;  %v833_v20 = vpop.f32.mrb[13].mxu0  ;;  %v1945_v21 = vpack.c.bf16 %v1931_v11, %v1929_v15 }
 0x16d   :  { %v1730_v18 = vmul.f32 0.2, %v7947_v14  ;;  %1888 = vst.msk [vmem:[#allocation2 + $0xeb] sm:$0xff] %vm1816_vm3, %v1805_v17  ;;  %vm1770_vm7 = vcmp.gt.f32.partialorder %v8035_v19, 0.0  ;;  %v1790_v22 = vmul.f32 0.2, %v8035_v19 }
 0x16e   :  { %vm1708_vm8 = vcmp.gt.f32.partialorder %v833_v20, 0.0  ;;  %v1728_v23 = vmul.f32 0.2, %v833_v20  ;;  %v1645_v25 = vpop.f32.mrb[13].mxu1  ;;  %8048 = vmatmul.mubr.msk.bf16.gmra.mrb[24].mxu0 %vm1816_vm3, %v1945_v21  ;;  %v2420_v26 = vld [vmem:[#allocation2 + $0xc3] ss:$2 sm:$0xff] }
 0x16f   :  { %v1750_v24 = vsel %vm1710_vm6, %v7947_v14, %v1730_v18  ;;  %v7948_v27 = vpop.f32.mrb[14].mxu0  ;;  %v1810_v29 = vsel %vm1770_vm7, %v8035_v19, %v1790_v22  ;;  %vm1768_vm9 = vcmp.gt.f32.partialorder %v1645_v25, 0.0  ;;  %v1788_v31 = vmul.f32 0.2, %v1645_v25  ;;  %v8036_v44 = vpop.f32.mrb[14].mxu1  ;;  %8051 = vmatprep.mubr.msk.bf16.mxu0 %vm9473_vm4, %v9472_v28 }
 0x170   :  { %1873 = vst.msk [vmem:[#allocation2 + $0x71] sm:$0xff] %vm1816_vm3, %v1750_v24  ;;  %v1748_v30 = vsel %vm1708_vm8, %v833_v20, %v1728_v23  ;;  %v836_v32 = vpop.f32.mrb[15].mxu0  ;;  %1893 = vst.msk [vmem:[#allocation2 + $0x113] sm:$0xff] %vm1816_vm3, %v1810_v29  ;;  %v2436_v33 = vpack.c.bf16 %v2422_v16, %v2420_v26  ;;  %vm1711_vm10 = vcmp.gt.f32.partialorder %v7948_v27, 0.0  ;;  %v1731_v34 = vmul.f32 0.2, %v7948_v27 }
 0x171   :  { %1871 = vst.msk [vmem:[#allocation2 + $0x61] sm:$0xff] %vm1816_vm3, %v1748_v30  ;;  %vm1771_vm11 = vcmp.gt.f32.partialorder %v8036_v44, 0.0  ;;  %v1648_v35 = vpop.f32.mrb[15].mxu1  ;;  %v1808_v36 = vsel %vm1768_vm9, %v1645_v25, %v1788_v31  ;;  %v1791_v37 = vmul.f32 0.2, %v8036_v44  ;;  %vm1709_vm12 = vcmp.gt.f32.partialorder %v836_v32, 0.0 }
 0x172   :  { %v1729_v38 = vmul.f32 0.2, %v836_v32  ;;  %1891 = vst.msk [vmem:[#allocation2 + $0x103] sm:$0xff] %vm1816_vm3, %v1808_v36  ;;  %8136 = vmatmul.mubr.msk.bf16.gmra.mrb[24].mxu1 %vm1816_vm3, %v2436_v33  ;;  %v1751_v39 = vsel %vm1711_vm10, %v7948_v27, %v1731_v34  ;;  %vm1769_vm13 = vcmp.gt.f32.partialorder %v1648_v35, 0.0  ;;  %v1789_v40 = vmul.f32 0.2, %v1648_v35 }
 0x173   :  { %v1935_v41 = vld [vmem:[#allocation2 + $0x51] ss:$2 sm:$0xff]  ;;  %1874 = vst.msk [vmem:[#allocation2 + $0x79] sm:$0xff] %vm1816_vm3, %v1751_v39  ;;  %v1811_v42 = vsel %vm1771_vm11, %v8036_v44, %v1791_v37  ;;  %v7951_v45 = vpop.f32.mrb[16].mxu0  ;;  %8139 = vmatprep.mubr.msk.bf16.mxu1 %vm9473_vm4, %v9472_v28  ;;  %v1933_v46 = vld [vmem:[#allocation2 + $0x41] ss:$2 sm:$0xff] }
 0x174   :  { %v1749_v43 = vsel %vm1709_vm12, %v836_v32, %v1729_v38  ;;  %v2426_v47 = vld [vmem:[#allocation2 + $0xf3] ss:$2 sm:$0xff]  ;;  %1894 = vst.msk [vmem:[#allocation2 + $0x11b] sm:$0xff] %vm1816_vm3, %v1811_v42  ;;  %v1809_v48 = vsel %vm1769_vm13, %v1648_v35, %v1789_v40  ;;  %vm1714_vm14 = vcmp.gt.f32.partialorder %v7951_v45, 0.0  ;;  %v1734_v49 = vmul.f32 0.2, %v7951_v45 }
 0x175   :  { %1872 = vst.msk [vmem:[#allocation2 + $0x69] sm:$0xff] %vm1816_vm3, %v1749_v43  ;;  %v8039_v50 = vpop.f32.mrb[16].mxu1  ;;  %v849_v51 = vpop.f32.mrb[17].mxu0  ;;  %v1946_v52 = vpack.c.bf16 %v1935_v41, %v1933_v46  ;;  %1892 = vst.msk [vmem:[#allocation2 + $0x10b] sm:$0xff] %vm1816_vm3, %v1809_v48  ;;  %v2424_v57 = vld [vmem:[#allocation2 + $0xe3] ss:$2 sm:$0xff] }
 0x176   :  { %vm1774_vm15 = vcmp.gt.f32.partialorder %v8039_v50, 0.0  ;;  %v1794_v53 = vmul.f32 0.2, %v8039_v50  ;;  %vm1712_vm1 = vcmp.gt.f32.partialorder %v849_v51, 0.0  ;;  %v1732_v54 = vmul.f32 0.2, %v849_v51 }
 0x177   :  { %v1754_v55 = vsel %vm1714_vm14, %v7951_v45, %v1734_v49  ;;  %v1661_v56 = vpop.f32.mrb[17].mxu1  ;;  %8052 = vmatmul.mubr.msk.bf16.gmra.mrb[28].mxu0 %vm1816_vm3, %v1946_v52  ;;  %v7952_v58 = vpop.f32.mrb[18].mxu0  ;;  %v2437_v0 = vpack.c.bf16 %v2426_v47, %v2424_v57  ;;  %v1899_v23 = vld [vmem:[#allocation2] ss:$2 sm:$0xff]  ;;  %v1901_v24 = vld [vmem:[#allocation2 + $0x10] ss:$2 sm:$0xff] }
 0x178   :  { %1877 = vst.msk [vmem:[#allocation2 + $0x91] sm:$0xff] %vm1816_vm3, %v1754_v55  ;;  %v1814_v59 = vsel %vm1774_vm15, %v8039_v50, %v1794_v53  ;;  %v1752_v60 = vsel %vm1712_vm1, %v849_v51, %v1732_v54  ;;  %vm1772_vm5 = vcmp.gt.f32.partialorder %v1661_v56, 0.0  ;;  %v1792_v61 = vmul.f32 0.2, %v1661_v56  ;;  %v8040_v62 = vpop.f32.mrb[18].mxu1  ;;  %v852_v63 = vpop.f32.mrb[19].mxu0  ;;  %8055 = vmatprep.mubr.msk.bf16.mxu0 %vm9473_vm4, %v9472_v28 }
 0x179   :  { %1897 = vst.msk [vmem:[#allocation2 + $0x133] sm:$0xff] %vm1816_vm3, %v1814_v59  ;;  %1875 = vst.msk [vmem:[#allocation2 + $0x81] sm:$0xff] %vm1816_vm3, %v1752_v60  ;;  %vm1715_vm6 = vcmp.gt.f32.partialorder %v7952_v58, 0.0  ;;  %v1735_v1 = vmul.f32 0.2, %v7952_v58  ;;  %vm1775_vm7 = vcmp.gt.f32.partialorder %v8040_v62, 0.0  ;;  %v1918_v26 = vpack.c.bf16 %v1901_v24, %v1899_v23 }
 0x17a   :  { %v1664_v2 = vpop.f32.mrb[19].mxu1  ;;  %v1812_v3 = vsel %vm1772_vm5, %v1661_v56, %v1792_v61  ;;  %v1795_v4 = vmul.f32 0.2, %v8040_v62  ;;  %vm1713_vm8 = vcmp.gt.f32.partialorder %v852_v63, 0.0  ;;  %v1733_v5 = vmul.f32 0.2, %v852_v63  ;;  %8140 = vmatmul.mubr.msk.bf16.gmra.mrb[28].mxu1 %vm1816_vm3, %v2437_v0 }
 0x17b   :  { %1895 = vst.msk [vmem:[#allocation2 + $0x123] sm:$0xff] %vm1816_vm3, %v1812_v3  ;;  %v1755_v6 = vsel %vm1715_vm6, %v7952_v58, %v1735_v1  ;;  %vm1773_vm9 = vcmp.gt.f32.partialorder %v1664_v2, 0.0  ;;  %v1793_v7 = vmul.f32 0.2, %v1664_v2  ;;  %v1939_v8 = vld [vmem:[#allocation2 + $0x71] ss:$2 sm:$0xff]  ;;  %8143 = vmatprep.mubr.msk.bf16.mxu1 %vm9473_vm4, %v9472_v28 }
 0x17c   :  { %1878 = vst.msk [vmem:[#allocation2 + $0x99] sm:$0xff] %vm1816_vm3, %v1755_v6  ;;  %v1815_v9 = vsel %vm1775_vm7, %v8040_v62, %v1795_v4  ;;  %v1753_v10 = vsel %vm1713_vm8, %v852_v63, %v1733_v5  ;;  %v1937_v11 = vld [vmem:[#allocation2 + $0x61] ss:$2 sm:$0xff]  ;;  %v2391_v29 = vld [vmem:[#allocation2 + $0xa2] ss:$2 sm:$0xff] }
 0x17d   :  { %v2430_v12 = vld [vmem:[#allocation2 + $0x113] ss:$2 sm:$0xff]  ;;  %1898 = vst.msk [vmem:[#allocation2 + $0x13b] sm:$0xff] %vm1816_vm3, %v1815_v9  ;;  %1876 = vst.msk [vmem:[#allocation2 + $0x89] sm:$0xff] %vm1816_vm3, %v1753_v10  ;;  %v1813_v13 = vsel %vm1773_vm9, %v1664_v2, %v1793_v7  ;;  %v1947_v14 = vpack.c.bf16 %v1939_v8, %v1937_v11  ;;  %v2428_v15 = vld [vmem:[#allocation2 + $0x103] ss:$2 sm:$0xff] }
 0x17e   :  { %1896 = vst.msk [vmem:[#allocation2 + $0x12b] sm:$0xff] %vm1816_vm3, %v1813_v13  ;;  %v2438_v16 = vpack.c.bf16 %v2430_v12, %v2428_v15  ;;  %v7071_v25 = vld [vmem:[%s11573_s2 + $0x8] sm:$0xf]  ;;  %v2393_v30 = vld [vmem:[#allocation2 + $0xb2] ss:$2 sm:$0xff] }
 0x17f   :  { %8056 = vmatmul.mubr.msk.bf16.gmra.mrb[32].mxu0 %vm1816_vm3, %v1947_v14  ;;  %v2177_v27 = vsel %vm1966_vm2, %v7071_v25, 0  ;;  %v2410_v31 = vpack.c.bf16 %v2393_v30, %v2391_v29  ;;  %v1903_v44 = vld [vmem:[#allocation2 + $0x20] ss:$2 sm:$0xff]  ;;  %v1905_v32 = vld [vmem:[#allocation2 + $0x30] ss:$2 sm:$0xff] }
 0x180   :  { %8059 = vmatprep.mubr.msk.bf16.mxu0 %vm9473_vm4, %v9472_v28  ;;  %v1919_v33 = vpack.c.bf16 %v1905_v32, %v1903_v44  ;;  %v2395_v34 = vld [vmem:[#allocation2 + $0xc2] ss:$2 sm:$0xff]  ;;  %v2397_v35 = vld [vmem:[#allocation2 + $0xd2] ss:$2 sm:$0xff]  ;;  %v2265_v24 = vld [vmem:[#allocation2 + $0x13] ss:$2 sm:$0xff] }
 0x181   :  { %v2411_v36 = vpack.c.bf16 %v2397_v35, %v2395_v34  ;;  %v1907_v37 = vld [vmem:[#allocation2 + $0x40] ss:$2 sm:$0xff]  ;;  %v1909_v38 = vld [vmem:[#allocation2 + $0x50] ss:$2 sm:$0xff]  ;;  %v2263_v25 = vld [vmem:[#allocation2 + $0x3] ss:$2 sm:$0xff] }
 0x182   :  { %8144 = vmatmul.mubr.msk.bf16.gmra.mrb[32].mxu1 %vm1816_vm3, %v2438_v16  ;;  %v1920_v39 = vpack.c.bf16 %v1909_v38, %v1907_v37  ;;  %v2399_v40 = vld [vmem:[#allocation2 + $0xe2] ss:$2 sm:$0xff]  ;;  %v2401_v41 = vld [vmem:[#allocation2 + $0xf2] ss:$2 sm:$0xff]  ;;  %v2740_v29 = vld [vmem:[#allocation2 + $0xa5] ss:$2 sm:$0xff] }
 0x183   :  { %v1943_v17 = vld [vmem:[#allocation2 + $0x91] ss:$2 sm:$0xff]  ;;  %8147 = vmatprep.mubr.msk.bf16.mxu1 %vm9473_vm4, %v9472_v28  ;;  %v2412_v42 = vpack.c.bf16 %v2401_v41, %v2399_v40  ;;  %v1911_v43 = vld [vmem:[#allocation2 + $0x60] ss:$2 sm:$0xff]  ;;  %v1913_v45 = vld [vmem:[#allocation2 + $0x70] ss:$2 sm:$0xff] }
 0x184   :  { %v1941_v18 = vld [vmem:[#allocation2 + $0x81] ss:$2 sm:$0xff]  ;;  %v1921_v46 = vpack.c.bf16 %v1913_v45, %v1911_v43  ;;  %v2403_v47 = vld [vmem:[#allocation2 + $0x102] ss:$2 sm:$0xff]  ;;  %v2405_v48 = vld [vmem:[#allocation2 + $0x112] ss:$2 sm:$0xff] }
 0x185   :  { %v2434_v19 = vld [vmem:[#allocation2 + $0x133] ss:$2 sm:$0xff]  ;;  %v1948_v20 = vpack.c.bf16 %v1943_v17, %v1941_v18  ;;  %v2432_v21 = vld [vmem:[#allocation2 + $0x123] ss:$2 sm:$0xff]  ;;  %v2413_v49 = vpack.c.bf16 %v2405_v48, %v2403_v47  ;;  %v1915_v50 = vld [vmem:[#allocation2 + $0x80] ss:$2 sm:$0xff] }
 0x186   :  { %v2439_v22 = vpack.c.bf16 %v2434_v19, %v2432_v21  ;;  %v1917_v51 = vld [vmem:[#allocation2 + $0x90] ss:$2 sm:$0xff]  ;;  %v7077_v58 = vld [vmem:[%s11573_s2 + $0xc] sm:$0xf] }
 0x187   :  { %8060 = vmatmul.mubr.msk.bf16.gmra.mrb[36].mxu0 %vm1816_vm3, %v1948_v20  ;;  %v1922_v52 = vpack.c.bf16 %v1917_v51, %v1915_v50  ;;  %v2407_v53 = vld [vmem:[#allocation2 + $0x122] ss:$2 sm:$0xff]  ;;  %v2409_v54 = vld [vmem:[#allocation2 + $0x132] ss:$2 sm:$0xff]  ;;  %v2305_v60 = vsel %vm1966_vm2, %v7077_v58, 0  ;;  %vm2862_vm2 = vcmask 130048  }
 0x188   :  { %8065 = vmatprep.mubr.msk.bf16.mxu0 %vm9473_vm4, %v9472_v28  ;;  %v2414_v55 = vpack.c.bf16 %v2409_v54, %v2407_v53  ;;  %v2135_v56 = vld [vmem:[#allocation2 + $0x2] ss:$2 sm:$0xff]  ;;  %v2137_v57 = vld [vmem:[#allocation2 + $0x12] ss:$2 sm:$0xff]  ;;  %v2267_v44 = vld [vmem:[#allocation2 + $0x23] ss:$2 sm:$0xff] }
 0x189   :  { %v2154_v59 = vpack.c.bf16 %v2137_v57, %v2135_v56  ;;  %v2617_v61 = vld [vmem:[#allocation2 + $0xa4] ss:$2 sm:$0xff]  ;;  %v2619_v62 = vld [vmem:[#allocation2 + $0xb4] ss:$2 sm:$0xff]  ;;  %v2744_v34 = vld [vmem:[#allocation2 + $0xc5] ss:$2 sm:$0xff] }
 0x18a   :  { %8148 = vmatmul.mubr.msk.bf16.gmra.mrb[36].mxu1 %vm1816_vm3, %v2439_v22  ;;  %v2636_v63 = vpack.c.bf16 %v2619_v62, %v2617_v61  ;;  %v2139_v0 = vld [vmem:[#allocation2 + $0x22] ss:$2 sm:$0xff]  ;;  %v2141_v1 = vld [vmem:[#allocation2 + $0x32] ss:$2 sm:$0xff]  ;;  %v2271_v37 = vld [vmem:[#allocation2 + $0x43] ss:$2 sm:$0xff] }
 0x18b   :  { %8153 = vmatprep.mubr.msk.bf16.mxu1 %vm9473_vm4, %v9472_v28  ;;  %v2155_v2 = vpack.c.bf16 %v2141_v1, %v2139_v0  ;;  %v2621_v3 = vld [vmem:[#allocation2 + $0xc4] ss:$2 sm:$0xff]  ;;  %v2623_v4 = vld [vmem:[#allocation2 + $0xd4] ss:$2 sm:$0xff]  ;;  %v2748_v40 = vld [vmem:[#allocation2 + $0xe5] ss:$2 sm:$0xff] }
 0x18c   :  { %v2637_v5 = vpack.c.bf16 %v2623_v4, %v2621_v3  ;;  %v2143_v6 = vld [vmem:[#allocation2 + $0x42] ss:$2 sm:$0xff]  ;;  %v2145_v7 = vld [vmem:[#allocation2 + $0x52] ss:$2 sm:$0xff]  ;;  %v2275_v43 = vld [vmem:[#allocation2 + $0x63] ss:$2 sm:$0xff] }
 0x18d   :  { %v2156_v8 = vpack.c.bf16 %v2145_v7, %v2143_v6  ;;  %v2625_v9 = vld [vmem:[#allocation2 + $0xe4] ss:$2 sm:$0xff]  ;;  %v2627_v10 = vld [vmem:[#allocation2 + $0xf4] ss:$2 sm:$0xff]  ;;  %v2752_v47 = vld [vmem:[#allocation2 + $0x105] ss:$2 sm:$0xff] }
 0x18e   :  { %v2638_v11 = vpack.c.bf16 %v2627_v10, %v2625_v9  ;;  %v2147_v12 = vld [vmem:[#allocation2 + $0x62] ss:$2 sm:$0xff]  ;;  %v2149_v13 = vld [vmem:[#allocation2 + $0x72] ss:$2 sm:$0xff]  ;;  %v2281_v50 = vld [vmem:[#allocation2 + $0x93] ss:$2 sm:$0xff] }
 0x18f   :  { %8066 = vmatmul.mubr.msk.bf16.vlgmr.msra.gmra.mrb[20].mxu0 %vm1816_vm3, %v1918_v26  ;;  %v2157_v14 = vpack.c.bf16 %v2149_v13, %v2147_v12  ;;  %v2629_v15 = vld [vmem:[#allocation2 + $0x104] ss:$2 sm:$0xff]  ;;  %v2631_v16 = vld [vmem:[#allocation2 + $0x114] ss:$2 sm:$0xff]  ;;  %v2282_v26 = vpack.c.bf16 %v2265_v24, %v2263_v25  ;;  %v2758_v53 = vld [vmem:[#allocation2 + $0x135] ss:$2 sm:$0xff] }
 0x190   :  { %8086 = vmatpush3.bf16.msra.mxu0 %v2177_v27  ;;  %8069 = vmatprep.mubr.msk.bf16.mxu0 %vm9473_vm4, %v9472_v28  ;;  %v2639_v17 = vpack.c.bf16 %v2631_v16, %v2629_v15  ;;  %v2151_v18 = vld [vmem:[#allocation2 + $0x82] ss:$2 sm:$0xff]  ;;  %v2153_v19 = vld [vmem:[#allocation2 + $0x92] ss:$2 sm:$0xff]  ;;  %3106 = vst.msk [vmem:[#allocation3] sm:$0xff] %vm2862_vm2, %v9472_v28  ;;  %3107 = vst.msk [vmem:[#allocation3 + $0x8] sm:$0xff] %vm2862_vm2, %v9472_v28 }
 0x191   :  { %8107 = vmatprep.subr.bf16.mxu0 %v9472_v28  ;;  %v2158_v20 = vpack.c.bf16 %v2153_v19, %v2151_v18  ;;  %v2633_v21 = vld [vmem:[#allocation2 + $0x124] ss:$2 sm:$0xff]  ;;  %v2635_v22 = vld [vmem:[#allocation2 + $0x134] ss:$2 sm:$0xff]  ;;  %3108 = vst.msk [vmem:[#allocation3 + $0x10] sm:$0xff] %vm2862_vm2, %v9472_v28  ;;  %3109 = vst.msk [vmem:[#allocation3 + $0x18] sm:$0xff] %vm2862_vm2, %v9472_v28 }
 0x192   :  { %8154 = vmatmul.mubr.msk.bf16.vlgmr.msra.gmra.mrb[20].mxu1 %vm1816_vm3, %v2410_v31  ;;  %v2640_v23 = vpack.c.bf16 %v2635_v22, %v2633_v21  ;;  %v2269_v31 = vld [vmem:[#allocation2 + $0x33] ss:$2 sm:$0xff]  ;;  %3110 = vst.msk [vmem:[#allocation3 + $0x20] sm:$0xff] %vm2862_vm2, %v9472_v28  ;;  %3111 = vst.msk [vmem:[#allocation3 + $0x28] sm:$0xff] %vm2862_vm2, %v9472_v28 }
 0x193   :  { %8174 = vmatpush3.bf16.msra.mxu1 %v2177_v27  ;;  %8157 = vmatprep.mubr.msk.bf16.mxu1 %vm9473_vm4, %v9472_v28  ;;  %v2742_v27 = vld [vmem:[#allocation2 + $0xb5] ss:$2 sm:$0xff]  ;;  %v2283_v32 = vpack.c.bf16 %v2269_v31, %v2267_v44  ;;  %3112 = vst.msk [vmem:[#allocation3 + $0x30] sm:$0xff] %vm2862_vm2, %v9472_v28  ;;  %3113 = vst.msk [vmem:[#allocation3 + $0x38] sm:$0xff] %vm2862_vm2, %v9472_v28 }
 0x194   :  { %8195 = vmatprep.subr.bf16.mxu1 %v9472_v28  ;;  %v2759_v30 = vpack.c.bf16 %v2742_v27, %v2740_v29  ;;  %3114 = vst.msk [vmem:[#allocation3 + $0x40] sm:$0xff] %vm2862_vm2, %v9472_v28  ;;  %3115 = vst.msk [vmem:[#allocation3 + $0x48] sm:$0xff] %vm2862_vm2, %v9472_v28 }
 0x195   :  { %3116 = vst.msk [vmem:[#allocation3 + $0x50] sm:$0xff] %vm2862_vm2, %v9472_v28  ;;  %3117 = vst.msk [vmem:[#allocation3 + $0x58] sm:$0xff] %vm2862_vm2, %v9472_v28 }
 0x196   :  { %3118 = vst.msk [vmem:[#allocation3 + $0x60] sm:$0xff] %vm2862_vm2, %v9472_v28  ;;  %3119 = vst.msk [vmem:[#allocation3 + $0x68] sm:$0xff] %vm2862_vm2, %v9472_v28 }
 0x197   :  { %8070 = vmatmul.mubr.msk.bf16.gmra.mrb[24].mxu0 %vm1816_vm3, %v1919_v33  ;;  %v2746_v33 = vld [vmem:[#allocation2 + $0xd5] ss:$2 sm:$0xff]  ;;  %3120 = vst.msk [vmem:[#allocation3 + $0x70] sm:$0xff] %vm2862_vm2, %v9472_v28  ;;  %3121 = vst.msk [vmem:[#allocation3 + $0x78] sm:$0xff] %vm2862_vm2, %v9472_v28 }
 0x198   :  { %8073 = vmatprep.mubr.msk.bf16.mxu0 %vm9473_vm4, %v9472_v28  ;;  %v2760_v35 = vpack.c.bf16 %v2746_v33, %v2744_v34  ;;  %3122 = vst.msk [vmem:[#allocation3 + $0x80] sm:$0xff] %vm2862_vm2, %v9472_v28  ;;  %3123 = vst.msk [vmem:[#allocation3 + $0x88] sm:$0xff] %vm2862_vm2, %v9472_v28 }
 0x199   :  { %3124 = vst.msk [vmem:[#allocation3 + $0x90] sm:$0xff] %vm2862_vm2, %v9472_v28  ;;  %3125 = vst.msk [vmem:[#allocation3 + $0x98] sm:$0xff] %vm2862_vm2, %v9472_v28 }
 0x19a   :  { %8158 = vmatmul.mubr.msk.bf16.gmra.mrb[24].mxu1 %vm1816_vm3, %v2411_v36  ;;  %v2273_v36 = vld [vmem:[#allocation2 + $0x53] ss:$2 sm:$0xff] }
 0x19b   :  { %8161 = vmatprep.mubr.msk.bf16.mxu1 %vm9473_vm4, %v9472_v28  ;;  %v2284_v38 = vpack.c.bf16 %v2273_v36, %v2271_v37 }
 0x19f   :  { %8074 = vmatmul.mubr.msk.bf16.gmra.mrb[28].mxu0 %vm1816_vm3, %v1920_v39  ;;  %v2750_v39 = vld [vmem:[#allocation2 + $0xf5] ss:$2 sm:$0xff] }
 0x1a0   :  { %8077 = vmatprep.mubr.msk.bf16.mxu0 %vm9473_vm4, %v9472_v28  ;;  %v2761_v41 = vpack.c.bf16 %v2750_v39, %v2748_v40 }
 0x1a2   :  { %8162 = vmatmul.mubr.msk.bf16.gmra.mrb[28].mxu1 %vm1816_vm3, %v2412_v42  ;;  %v2277_v42 = vld [vmem:[#allocation2 + $0x73] ss:$2 sm:$0xff] }
 0x1a3   :  { %8165 = vmatprep.mubr.msk.bf16.mxu1 %vm9473_vm4, %v9472_v28  ;;  %v2285_v45 = vpack.c.bf16 %v2277_v42, %v2275_v43 }
 0x1a7   :  { %8078 = vmatmul.mubr.msk.bf16.gmra.mrb[32].mxu0 %vm1816_vm3, %v1921_v46  ;;  %v2754_v46 = vld [vmem:[#allocation2 + $0x115] ss:$2 sm:$0xff] }
 0x1a8   :  { %8081 = vmatprep.mubr.msk.bf16.mxu0 %vm9473_vm4, %v9472_v28  ;;  %v2762_v48 = vpack.c.bf16 %v2754_v46, %v2752_v47 }
 0x1aa   :  { %8166 = vmatmul.mubr.msk.bf16.gmra.mrb[32].mxu1 %vm1816_vm3, %v2413_v49  ;;  %v2279_v49 = vld [vmem:[#allocation2 + $0x83] ss:$2 sm:$0xff] }
 0x1ab   :  { %8169 = vmatprep.mubr.msk.bf16.mxu1 %vm9473_vm4, %v9472_v28  ;;  %v2286_v51 = vpack.c.bf16 %v2281_v50, %v2279_v49 }
 0x1af   :  { %8082 = vmatmul.mubr.msk.bf16.gmra.mrb[36].mxu0 %vm1816_vm3, %v1922_v52  ;;  %v2756_v52 = vld [vmem:[#allocation2 + $0x125] ss:$2 sm:$0xff] }
 0x1b0   :  { %8087 = vmatprep.mubr.msk.bf16.mxu0 %vm9473_vm4, %v9472_v28  ;;  %v2763_v54 = vpack.c.bf16 %v2758_v53, %v2756_v52 }
 0x1b2   :  { %8170 = vmatmul.mubr.msk.bf16.gmra.mrb[36].mxu1 %vm1816_vm3, %v2414_v55  ;;  %v9332_v55 = vld [vmem:[%s11574_s3 + $0x8] sm:$0xff]  }
 0x1b3   :  { %8175 = vmatprep.mubr.msk.bf16.mxu1 %vm9473_vm4, %v9472_v28 }
 0x1b7   :  { %8088 = vmatmul.mubr.msk.bf16.vlgmr.msra.gmra.mrb[20].mxu0 %vm1816_vm3, %v2154_v59 }
 0x1b8   :  { %8108 = vmatpush3.bf16.msra.mxu0 %v2305_v60  ;;  %8091 = vmatprep.mubr.msk.bf16.mxu0 %vm9473_vm4, %v9472_v28 }
 0x1b9   :  { %8217 = vmatprep.subr.bf16.mxu0 %v9472_v28 }
 0x1ba   :  { %8176 = vmatmul.mubr.msk.bf16.vlgmr.msra.gmra.mrb[20].mxu1 %vm1816_vm3, %v2636_v63 }
 0x1bb   :  { %8196 = vmatpush3.bf16.msra.mxu1 %v2305_v60  ;;  %8179 = vmatprep.mubr.msk.bf16.mxu1 %vm9473_vm4, %v9472_v28 }
 0x1bc   :  { %8273 = vmatprep.subr.bf16.mxu1 %v9472_v28 }
 0x1bf   :  { %8092 = vmatmul.mubr.msk.bf16.gmra.mrb[24].mxu0 %vm1816_vm3, %v2155_v2 }
 0x1c0   :  { %8095 = vmatprep.mubr.msk.bf16.mxu0 %vm9473_vm4, %v9472_v28 }
 0x1c2   :  { %8180 = vmatmul.mubr.msk.bf16.gmra.mrb[24].mxu1 %vm1816_vm3, %v2637_v5 }
 0x1c3   :  { %8183 = vmatprep.mubr.msk.bf16.mxu1 %vm9473_vm4, %v9472_v28 }
 0x1c7   :  { %8096 = vmatmul.mubr.msk.bf16.gmra.mrb[28].mxu0 %vm1816_vm3, %v2156_v8 }
 0x1c8   :  { %8099 = vmatprep.mubr.msk.bf16.mxu0 %vm9473_vm4, %v9472_v28 }
 0x1ca   :  { %8184 = vmatmul.mubr.msk.bf16.gmra.mrb[28].mxu1 %vm1816_vm3, %v2638_v11 }
 0x1cb   :  { %8187 = vmatprep.mubr.msk.bf16.mxu1 %vm9473_vm4, %v9472_v28 }
 0x1cf   :  { %8100 = vmatmul.mubr.msk.bf16.gmra.mrb[32].mxu0 %vm1816_vm3, %v2157_v14 }
 0x1d0   :  { %8103 = vmatprep.mubr.msk.bf16.mxu0 %vm9473_vm4, %v9472_v28 }
 0x1d2   :  { %8188 = vmatmul.mubr.msk.bf16.gmra.mrb[32].mxu1 %vm1816_vm3, %v2639_v17 }
 0x1d3   :  { %8191 = vmatprep.mubr.msk.bf16.mxu1 %vm9473_vm4, %v9472_v28 }
 0x1d7   :  { %8104 = vmatmul.mubr.msk.bf16.gmra.mrb[36].mxu0 %vm1816_vm3, %v2158_v20 }
 0x1d8   :  { %8109 = vmatprep.mubr.msk.bf16.mxu0 %vm9473_vm4, %v9472_v28 }
 0x1da   :  { %8192 = vmatmul.mubr.msk.bf16.gmra.mrb[36].mxu1 %vm1816_vm3, %v2640_v23 }
 0x1db   :  { %8197 = vmatprep.mubr.msk.bf16.mxu1 %vm9473_vm4, %v9472_v28 }
 0x1df   :  { %8110 = vmatmul.mubr.msk.bf16.vlgmr.msra.gmra.mrb[20].mxu0 %vm1816_vm3, %v2282_v26 }
 0x1e0   :  { %8113 = vmatprep.mubr.msk.bf16.mxu0 %vm9473_vm4, %v9472_v28  ;;  %8218 = vmatpush3.bf16.msra.mxu0 %v9332_v55 }
 0x1e1   :  { %8231 = vmatprep.subr.bf16.mxu0 %v9472_v28 }
 0x1e2   :  { %8198 = vmatmul.mubr.msk.bf16.vlgmr.msra.gmra.mrb[20].mxu1 %vm1816_vm3, %v2759_v30 }
 0x1e3   :  { %8201 = vmatprep.mubr.msk.bf16.mxu1 %vm9473_vm4, %v9472_v28  ;;  %8274 = vmatpush3.bf16.msra.mxu1 %v9332_v55 }
 0x1e4   :  { %8287 = vmatprep.subr.bf16.mxu1 %v9472_v28 }
 0x1e7   :  { %8114 = vmatmul.mubr.msk.bf16.gmra.mrb[24].mxu0 %vm1816_vm3, %v2283_v32 }
 0x1e8   :  { %8117 = vmatprep.mubr.msk.bf16.mxu0 %vm9473_vm4, %v9472_v28 }
 0x1ea   :  { %8202 = vmatmul.mubr.msk.bf16.gmra.mrb[24].mxu1 %vm1816_vm3, %v2760_v35 }
 0x1eb   :  { %8205 = vmatprep.mubr.msk.bf16.mxu1 %vm9473_vm4, %v9472_v28 }
 0x1ef   :  { %8118 = vmatmul.mubr.msk.bf16.gmra.mrb[28].mxu0 %vm1816_vm3, %v2284_v38 }
 0x1f0   :  { %8121 = vmatprep.mubr.msk.bf16.mxu0 %vm9473_vm4, %v9472_v28 }
 0x1f2   :  { %8206 = vmatmul.mubr.msk.bf16.gmra.mrb[28].mxu1 %vm1816_vm3, %v2761_v41 }
 0x1f3   :  { %8209 = vmatprep.mubr.msk.bf16.mxu1 %vm9473_vm4, %v9472_v28 }
 0x1f7   :  { %8122 = vmatmul.mubr.msk.bf16.gmra.mrb[32].mxu0 %vm1816_vm3, %v2285_v45 }
 0x1f8   :  { %8125 = vmatprep.mubr.msk.bf16.mxu0 %vm9473_vm4, %v9472_v28 }
 0x1fa   :  { %8210 = vmatmul.mubr.msk.bf16.gmra.mrb[32].mxu1 %vm1816_vm3, %v2762_v48 }
 0x1fb   :  { %8213 = vmatprep.mubr.msk.bf16.mxu1 %vm9473_vm4, %v9472_v28 }
 0x1ff   :  { %8126 = vmatmul.mubr.msk.bf16.gmra.mrb[36].mxu0 %vm1816_vm3, %v2286_v51 }
 0x200   :  { %8219 = vmatprep.mubr.msk.bf16.mxu0 %vm9473_vm4, %v9472_v28 }
 0x202   :  { %8214 = vmatmul.mubr.msk.bf16.gmra.mrb[36].mxu1 %vm1816_vm3, %v2763_v54  ;;  %vm3126_vm3 = vcmask 125952  }
 0x203   :  { %8275 = vmatprep.mubr.msk.bf16.mxu1 %vm9473_vm4, %v9472_v28  ;;  %3127 = vst.msk [vmem:[#allocation3 + $0xa0] sm:$0xf] %vm3126_vm3, %v9472_v28 }
 0x2b2   :  { %v10464_v56 = vpop.f32.mrb[20].mxu0 }
 0x2b3   :  { %v2888_v57 = vmul.f32 %v10464_v56, %v10464_v56  ;;  %v8111_v58 = vpop.f32.mrb[21].mxu0  ;;  %v2863_v60 = vsel %vm2862_vm2, %v10464_v56, 0.0 }
 0x2b4   :  { %v10468_v59 = vpop.f32.mrb[22].mxu0 }
 0x2b5   :  { %v2864_v61 = vsel %vm2862_vm2, %v10468_v59, 0.0  ;;  %v2889_v62 = vmul.f32 %v10468_v59, %v10468_v59  ;;  %v8112_v63 = vpop.f32.mrb[23].mxu0  ;;  %v10476_v0 = vpop.f32.mrb[20].mxu1  ;;  %v2898_v2 = vsel %vm2862_vm2, %v2888_v57, 0.0 }
 0x2b6   :  { %v2865_v1 = vadd.f32 %v2864_v61, %v2863_v60  ;;  %v2949_v3 = vmul.f32 %v10476_v0, %v10476_v0  ;;  %v8199_v4 = vpop.f32.mrb[21].mxu1  ;;  %v2923_v8 = vsel %vm2862_vm2, %v10476_v0, 0.0 }
 0x2b7   :  { %v2899_v5 = vsel %vm2862_vm2, %v2889_v62, 0.0  ;;  %v10482_v7 = vpop.f32.mrb[22].mxu1 }
 0x2b8   :  { %v2900_v6 = vadd.f32 %v2899_v5, %v2898_v2  ;;  %v2924_v9 = vsel %vm2862_vm2, %v10482_v7, 0.0  ;;  %v2950_v10 = vmul.f32 %v10482_v7, %v10482_v7  ;;  %v8200_v11 = vpop.f32.mrb[23].mxu1  ;;  %v2959_v14 = vsel %vm2862_vm2, %v2949_v3, 0.0 }
 0x2b9   :  { %v2925_v12 = vadd.f32 %v2924_v9, %v2923_v8 }
 0x2ba   :  { %v10490_v13 = vpop.f32.mrb[24].mxu0  ;;  %v2960_v15 = vsel %vm2862_vm2, %v2950_v10, 0.0 }
 0x2bb   :  { %v2866_v16 = vsel %vm2862_vm2, %v10490_v13, 0.0  ;;  %v2890_v17 = vmul.f32 %v10490_v13, %v10490_v13  ;;  %v8115_v18 = vpop.f32.mrb[25].mxu0  ;;  %v2961_v19 = vadd.f32 %v2960_v15, %v2959_v14 }
 0x2bc   :  { %v2867_v20 = vadd.f32 %v2866_v16, %v2865_v1  ;;  %v10498_v21 = vpop.f32.mrb[26].mxu0 }
 0x2bd   :  { %v2901_v22 = vsel %vm2862_vm2, %v2890_v17, 0.0  ;;  %v2868_v23 = vsel %vm2862_vm2, %v10498_v21, 0.0  ;;  %v2891_v24 = vmul.f32 %v10498_v21, %v10498_v21  ;;  %v8116_v25 = vpop.f32.mrb[27].mxu0  ;;  %v10505_v27 = vpop.f32.mrb[24].mxu1 }
 0x2be   :  { %v2902_v26 = vadd.f32 %v2901_v22, %v2900_v6  ;;  %v2869_v29 = vadd.f32 %v2868_v23, %v2867_v20  ;;  %v2926_v30 = vsel %vm2862_vm2, %v10505_v27, 0.0  ;;  %v2951_v31 = vmul.f32 %v10505_v27, %v10505_v27  ;;  %v8203_v44 = vpop.f32.mrb[25].mxu1 }
 0x2bf   :  { %v2903_v32 = vsel %vm2862_vm2, %v2891_v24, 0.0  ;;  %v2927_v33 = vadd.f32 %v2926_v30, %v2925_v12  ;;  %v10512_v35 = vpop.f32.mrb[26].mxu1 }
 0x2c0   :  { %v2904_v34 = vadd.f32 %v2903_v32, %v2902_v26  ;;  %v2962_v36 = vsel %vm2862_vm2, %v2951_v31, 0.0  ;;  %v2928_v37 = vsel %vm2862_vm2, %v10512_v35, 0.0  ;;  %v2952_v38 = vmul.f32 %v10512_v35, %v10512_v35  ;;  %v8204_v39 = vpop.f32.mrb[27].mxu1 }
 0x2c1   :  { %v2963_v40 = vadd.f32 %v2962_v36, %v2961_v19  ;;  %v2929_v41 = vadd.f32 %v2928_v37, %v2927_v33 }
 0x2c2   :  { %v10519_v42 = vpop.f32.mrb[28].mxu0  ;;  %v2964_v43 = vsel %vm2862_vm2, %v2952_v38, 0.0 }
 0x2c3   :  { %v2870_v45 = vsel %vm2862_vm2, %v10519_v42, 0.0  ;;  %v2892_v46 = vmul.f32 %v10519_v42, %v10519_v42  ;;  %v8119_v47 = vpop.f32.mrb[29].mxu0  ;;  %v2965_v48 = vadd.f32 %v2964_v43, %v2963_v40 }
 0x2c4   :  { %v2871_v49 = vadd.f32 %v2870_v45, %v2869_v29  ;;  %v10526_v50 = vpop.f32.mrb[30].mxu0 }
 0x2c5   :  { %v2905_v51 = vsel %vm2862_vm2, %v2892_v46, 0.0  ;;  %v2872_v52 = vsel %vm2862_vm2, %v10526_v50, 0.0  ;;  %v2893_v53 = vmul.f32 %v10526_v50, %v10526_v50  ;;  %v8120_v54 = vpop.f32.mrb[31].mxu0  ;;  %v10533_v57 = vpop.f32.mrb[28].mxu1 }
 0x2c6   :  { %v2906_v55 = vadd.f32 %v2905_v51, %v2904_v34  ;;  %v2873_v58 = vadd.f32 %v2872_v52, %v2871_v49  ;;  %v2930_v60 = vsel %vm2862_vm2, %v10533_v57, 0.0  ;;  %v2953_v61 = vmul.f32 %v10533_v57, %v10533_v57  ;;  %v8207_v62 = vpop.f32.mrb[29].mxu1 }
 0x2c7   :  { %v2907_v63 = vsel %vm2862_vm2, %v2893_v53, 0.0  ;;  %v2931_v1 = vadd.f32 %v2930_v60, %v2929_v41  ;;  %v10540_v3 = vpop.f32.mrb[30].mxu1 }
 0x2c8   :  { %v2908_v2 = vadd.f32 %v2907_v63, %v2906_v55  ;;  %v2966_v4 = vsel %vm2862_vm2, %v2953_v61, 0.0  ;;  %v2932_v5 = vsel %vm2862_vm2, %v10540_v3, 0.0  ;;  %v2954_v6 = vmul.f32 %v10540_v3, %v10540_v3  ;;  %v8208_v8 = vpop.f32.mrb[31].mxu1 }
 0x2c9   :  { %v2967_v9 = vadd.f32 %v2966_v4, %v2965_v48  ;;  %v2933_v10 = vadd.f32 %v2932_v5, %v2931_v1 }
 0x2ca   :  { %v10547_v11 = vpop.f32.mrb[32].mxu0  ;;  %v2968_v12 = vsel %vm2862_vm2, %v2954_v6, 0.0 }
 0x2cb   :  { %v2874_v14 = vsel %vm2862_vm2, %v10547_v11, 0.0  ;;  %v2894_v15 = vmul.f32 %v10547_v11, %v10547_v11  ;;  %v8123_v16 = vpop.f32.mrb[33].mxu0  ;;  %v2969_v17 = vadd.f32 %v2968_v12, %v2967_v9 }
 0x2cc   :  { %v2875_v18 = vadd.f32 %v2874_v14, %v2873_v58  ;;  %v10554_v19 = vpop.f32.mrb[34].mxu0 }
 0x2cd   :  { %v2909_v20 = vsel %vm2862_vm2, %v2894_v15, 0.0  ;;  %v2876_v22 = vsel %vm2862_vm2, %v10554_v19, 0.0  ;;  %v2895_v23 = vmul.f32 %v10554_v19, %v10554_v19  ;;  %v8124_v24 = vpop.f32.mrb[35].mxu0  ;;  %v10561_v26 = vpop.f32.mrb[32].mxu1 }
 0x2ce   :  { %v2910_v25 = vadd.f32 %v2909_v20, %v2908_v2  ;;  %v2877_v29 = vadd.f32 %v2876_v22, %v2875_v18  ;;  %v2934_v30 = vsel %vm2862_vm2, %v10561_v26, 0.0  ;;  %v2955_v31 = vmul.f32 %v10561_v26, %v10561_v26  ;;  %v8211_v44 = vpop.f32.mrb[33].mxu1 }
 0x2cf   :  { %v2911_v32 = vsel %vm2862_vm2, %v2895_v23, 0.0  ;;  %v2935_v33 = vadd.f32 %v2934_v30, %v2933_v10  ;;  %v10568_v36 = vpop.f32.mrb[34].mxu1 }
 0x2d0   :  { %v2912_v34 = vadd.f32 %v2911_v32, %v2910_v25  ;;  %v2970_v37 = vsel %vm2862_vm2, %v2955_v31, 0.0  ;;  %v2936_v38 = vsel %vm2862_vm2, %v10568_v36, 0.0  ;;  %v2956_v39 = vmul.f32 %v10568_v36, %v10568_v36  ;;  %v8212_v40 = vpop.f32.mrb[35].mxu1 }
 0x2d1   :  { %v2971_v41 = vadd.f32 %v2970_v37, %v2969_v17  ;;  %v2937_v43 = vadd.f32 %v2936_v38, %v2935_v33 }
 0x2d2   :  { %v10575_v45 = vpop.f32.mrb[36].mxu0  ;;  %v2972_v46 = vsel %vm2862_vm2, %v2956_v39, 0.0 }
 0x2d3   :  { %v2878_v47 = vsel %vm2862_vm2, %v10575_v45, 0.0  ;;  %v2896_v48 = vmul.f32 %v10575_v45, %v10575_v45  ;;  %v8127_v49 = vpop.f32.mrb[37].mxu0  ;;  %v2973_v51 = vadd.f32 %v2972_v46, %v2971_v41 }
 0x2d4   :  { %v2879_v52 = vadd.f32 %v2878_v47, %v2877_v29  ;;  %v10582_v53 = vpop.f32.mrb[38].mxu0 }
 0x2d5   :  { %v2913_v54 = vsel %vm2862_vm2, %v2896_v48, 0.0  ;;  %v2880_v55 = vsel %vm2862_vm2, %v10582_v53, 0.0  ;;  %v2897_v58 = vmul.f32 %v10582_v53, %v10582_v53  ;;  %v8128_v60 = vpop.f32.mrb[39].mxu0  ;;  %v2845_v62 = vpop.f32.mrb[36].mxu1 }
 0x2d6   :  { %v2914_v61 = vadd.f32 %v2913_v54, %v2912_v34  ;;  %v2881_v63 = vadd.f32 %v2880_v55, %v2879_v52  ;;  %v2938_v1 = vsel %vm2862_vm2, %v2845_v62, 0.0  ;;  %v2957_v2 = vmul.f32 %v2845_v62, %v2845_v62  ;;  %v8215_v4 = vpop.f32.mrb[37].mxu1 }
 0x2d7   :  { %v2915_v5 = vsel %vm2862_vm2, %v2897_v58, 0.0  ;;  %v2939_v6 = vadd.f32 %v2938_v1, %v2937_v43  ;;  %v2848_v10 = vpop.f32.mrb[38].mxu1  ;;  %v2996_v4 = vlaneseq }
 0x2d8   :  { %v2882_v8 = vrot.slane %v2881_v63, 4  ;;  %v2916_v9 = vadd.f32 %v2915_v5, %v2914_v61  ;;  %v2974_v12 = vsel %vm2862_vm2, %v2957_v2, 0.0  ;;  %v2940_v14 = vsel %vm2862_vm2, %v2848_v10, 0.0  ;;  %v8216_v16 = vpop.f32.mrb[39].mxu1 }
 0x2d9   :  { %v2958_v15 = vmul.f32 %v2848_v10, %v2848_v10  ;;  %v2975_v17 = vadd.f32 %v2974_v12, %v2973_v51  ;;  %v2941_v22 = vadd.f32 %v2940_v14, %v2939_v6  ;;  %v2997_v5 = vshrl.u32 %v2996_v4, 7  ;;  %v2991_v6 = vld [vmem:[%s11578_s7] sm:$0x1] }
 0x2da   :  { %v2883_v18 = vadd.f32 %v2882_v8, %v2881_v63  ;;  %v2917_v20 = vrot.slane %v2916_v9, 4  ;;  %v2993_v14 = vld [vmem:[%s11582_s11] sm:$0x1] }
 0x2db   :  { %v2976_v23 = vsel %vm2862_vm2, %v2958_v15, 0.0  ;;  %v2942_v29 = vrot.slane %v2941_v22, 4  ;;  %v10597_v8 = vsub.s32 0, %v2997_v5 }
 0x2dc   :  { %v2884_v24 = vrot.slane %v2883_v18, 2  ;;  %v2918_v25 = vadd.f32 %v2917_v20, %v2916_v9  ;;  %v2977_v30 = vadd.f32 %v2976_v23, %v2975_v17 }
 0x2dd   :  { %v2943_v32 = vadd.f32 %v2942_v29, %v2941_v22 }
 0x2de   :  { %v2885_v31 = vadd.f32 %v2884_v24, %v2883_v18  ;;  %v2919_v44 = vrot.slane %v2918_v25, 2  ;;  %v2978_v33 = vrot.slane %v2977_v30, 4 }
 0x2df   :  { %v2944_v38 = vrot.slane %v2943_v32, 2 }
 0x2e0   :  { %v2886_v34 = vrot.slane %v2885_v31, 1  ;;  %v2920_v37 = vadd.f32 %v2919_v44, %v2918_v25  ;;  %v2979_v39 = vadd.f32 %v2978_v33, %v2977_v30 }
 0x2e1   :  { %v2945_v41 = vadd.f32 %v2944_v38, %v2943_v32 }
 0x2e2   :  { %v2921_v40 = vrot.slane %v2920_v37, 1  ;;  %v2980_v43 = vrot.slane %v2979_v39, 2  ;;  %v2887_v46 = vadd.f32 %v2886_v34, %v2885_v31 }
 0x2e3   :  { %v2946_v47 = vrot.slane %v2945_v41, 1 }
 0x2e4   :  { %v2981_v48 = vadd.f32 %v2980_v43, %v2979_v39  ;;  %v2922_v49 = vadd.f32 %v2921_v40, %v2920_v37 }
 0x2e5   :  { %v2947_v51 = vadd.f32 %v2946_v47, %v2945_v41 }
 0x2e6   :  { %v2982_v52 = vrot.slane %v2981_v48, 1 }
 0x2e7   :  { %v2948_v54 = vadd.f32 %v2947_v51, %v2887_v46 }
 0x2e8   :  { %v2983_v55 = vadd.f32 %v2982_v52, %v2981_v48 }
 0x2e9   :  { %v2985_v60 = vmul.f32 0.00625, %v2948_v54 }
 0x2ea   :  { %v2984_v58 = vadd.f32 %v2983_v55, %v2922_v49 }
 0x2eb   :  { %v2987_v63 = vmul.f32 %v2985_v60, %v2985_v60 }
 0x2ec   :  { %v2986_v61 = vmul.f32 0.00625, %v2984_v58 }
 0x2ee   :  { %v2988_v1 = vsub.f32 %v2986_v61, %v2987_v63 }
 0x2f0   :  { %v2989_v2 = vadd.f32 1e-05, %v2988_v1 }
 0x2f2   :  { %9440 = vrsqrt.f32 %v2989_v2 }
 0x2fc   :  { %v9441_v9 = vpop.eup %9440 }
 0x2fd   :  { %v2992_v12 = vmul.f32 %v9441_v9, %v2991_v6 }
 0x2ff   :  { %v2994_v15 = vmul.f32 %v2992_v12, %v2985_v60  ;;  %v10603_v16 = vrot.slane %v2992_v12, %v10597_v8 }
 0x301   :  { %v2995_v17 = vsub.f32 %v2993_v14, %v2994_v15  ;;  %v3032_v18 = vmul.f32 %v10603_v16, %v10561_v26  ;;  %v3033_v20 = vmul.f32 %v10603_v16, %v10568_v36  ;;  %v3034_v22 = vmul.f32 %v10603_v16, %v2845_v62 }
 0x302   :  { %v3035_v23 = vmul.f32 %v10603_v16, %v2848_v10  ;;  %v3000_v24 = vmul.f32 %v10603_v16, %v10464_v56  ;;  %v3001_v25 = vmul.f32 %v10603_v16, %v10468_v59  ;;  %v3002_v29 = vmul.f32 %v10603_v16, %v10490_v13 }
 0x303   :  { %v10618_v30 = vrot.slane %v2995_v17, %v10597_v8  ;;  %v3003_v26 = vmul.f32 %v10603_v16, %v10498_v21  ;;  %v3026_v36 = vmul.f32 %v10603_v16, %v10476_v0  ;;  %v3027_v62 = vmul.f32 %v10603_v16, %v10482_v7 }
 0x304   :  { %v3028_v56 = vmul.f32 %v10603_v16, %v10505_v27  ;;  %v3029_v59 = vmul.f32 %v10603_v16, %v10512_v35  ;;  %v3004_v13 = vmul.f32 %v10603_v16, %v10519_v42  ;;  %v3005_v10 = vmul.f32 %v10603_v16, %v10526_v50 }
 0x305   :  { %v3042_v21 = vadd.f32 %v3032_v18, %v10618_v30  ;;  %v3043_v31 = vadd.f32 %v3033_v20, %v10618_v30  ;;  %v3044_v0 = vadd.f32 %v3034_v22, %v10618_v30  ;;  %v3045_v7 = vadd.f32 %v3035_v23, %v10618_v30 }
 0x306   :  { %v3016_v44 = vadd.f32 %v10618_v30, %v3000_v24  ;;  %v3017_v27 = vadd.f32 %v10618_v30, %v3001_v25  ;;  %v3018_v35 = vadd.f32 %v10618_v30, %v3002_v29  ;;  %v3019_v32 = vadd.f32 %v10618_v30, %v3003_v26 }
 0x307   :  { %vm3082_vm10 = vcmp.gt.f32.partialorder %v3042_v21, 0.0  ;;  %vm3083_vm11 = vcmp.gt.f32.partialorder %v3043_v31, 0.0  ;;  %vm3084_vm12 = vcmp.gt.f32.partialorder %v3044_v0, 0.0  ;;  %vm3085_vm13 = vcmp.gt.f32.partialorder %v3045_v7, 0.0 }
 0x308   :  { %v3092_v42 = vmul.f32 0.2, %v3042_v21  ;;  %v3093_v50 = vmul.f32 0.2, %v3043_v31  ;;  %v3094_v33 = vmul.f32 0.2, %v3044_v0  ;;  %v3036_v34 = vadd.f32 %v3026_v36, %v10618_v30 }
 0x309   :  { %v3095_v37 = vmul.f32 0.2, %v3045_v7  ;;  %vm3046_vm14 = vcmp.gt.f32.partialorder %v3016_v44, 0.0  ;;  %vm3047_vm15 = vcmp.gt.f32.partialorder %v3017_v27, 0.0  ;;  %vm3048_vm1 = vcmp.gt.f32.partialorder %v3018_v35, 0.0 }
 0x30a   :  { %v3102_v38 = vsel %vm3082_vm10, %v3042_v21, %v3092_v42  ;;  %v3103_v39 = vsel %vm3083_vm11, %v3043_v31, %v3093_v50  ;;  %v3104_v40 = vsel %vm3084_vm12, %v3044_v0, %v3094_v33  ;;  %vm3049_vm5 = vcmp.gt.f32.partialorder %v3019_v32, 0.0 }
 0x30b   :  { %v3105_v41 = vsel %vm3085_vm13, %v3045_v7, %v3095_v37  ;;  %3144 = vst.msk [vmem:[#allocation3 + $0x83] sm:$0xff] %vm2862_vm2, %v3102_v38  ;;  %3145 = vst.msk [vmem:[#allocation3 + $0x8b] sm:$0xff] %vm2862_vm2, %v3103_v39  ;;  %v3056_v43 = vmul.f32 0.2, %v3016_v44  ;;  %v3057_v46 = vmul.f32 0.2, %v3017_v27  ;;  %v3037_v49 = vadd.f32 %v3027_v62, %v10618_v30 }
 0x30c   :  { %3146 = vst.msk [vmem:[#allocation3 + $0x93] sm:$0xff] %vm2862_vm2, %v3104_v40  ;;  %v3058_v47 = vmul.f32 0.2, %v3018_v35  ;;  %3147 = vst.msk [vmem:[#allocation3 + $0x9b] sm:$0xff] %vm2862_vm2, %v3105_v41  ;;  %v3059_v48 = vmul.f32 0.2, %v3019_v32  ;;  %v3038_v51 = vadd.f32 %v3028_v56, %v10618_v30  ;;  %v3039_v52 = vadd.f32 %v3029_v59, %v10618_v30 }
 0x30d   :  { %v3066_v54 = vsel %vm3046_vm14, %v3016_v44, %v3056_v43  ;;  %v3067_v55 = vsel %vm3047_vm15, %v3017_v27, %v3057_v46  ;;  %vm3076_vm6 = vcmp.gt.f32.partialorder %v3036_v34, 0.0  ;;  %vm3077_vm7 = vcmp.gt.f32.partialorder %v3037_v49, 0.0 }
 0x30e   :  { %v3068_v58 = vsel %vm3048_vm1, %v3018_v35, %v3058_v47  ;;  %v3069_v60 = vsel %vm3049_vm5, %v3019_v32, %v3059_v48  ;;  %3128 = vst.msk [vmem:[#allocation3 + $0x1] sm:$0xff] %vm2862_vm2, %v3066_v54  ;;  %3129 = vst.msk [vmem:[#allocation3 + $0x9] sm:$0xff] %vm2862_vm2, %v3067_v55  ;;  %vm3078_vm8 = vcmp.gt.f32.partialorder %v3038_v51, 0.0  ;;  %vm3079_vm9 = vcmp.gt.f32.partialorder %v3039_v52, 0.0 }
 0x30f   :  { %3130 = vst.msk [vmem:[#allocation3 + $0x11] sm:$0xff] %vm2862_vm2, %v3068_v58  ;;  %3131 = vst.msk [vmem:[#allocation3 + $0x19] sm:$0xff] %vm2862_vm2, %v3069_v60  ;;  %v3086_v61 = vmul.f32 0.2, %v3036_v34  ;;  %v3087_v63 = vmul.f32 0.2, %v3037_v49  ;;  %v3006_v2 = vmul.f32 %v10603_v16, %v10547_v11  ;;  %v3007_v5 = vmul.f32 %v10603_v16, %v10554_v19 }
 0x310   :  { %v3088_v1 = vmul.f32 0.2, %v3038_v51  ;;  %v3089_v4 = vmul.f32 0.2, %v3039_v52  ;;  %v3020_v6 = vadd.f32 %v10618_v30, %v3004_v13  ;;  %v3021_v9 = vadd.f32 %v10618_v30, %v3005_v10  ;;  %v9333_v13 = vld [vmem:[%s11574_s3] sm:$0xff]  }
 0x311   :  { %v3096_v12 = vsel %vm3076_vm6, %v3036_v34, %v3086_v61  ;;  %v3097_v14 = vsel %vm3077_vm7, %v3037_v49, %v3087_v63  ;;  %v3022_v17 = vadd.f32 %v10618_v30, %v3006_v2  ;;  %v3023_v11 = vadd.f32 %v10618_v30, %v3007_v5 }
 0x312   :  { %v3098_v15 = vsel %vm3078_vm8, %v3038_v51, %v3088_v1  ;;  %v3099_v18 = vsel %vm3079_vm9, %v3039_v52, %v3089_v4  ;;  %3138 = vst.msk [vmem:[#allocation3 + $0x53] sm:$0xff] %vm2862_vm2, %v3096_v12  ;;  %3139 = vst.msk [vmem:[#allocation3 + $0x5b] sm:$0xff] %vm2862_vm2, %v3097_v14  ;;  %vm3050_vm3 = vcmp.gt.f32.partialorder %v3020_v6, 0.0  ;;  %vm3051_vm10 = vcmp.gt.f32.partialorder %v3021_v9, 0.0  ;;  %v3524_v39 = vld [vmem:[#allocation3 + $0x83] ss:$2 sm:$0xff] }
 0x313   :  { %3140 = vst.msk [vmem:[#allocation3 + $0x63] sm:$0xff] %vm2862_vm2, %v3098_v15  ;;  %3141 = vst.msk [vmem:[#allocation3 + $0x6b] sm:$0xff] %vm2862_vm2, %v3099_v18  ;;  %vm3052_vm11 = vcmp.gt.f32.partialorder %v3022_v17, 0.0  ;;  %v3060_v19 = vmul.f32 0.2, %v3020_v6  ;;  %v3030_v22 = vmul.f32 %v10603_v16, %v10533_v57  ;;  %vm3053_vm12 = vcmp.gt.f32.partialorder %v3023_v11, 0.0 }
 0x314   :  { %v3061_v20 = vmul.f32 0.2, %v3021_v9  ;;  %v3062_v23 = vmul.f32 0.2, %v3022_v17  ;;  %v3063_v24 = vmul.f32 0.2, %v3023_v11  ;;  %v3031_v25 = vmul.f32 %v10603_v16, %v10540_v3 }
 0x315   :  { %v3163_v29 = vld [vmem:[#allocation3 + $0x1] ss:$2 sm:$0xff]  ;;  %v3070_v26 = vsel %vm3050_vm3, %v3020_v6, %v3060_v19  ;;  %v3040_v62 = vadd.f32 %v3030_v22, %v10618_v30  ;;  %v3008_v56 = vmul.f32 %v10603_v16, %v10575_v45  ;;  %v3009_v21 = vmul.f32 %v10603_v16, %v10582_v53  ;;  %v3148_v49 = vld [vmem:[#allocation3] ss:$2 sm:$0xff]  ;;  %v9335_v18 = vld [vmem:[%s11574_s3 + $0x18] sm:$0xff]  }
 0x316   :  { %v3071_v36 = vsel %vm3051_vm10, %v3021_v9, %v3061_v20  ;;  %v3165_v59 = vld [vmem:[#allocation3 + $0x11] ss:$2 sm:$0xff]  ;;  %v3072_v57 = vsel %vm3052_vm11, %v3022_v17, %v3062_v23  ;;  %v3073_v10 = vsel %vm3053_vm12, %v3023_v11, %v3063_v24  ;;  %3132 = vst.msk [vmem:[#allocation3 + $0x21] sm:$0xff] %vm2862_vm2, %v3070_v26  ;;  %v3041_v3 = vadd.f32 %v3031_v25, %v10618_v30  ;;  %v3150_v51 = vld [vmem:[#allocation3 + $0x10] ss:$2 sm:$0xff]  ;;  %v9334_v52 = vld [vmem:[%s11574_s3 + $0x10] sm:$0xff]  }
 0x317   :  { %3133 = vst.msk [vmem:[#allocation3 + $0x29] sm:$0xff] %vm2862_vm2, %v3071_v36  ;;  %v3172_v31 = vpack.c.bf16 %v3165_v59, %v3163_v29  ;;  %3134 = vst.msk [vmem:[#allocation3 + $0x31] sm:$0xff] %vm2862_vm2, %v3072_v57  ;;  %vm3080_vm13 = vcmp.gt.f32.partialorder %v3040_v62, 0.0  ;;  %v3090_v45 = vmul.f32 0.2, %v3040_v62  ;;  %v3024_v0 = vadd.f32 %v10618_v30, %v3008_v56 }
 0x318   :  { %3135 = vst.msk [vmem:[#allocation3 + $0x39] sm:$0xff] %vm2862_vm2, %v3073_v10  ;;  %vm3081_vm14 = vcmp.gt.f32.partialorder %v3041_v3, 0.0  ;;  %v3091_v7 = vmul.f32 0.2, %v3041_v3  ;;  %v3025_v44 = vadd.f32 %v10618_v30, %v3009_v21  ;;  %v3526_v47 = vld [vmem:[#allocation3 + $0x93] ss:$2 sm:$0xff]  ;;  %v3157_v54 = vpack.c.bf16 %v3150_v51, %v3148_v49 }
 0x319   :  { %8220 = vmatmul.mubr.msk.bf16.vlgmr.msra.gmra.mrb[40].mxu0 %vm2862_vm2, %v3172_v31  ;;  %v3518_v27 = vld [vmem:[#allocation3 + $0x53] ss:$2 sm:$0xff]  ;;  %v3100_v35 = vsel %vm3080_vm13, %v3040_v62, %v3090_v45  ;;  %vm3054_vm15 = vcmp.gt.f32.partialorder %v3024_v0, 0.0  ;;  %v3064_v32 = vmul.f32 0.2, %v3024_v0  ;;  %v3529_v48 = vpack.c.bf16 %v3526_v47, %v3526_v47 }
 0x31a   :  { %v3520_v53 = vld [vmem:[#allocation3 + $0x63] ss:$2 sm:$0xff]  ;;  %8232 = vmatpush3.bf16.msra.mxu0 %v9333_v13  ;;  %8223 = vmatprep.mubr.msk.bf16.mxu0 %vm9473_vm4, %v9472_v28  ;;  %v3101_v16 = vsel %vm3081_vm14, %v3041_v3, %v3091_v7  ;;  %3142 = vst.msk [vmem:[#allocation3 + $0x73] sm:$0xff] %vm2862_vm2, %v3100_v35  ;;  %vm3055_vm1 = vcmp.gt.f32.partialorder %v3025_v44, 0.0  ;;  %v3065_v42 = vmul.f32 0.2, %v3025_v44 }
 0x31b   :  { %v3527_v50 = vpack.c.bf16 %v3520_v53, %v3518_v27  ;;  %3143 = vst.msk [vmem:[#allocation3 + $0x7b] sm:$0xff] %vm2862_vm2, %v3101_v16  ;;  %v3074_v30 = vsel %vm3054_vm15, %v3024_v0, %v3064_v32  ;;  %8245 = vmatprep.subr.bf16.mxu0 %v9472_v28  ;;  %v3505_v55 = vld [vmem:[#allocation3 + $0x52] ss:$2 sm:$0xff]  ;;  %v3507_v58 = vld [vmem:[#allocation3 + $0x62] ss:$2 sm:$0xff]  ;;  %vm3826_vm5 = vcmask 261120  }
 0x31c   :  { %v3075_v33 = vsel %vm3055_vm1, %v3025_v44, %v3065_v42  ;;  %3136 = vst.msk [vmem:[#allocation3 + $0x41] sm:$0xff] %vm2862_vm2, %v3074_v30  ;;  %v3514_v60 = vpack.c.bf16 %v3507_v58, %v3505_v55  ;;  %v3513_v12 = vld [vmem:[#allocation3 + $0x92] ss:$2 sm:$0xff]  ;;  %v3321_v15 = vld [vmem:[#allocation3 + $0x2] ss:$2 sm:$0xff]  ;;  %vm4570_vm15 = vcmask 519168  }
 0x31d   :  { %8276 = vmatmul.mubr.msk.bf16.vlgmr.msra.gmra.mrb[40].mxu1 %vm2862_vm2, %v3527_v50  ;;  %3137 = vst.msk [vmem:[#allocation3 + $0x49] sm:$0xff] %vm2862_vm2, %v3075_v33  ;;  %v3516_v14 = vpack.c.bf16 %v3513_v12, %v3513_v12  ;;  %v3323_v17 = vld [vmem:[#allocation3 + $0x12] ss:$2 sm:$0xff]  ;;  %v3413_v57 = vld [vmem:[#allocation3 + $0x3] ss:$2 sm:$0xff]  ;;  %vm4566_vm1 = vcmask 523264  }
 0x31e   :  { %v3167_v34 = vld [vmem:[#allocation3 + $0x21] ss:$2 sm:$0xff]  ;;  %8288 = vmatpush3.bf16.msra.mxu1 %v9333_v13  ;;  %8279 = vmatprep.mubr.msk.bf16.mxu1 %vm9473_vm4, %v9472_v28  ;;  %v3152_v61 = vld [vmem:[#allocation3 + $0x20] ss:$2 sm:$0xff]  ;;  %v3330_v11 = vpack.c.bf16 %v3323_v17, %v3321_v15  ;;  %3970 = vst.msk [vmem:[#allocation4] sm:$0xff] %vm3826_vm5, %v9472_v28  ;;  %3971 = vst.msk [vmem:[#allocation4 + $0x8] sm:$0xff] %vm3826_vm5, %v9472_v28 }
 0x31f   :  { %v3169_v37 = vld [vmem:[#allocation3 + $0x31] ss:$2 sm:$0xff]  ;;  %8301 = vmatprep.subr.bf16.mxu1 %v9472_v28  ;;  %v3154_v63 = vld [vmem:[#allocation3 + $0x30] ss:$2 sm:$0xff]  ;;  %3972 = vst.msk [vmem:[#allocation4 + $0x10] sm:$0xff] %vm3826_vm5, %v9472_v28  ;;  %3973 = vst.msk [vmem:[#allocation4 + $0x18] sm:$0xff] %vm3826_vm5, %v9472_v28 }
 0x320   :  { %v3173_v38 = vpack.c.bf16 %v3169_v37, %v3167_v34  ;;  %v3158_v1 = vpack.c.bf16 %v3154_v63, %v3152_v61  ;;  %v3661_v19 = vld [vmem:[#allocation3 + $0x54] ss:$2 sm:$0xff]  ;;  %v3663_v20 = vld [vmem:[#allocation3 + $0x64] ss:$2 sm:$0xff]  ;;  %v3415_v10 = vld [vmem:[#allocation3 + $0x13] ss:$2 sm:$0xff] }
 0x321   :  { %v3670_v22 = vpack.c.bf16 %v3663_v20, %v3661_v19  ;;  %v3325_v23 = vld [vmem:[#allocation3 + $0x22] ss:$2 sm:$0xff]  ;;  %v3327_v24 = vld [vmem:[#allocation3 + $0x32] ss:$2 sm:$0xff]  ;;  %v3422_v3 = vpack.c.bf16 %v3415_v10, %v3413_v57  ;;  %v3744_v21 = vld [vmem:[#allocation3 + $0x55] ss:$2 sm:$0xff] }
 0x322   :  { %8224 = vmatmul.mubr.msk.bf16.gmra.mrb[44].mxu0 %vm2862_vm2, %v3173_v38  ;;  %v3522_v40 = vld [vmem:[#allocation3 + $0x73] ss:$2 sm:$0xff]  ;;  %v3509_v2 = vld [vmem:[#allocation3 + $0x72] ss:$2 sm:$0xff]  ;;  %v3511_v4 = vld [vmem:[#allocation3 + $0x82] ss:$2 sm:$0xff]  ;;  %v3331_v25 = vpack.c.bf16 %v3327_v24, %v3325_v23 }
 0x323   :  { %8227 = vmatprep.mubr.msk.bf16.mxu0 %vm9473_vm4, %v9472_v28  ;;  %v3528_v41 = vpack.c.bf16 %v3524_v39, %v3522_v40  ;;  %v3515_v5 = vpack.c.bf16 %v3511_v4, %v3509_v2  ;;  %v3665_v29 = vld [vmem:[#allocation3 + $0x74] ss:$2 sm:$0xff]  ;;  %v3667_v26 = vld [vmem:[#allocation3 + $0x84] ss:$2 sm:$0xff]  ;;  %v3746_v31 = vld [vmem:[#allocation3 + $0x65] ss:$2 sm:$0xff] }
 0x324   :  { %v3171_v43 = vld [vmem:[#allocation3 + $0x41] ss:$2 sm:$0xff]  ;;  %v3156_v6 = vld [vmem:[#allocation3 + $0x40] ss:$2 sm:$0xff]  ;;  %v3671_v36 = vpack.c.bf16 %v3667_v26, %v3665_v29  ;;  %v3753_v45 = vpack.c.bf16 %v3746_v31, %v3744_v21  ;;  %3974 = vst.msk [vmem:[#allocation4 + $0x20] sm:$0xff] %vm3826_vm5, %v9472_v28  ;;  %3975 = vst.msk [vmem:[#allocation4 + $0x28] sm:$0xff] %vm3826_vm5, %v9472_v28 }
 0x325   :  { %8280 = vmatmul.mubr.msk.bf16.gmra.mrb[44].mxu1 %vm2862_vm2, %v3528_v41  ;;  %v3174_v46 = vpack.c.bf16 %v3171_v43, %v3171_v43  ;;  %v3159_v9 = vpack.c.bf16 %v3156_v6, %v3156_v6  ;;  %v3329_v62 = vld [vmem:[#allocation3 + $0x42] ss:$2 sm:$0xff]  ;;  %v3417_v0 = vld [vmem:[#allocation3 + $0x23] ss:$2 sm:$0xff]  ;;  %v3419_v7 = vld [vmem:[#allocation3 + $0x33] ss:$2 sm:$0xff] }
 0x326   :  { %8283 = vmatprep.mubr.msk.bf16.mxu1 %vm9473_vm4, %v9472_v28  ;;  %v3332_v56 = vpack.c.bf16 %v3329_v62, %v3329_v62  ;;  %v3669_v59 = vld [vmem:[#allocation3 + $0x94] ss:$2 sm:$0xff]  ;;  %v3423_v44 = vpack.c.bf16 %v3419_v7, %v3417_v0  ;;  %v3748_v27 = vld [vmem:[#allocation3 + $0x75] ss:$2 sm:$0xff]  ;;  %v3750_v35 = vld [vmem:[#allocation3 + $0x85] ss:$2 sm:$0xff] }
 0x327   :  { %v3672_v13 = vpack.c.bf16 %v3669_v59, %v3669_v59  ;;  %v3754_v32 = vpack.c.bf16 %v3750_v35, %v3748_v27  ;;  %v3421_v53 = vld [vmem:[#allocation3 + $0x43] ss:$2 sm:$0xff]  ;;  %3976 = vst.msk [vmem:[#allocation4 + $0x30] sm:$0xff] %vm3826_vm5, %v9472_v28  ;;  %3977 = vst.msk [vmem:[#allocation4 + $0x38] sm:$0xff] %vm3826_vm5, %v9472_v28  ;;  %v10802_v34 = vld [vmem:[%s11575_s4] sm:$0xff]  }
 0x328   :  { %v3424_v16 = vpack.c.bf16 %v3421_v53, %v3421_v53  ;;  %v3752_v42 = vld [vmem:[#allocation3 + $0x95] ss:$2 sm:$0xff]  ;;  %3978 = vst.msk [vmem:[#allocation4 + $0x40] sm:$0xff] %vm3826_vm5, %v9472_v28  ;;  %3979 = vst.msk [vmem:[#allocation4 + $0x48] sm:$0xff] %vm3826_vm5, %v9472_v28  ;;  %v9336_v30 = vld [vmem:[%s11575_s4 + $0x10] sm:$0xff]  }
 0x329   :  { %v3755_v50 = vpack.c.bf16 %v3752_v42, %v3752_v42  ;;  %v9337_v33 = vld [vmem:[%s11575_s4 + $0x18] sm:$0xff]   ;;  %4676 = vst.msk [vmem:[#allocation5 + $0x28] sm:$0xf] %vm4570_vm15, %v9472_v28 }
 0x32a   :  { %8228 = vmatmul.mubr.msk.bf16.gmra.mrb[48].mxu0 %vm2862_vm2, %v3174_v46  ;;  %4671 = vst.msk [vmem:[#allocation5] sm:$0xff] %vm4566_vm1, %v9472_v28  ;;  %4672 = vst.msk [vmem:[#allocation5 + $0x8] sm:$0xff] %vm4566_vm1, %v9472_v28 }
 0x32b   :  { %8233 = vmatprep.mubr.msk.bf16.mxu0 %vm9473_vm4, %v9472_v28  ;;  %4673 = vst.msk [vmem:[#allocation5 + $0x10] sm:$0xff] %vm4566_vm1, %v9472_v28  ;;  %4674 = vst.msk [vmem:[#allocation5 + $0x18] sm:$0xff] %vm4566_vm1, %v9472_v28 }
 0x32c   :  { %4675 = vst.msk [vmem:[#allocation5 + $0x20] sm:$0xff] %vm4566_vm1, %v9472_v28 }
 0x32d   :  { %8284 = vmatmul.mubr.msk.bf16.gmra.mrb[48].mxu1 %vm2862_vm2, %v3529_v48 }
 0x32e   :  { %8289 = vmatprep.mubr.msk.bf16.mxu1 %vm9473_vm4, %v9472_v28 }
 0x332   :  { %8234 = vmatmul.mubr.msk.bf16.vlgmr.msra.gmra.mrb[40].mxu0 %vm2862_vm2, %v3157_v54 }
 0x333   :  { %8246 = vmatpush3.bf16.msra.mxu0 %v9334_v52  ;;  %8237 = vmatprep.mubr.msk.bf16.mxu0 %vm9473_vm4, %v9472_v28 }
 0x334   :  { %8259 = vmatprep.subr.bf16.mxu0 %v9472_v28 }
 0x335   :  { %8290 = vmatmul.mubr.msk.bf16.vlgmr.msra.gmra.mrb[40].mxu1 %vm2862_vm2, %v3514_v60 }
 0x336   :  { %8302 = vmatpush3.bf16.msra.mxu1 %v9334_v52  ;;  %8293 = vmatprep.mubr.msk.bf16.mxu1 %vm9473_vm4, %v9472_v28 }
 0x337   :  { %8315 = vmatprep.subr.bf16.mxu1 %v9472_v28 }
 0x33a   :  { %8238 = vmatmul.mubr.msk.bf16.gmra.mrb[44].mxu0 %vm2862_vm2, %v3158_v1 }
 0x33b   :  { %8241 = vmatprep.mubr.msk.bf16.mxu0 %vm9473_vm4, %v9472_v28 }
 0x33d   :  { %8294 = vmatmul.mubr.msk.bf16.gmra.mrb[44].mxu1 %vm2862_vm2, %v3515_v5 }
 0x33e   :  { %8297 = vmatprep.mubr.msk.bf16.mxu1 %vm9473_vm4, %v9472_v28 }
 0x342   :  { %8242 = vmatmul.mubr.msk.bf16.gmra.mrb[48].mxu0 %vm2862_vm2, %v3159_v9 }
 0x343   :  { %8247 = vmatprep.mubr.msk.bf16.mxu0 %vm9473_vm4, %v9472_v28 }
 0x345   :  { %8298 = vmatmul.mubr.msk.bf16.gmra.mrb[48].mxu1 %vm2862_vm2, %v3516_v14 }
 0x346   :  { %8303 = vmatprep.mubr.msk.bf16.mxu1 %vm9473_vm4, %v9472_v28 }
 0x34a   :  { %8248 = vmatmul.mubr.msk.bf16.vlgmr.msra.gmra.mrb[40].mxu0 %vm2862_vm2, %v3330_v11 }
 0x34b   :  { %8260 = vmatpush3.bf16.msra.mxu0 %v9335_v18  ;;  %8251 = vmatprep.mubr.msk.bf16.mxu0 %vm9473_vm4, %v9472_v28 }
 0x34c   :  { %8329 = vmatprep.subr.bf16.mxu0 %v9336_v30 }
 0x34d   :  { %8304 = vmatmul.mubr.msk.bf16.vlgmr.msra.gmra.mrb[40].mxu1 %vm2862_vm2, %v3670_v22 }
 0x34e   :  { %8316 = vmatpush3.bf16.msra.mxu1 %v9335_v18  ;;  %8307 = vmatprep.mubr.msk.bf16.mxu1 %vm9473_vm4, %v9472_v28 }
 0x34f   :  { %8361 = vmatprep.subr.bf16.mxu1 %v9336_v30 }
 0x352   :  { %8252 = vmatmul.mubr.msk.bf16.gmra.mrb[44].mxu0 %vm2862_vm2, %v3331_v25 }
 0x353   :  { %8255 = vmatprep.mubr.msk.bf16.mxu0 %vm9473_vm4, %v9472_v28 }
 0x355   :  { %8308 = vmatmul.mubr.msk.bf16.gmra.mrb[44].mxu1 %vm2862_vm2, %v3671_v36 }
 0x356   :  { %8311 = vmatprep.mubr.msk.bf16.mxu1 %vm9473_vm4, %v9472_v28 }
 0x35a   :  { %8256 = vmatmul.mubr.msk.bf16.gmra.mrb[48].mxu0 %vm2862_vm2, %v3332_v56 }
 0x35b   :  { %8261 = vmatprep.mubr.msk.bf16.mxu0 %vm9473_vm4, %v9472_v28 }
 0x35d   :  { %8312 = vmatmul.mubr.msk.bf16.gmra.mrb[48].mxu1 %vm2862_vm2, %v3672_v13 }
 0x35e   :  { %8317 = vmatprep.mubr.msk.bf16.mxu1 %vm9473_vm4, %v9472_v28 }
 0x362   :  { %8262 = vmatmul.mubr.msk.bf16.vlgmr.msra.gmra.mrb[40].mxu0 %vm2862_vm2, %v3422_v3 }
 0x363   :  { %8265 = vmatprep.mubr.msk.bf16.mxu0 %vm9473_vm4, %v9472_v28  ;;  %8330 = vmatpush3.bf16.msra.mxu0 %v9336_v30 }
 0x364   :  { %8331 = vmatprep.subr.bf16.mxu0 %v9337_v33 }
 0x365   :  { %8318 = vmatmul.mubr.msk.bf16.vlgmr.msra.gmra.mrb[40].mxu1 %vm2862_vm2, %v3753_v45 }
 0x366   :  { %8321 = vmatprep.mubr.msk.bf16.mxu1 %vm9473_vm4, %v9472_v28  ;;  %8362 = vmatpush3.bf16.msra.mxu1 %v9336_v30 }
 0x367   :  { %8363 = vmatprep.subr.bf16.mxu1 %v9337_v33  ;;  %8332 = vmatpush3.bf16.msra.mxu0 %v9337_v33 }
 0x368   :  { %8337 = vmatprep.subr.bf16.mxu0 %v10802_v34 }
 0x36a   :  { %8266 = vmatmul.mubr.msk.bf16.gmra.mrb[44].mxu0 %vm2862_vm2, %v3423_v44  ;;  %8364 = vmatpush3.bf16.msra.mxu1 %v9337_v33 }
 0x36b   :  { %8269 = vmatprep.mubr.msk.bf16.mxu0 %vm9473_vm4, %v9472_v28  ;;  %8369 = vmatprep.subr.bf16.mxu1 %v10802_v34 }
 0x36d   :  { %8322 = vmatmul.mubr.msk.bf16.gmra.mrb[44].mxu1 %vm2862_vm2, %v3754_v32 }
 0x36e   :  { %8325 = vmatprep.mubr.msk.bf16.mxu1 %vm9473_vm4, %v9472_v28 }
 0x372   :  { %8270 = vmatmul.mubr.msk.bf16.gmra.mrb[48].mxu0 %vm2862_vm2, %v3424_v16 }
 0x375   :  { %8326 = vmatmul.mubr.msk.bf16.gmra.mrb[48].mxu1 %vm2862_vm2, %v3755_v50  ;;  %vm3980_vm2 = vcmask 257024  }
 0x376   :  { %3981 = vst.msk [vmem:[#allocation4 + $0x50] sm:$0xf] %vm3980_vm2, %v9472_v28 }
 0x435   :  { %v10806_v37 = vpop.f32.mrb[40].mxu0 }
 0x436   :  { %v3842_v38 = vmul.f32 %v10806_v37, %v10806_v37  ;;  %v8263_v39 = vpop.f32.mrb[41].mxu0  ;;  %v3827_v41 = vsel %vm3826_vm5, %v10806_v37, 0.0 }
 0x437   :  { %v10810_v40 = vpop.f32.mrb[42].mxu0 }
 0x438   :  { %v3828_v43 = vsel %vm3826_vm5, %v10810_v40, 0.0  ;;  %v3843_v46 = vmul.f32 %v10810_v40, %v10810_v40  ;;  %v8264_v47 = vpop.f32.mrb[43].mxu0  ;;  %v10818_v48 = vpop.f32.mrb[40].mxu1  ;;  %v3847_v51 = vsel %vm3826_vm5, %v3842_v38, 0.0 }
 0x439   :  { %v3829_v49 = vadd.f32 %v3828_v43, %v3827_v41  ;;  %v3878_v52 = vmul.f32 %v10818_v48, %v10818_v48  ;;  %v8319_v54 = vpop.f32.mrb[41].mxu1  ;;  %v3862_v61 = vsel %vm3826_vm5, %v10818_v48, 0.0 }
 0x43a   :  { %v3848_v55 = vsel %vm3826_vm5, %v3843_v46, 0.0  ;;  %v10824_v60 = vpop.f32.mrb[42].mxu1 }
 0x43b   :  { %v3849_v58 = vadd.f32 %v3848_v55, %v3847_v51  ;;  %v3863_v63 = vsel %vm3826_vm5, %v10824_v60, 0.0  ;;  %v3879_v1 = vmul.f32 %v10824_v60, %v10824_v60  ;;  %v8320_v2 = vpop.f32.mrb[43].mxu1  ;;  %v3883_v6 = vsel %vm3826_vm5, %v3878_v52, 0.0 }
 0x43c   :  { %v3864_v4 = vadd.f32 %v3863_v63, %v3862_v61 }
 0x43d   :  { %v10832_v5 = vpop.f32.mrb[44].mxu0  ;;  %v3884_v9 = vsel %vm3826_vm5, %v3879_v1, 0.0 }
 0x43e   :  { %v3830_v12 = vsel %vm3826_vm5, %v10832_v5, 0.0  ;;  %v3844_v14 = vmul.f32 %v10832_v5, %v10832_v5  ;;  %v8267_v15 = vpop.f32.mrb[45].mxu0  ;;  %v3885_v17 = vadd.f32 %v3884_v9, %v3883_v6 }
 0x43f   :  { %v3831_v18 = vadd.f32 %v3830_v12, %v3829_v49  ;;  %v10840_v11 = vpop.f32.mrb[46].mxu0 }
 0x440   :  { %v3850_v19 = vsel %vm3826_vm5, %v3844_v14, 0.0  ;;  %v3832_v20 = vsel %vm3826_vm5, %v10840_v11, 0.0  ;;  %v3845_v22 = vmul.f32 %v10840_v11, %v10840_v11  ;;  %v8268_v23 = vpop.f32.mrb[47].mxu0  ;;  %v10847_v25 = vpop.f32.mrb[44].mxu1 }
 0x441   :  { %v3851_v24 = vadd.f32 %v3850_v19, %v3849_v58  ;;  %v3833_v29 = vadd.f32 %v3832_v20, %v3831_v18  ;;  %v3865_v26 = vsel %vm3826_vm5, %v10847_v25, 0.0  ;;  %v3880_v36 = vmul.f32 %v10847_v25, %v10847_v25  ;;  %v8323_v62 = vpop.f32.mrb[45].mxu1 }
 0x442   :  { %v3852_v56 = vsel %vm3826_vm5, %v3845_v22, 0.0  ;;  %v3866_v59 = vadd.f32 %v3865_v26, %v3864_v4  ;;  %v10854_v57 = vpop.f32.mrb[46].mxu1 }
 0x443   :  { %v3853_v13 = vadd.f32 %v3852_v56, %v3851_v24  ;;  %v3886_v10 = vsel %vm3826_vm5, %v3880_v36, 0.0  ;;  %v3867_v3 = vsel %vm3826_vm5, %v10854_v57, 0.0  ;;  %v3881_v21 = vmul.f32 %v10854_v57, %v10854_v57  ;;  %v8324_v31 = vpop.f32.mrb[47].mxu1 }
 0x444   :  { %v3887_v45 = vadd.f32 %v3886_v10, %v3885_v17  ;;  %v3868_v0 = vadd.f32 %v3867_v3, %v3866_v59 }
 0x445   :  { %v10861_v7 = vpop.f32.mrb[48].mxu0  ;;  %v3888_v44 = vsel %vm3826_vm5, %v3881_v21, 0.0 }
 0x446   :  { %v3834_v27 = vsel %vm3826_vm5, %v10861_v7, 0.0  ;;  %v3846_v35 = vmul.f32 %v10861_v7, %v10861_v7  ;;  %v8271_v32 = vpop.f32.mrb[49].mxu0  ;;  %v3889_v53 = vadd.f32 %v3888_v44, %v3887_v45  ;;  %v3905_v45 = vld [vmem:[%s11579_s8] sm:$0x1] }
 0x447   :  { %v3835_v16 = vadd.f32 %v3834_v27, %v3833_v29  ;;  %v3496_v42 = vpop.f32.mrb[50].mxu0  ;;  %v3907_v27 = vld [vmem:[%s11583_s12] sm:$0x1] }
 0x448   :  { %v3854_v50 = vsel %vm3826_vm5, %v3846_v35, 0.0  ;;  %v8272_v30 = vpop.f32.mrb[51].mxu0  ;;  %v3815_v39 = vpop.f32.mrb[48].mxu1 }
 0x449   :  { %v3836_v33 = vrot.slane %v3835_v16, 4  ;;  %v3855_v38 = vadd.f32 %v3854_v50, %v3853_v13  ;;  %v3869_v41 = vsel %vm3826_vm5, %v3815_v39, 0.0  ;;  %v3882_v43 = vmul.f32 %v3815_v39, %v3815_v39  ;;  %v8327_v46 = vpop.f32.mrb[49].mxu1 }
 0x44a   :  { %v3870_v51 = vadd.f32 %v3869_v41, %v3868_v0  ;;  %v3818_v52 = vpop.f32.mrb[50].mxu1 }
 0x44b   :  { %v3837_v47 = vadd.f32 %v3836_v33, %v3835_v16  ;;  %v3856_v49 = vrot.slane %v3855_v38, 4  ;;  %v3890_v54 = vsel %vm3826_vm5, %v3882_v43, 0.0  ;;  %v8328_v55 = vpop.f32.mrb[51].mxu1 }
 0x44c   :  { %v3871_v63 = vrot.slane %v3870_v51, 4  ;;  %v3891_v1 = vadd.f32 %v3890_v54, %v3889_v53 }
 0x44d   :  { %v3838_v58 = vrot.slane %v3837_v47, 2  ;;  %v3857_v61 = vadd.f32 %v3856_v49, %v3855_v38 }
 0x44e   :  { %v3872_v6 = vadd.f32 %v3871_v63, %v3870_v51  ;;  %v3892_v9 = vrot.slane %v3891_v1, 4 }
 0x44f   :  { %v3839_v2 = vadd.f32 %v3838_v58, %v3837_v47  ;;  %v3858_v4 = vrot.slane %v3857_v61, 2 }
 0x450   :  { %v3873_v15 = vrot.slane %v3872_v6, 2  ;;  %v3893_v17 = vadd.f32 %v3892_v9, %v3891_v1 }
 0x451   :  { %v3840_v12 = vrot.slane %v3839_v2, 1  ;;  %v3859_v14 = vadd.f32 %v3858_v4, %v3857_v61 }
 0x452   :  { %v3874_v19 = vadd.f32 %v3873_v15, %v3872_v6  ;;  %v3894_v20 = vrot.slane %v3893_v17, 2 }
 0x453   :  { %v3860_v18 = vrot.slane %v3859_v14, 1  ;;  %v3841_v22 = vadd.f32 %v3840_v12, %v3839_v2 }
 0x454   :  { %v3875_v23 = vrot.slane %v3874_v19, 1  ;;  %v3895_v24 = vadd.f32 %v3894_v20, %v3893_v17 }
 0x455   :  { %v3861_v29 = vadd.f32 %v3860_v18, %v3859_v14 }
 0x456   :  { %v3876_v26 = vadd.f32 %v3875_v23, %v3874_v19  ;;  %v3896_v36 = vrot.slane %v3895_v24, 1 }
 0x458   :  { %v3877_v62 = vadd.f32 %v3876_v26, %v3841_v22  ;;  %v3897_v56 = vadd.f32 %v3896_v36, %v3895_v24 }
 0x45a   :  { %v3898_v59 = vadd.f32 %v3897_v56, %v3861_v29  ;;  %v3899_v13 = vmul.f32 0.0125, %v3877_v62 }
 0x45c   :  { %v3900_v10 = vmul.f32 0.0125, %v3898_v59  ;;  %v3901_v3 = vmul.f32 %v3899_v13, %v3899_v13 }
 0x45e   :  { %v3902_v21 = vsub.f32 %v3900_v10, %v3901_v3 }
 0x460   :  { %v3903_v31 = vadd.f32 1e-05, %v3902_v21 }
 0x462   :  { %9442 = vrsqrt.f32 %v3903_v31 }
 0x46c   :  { %v9443_v0 = vpop.eup %9442 }
 0x46d   :  { %v3906_v44 = vmul.f32 %v9443_v0, %v3905_v45 }
 0x46f   :  { %v3908_v35 = vmul.f32 %v3906_v44, %v3899_v13  ;;  %v3913_v32 = vrot.slane %v3906_v44, %v10597_v8  ;;  %v9339_v44 = vld [vmem:[%s11575_s4 + $0x8] sm:$0xff]  }
 0x471   :  { %v3909_v53 = vsub.f32 %v3907_v27, %v3908_v35  ;;  %v3931_v16 = vmul.f32 %v3913_v32, %v10824_v60  ;;  %v3932_v42 = vmul.f32 %v3913_v32, %v10847_v25  ;;  %v3933_v50 = vmul.f32 %v3913_v32, %v10854_v57  ;;  %v9340_v35 = vld [vmem:[%s11575_s4 + $0x20] sm:$0xff]  }
 0x472   :  { %v3934_v30 = vmul.f32 %v3913_v32, %v3815_v39  ;;  %v3914_v33 = vmul.f32 %v3913_v32, %v10806_v37  ;;  %v3915_v38 = vmul.f32 %v3913_v32, %v10810_v40  ;;  %v3916_v41 = vmul.f32 %v3913_v32, %v10832_v5 }
 0x473   :  { %v3923_v43 = vrot.slane %v3909_v53, %v10597_v8  ;;  %v3917_v46 = vmul.f32 %v3913_v32, %v10840_v11  ;;  %v3918_v47 = vmul.f32 %v3913_v32, %v10861_v7  ;;  %v3930_v49 = vmul.f32 %v3913_v32, %v10818_v48 }
 0x475   :  { %v3936_v60 = vadd.f32 %v3931_v16, %v3923_v43  ;;  %v3937_v51 = vadd.f32 %v3932_v42, %v3923_v43  ;;  %v3938_v25 = vadd.f32 %v3933_v50, %v3923_v43  ;;  %v3939_v52 = vadd.f32 %v3934_v30, %v3923_v43 }
 0x476   :  { %v3925_v57 = vadd.f32 %v3923_v43, %v3914_v33  ;;  %v3926_v39 = vadd.f32 %v3923_v43, %v3915_v38  ;;  %v3927_v54 = vadd.f32 %v3923_v43, %v3916_v41  ;;  %v3928_v37 = vadd.f32 %v3923_v43, %v3917_v46  ;;  %v9341_v38 = vld [vmem:[%s11575_s4 + $0x28] sm:$0xff]   ;;  %v9342_v46 = vld [vmem:[%s11575_s4 + $0x30] sm:$0xff]  }
 0x477   :  { %vm3956_vm6 = vcmp.gt.f32.partialorder %v3936_v60, 0.0  ;;  %vm3957_vm7 = vcmp.gt.f32.partialorder %v3937_v51, 0.0  ;;  %vm3958_vm8 = vcmp.gt.f32.partialorder %v3938_v25, 0.0  ;;  %vm3959_vm9 = vcmp.gt.f32.partialorder %v3939_v52, 0.0 }
 0x478   :  { %v3961_v40 = vmul.f32 0.2, %v3936_v60  ;;  %v3962_v5 = vmul.f32 0.2, %v3937_v51  ;;  %v3963_v55 = vmul.f32 0.2, %v3938_v25  ;;  %v3929_v11 = vadd.f32 %v3923_v43, %v3918_v47 }
 0x479   :  { %v3964_v58 = vmul.f32 0.2, %v3939_v52  ;;  %vm3940_vm3 = vcmp.gt.f32.partialorder %v3925_v57, 0.0  ;;  %vm3941_vm10 = vcmp.gt.f32.partialorder %v3926_v39, 0.0  ;;  %vm3942_vm11 = vcmp.gt.f32.partialorder %v3927_v54, 0.0 }
 0x47a   :  { %v3966_v48 = vsel %vm3956_vm6, %v3936_v60, %v3961_v40  ;;  %v3967_v7 = vsel %vm3957_vm7, %v3937_v51, %v3962_v5  ;;  %v3968_v61 = vsel %vm3958_vm8, %v3938_v25, %v3963_v55  ;;  %vm3943_vm12 = vcmp.gt.f32.partialorder %v3928_v37, 0.0 }
 0x47b   :  { %v3969_v63 = vsel %vm3959_vm9, %v3939_v52, %v3964_v58  ;;  %3988 = vst.msk [vmem:[#allocation4 + $0x33] sm:$0xff] %vm3826_vm5, %v3966_v48  ;;  %3989 = vst.msk [vmem:[#allocation4 + $0x3b] sm:$0xff] %vm3826_vm5, %v3967_v7  ;;  %v3945_v1 = vmul.f32 0.2, %v3925_v57  ;;  %v3946_v2 = vmul.f32 0.2, %v3926_v39  ;;  %v3935_v9 = vadd.f32 %v3930_v49, %v3923_v43 }
 0x47c   :  { %3990 = vst.msk [vmem:[#allocation4 + $0x43] sm:$0xff] %vm3826_vm5, %v3968_v61  ;;  %v3947_v4 = vmul.f32 0.2, %v3927_v54  ;;  %3991 = vst.msk [vmem:[#allocation4 + $0x4b] sm:$0xff] %vm3826_vm5, %v3969_v63  ;;  %v3948_v6 = vmul.f32 0.2, %v3928_v37 }
 0x47d   :  { %vm3944_vm13 = vcmp.gt.f32.partialorder %v3929_v11, 0.0  ;;  %v3949_v12 = vmul.f32 0.2, %v3929_v11  ;;  %v3950_v14 = vsel %vm3940_vm3, %v3925_v57, %v3945_v1  ;;  %v3951_v15 = vsel %vm3941_vm10, %v3926_v39, %v3946_v2  ;;  %v9343_v39 = vld [vmem:[%s11575_s4 + $0x38] sm:$0xff]   ;;  %v9344_v48 = vld [vmem:[%s11576_s5 + $0x20] sm:$0xff]   ;;  %v9345_v7 = vld [vmem:[%s11576_s5 + $0x28] sm:$0xff]  }
 0x47e   :  { %v3952_v17 = vsel %vm3942_vm11, %v3927_v54, %v3947_v4  ;;  %v3953_v18 = vsel %vm3943_vm12, %v3928_v37, %v3948_v6  ;;  %3982 = vst.msk [vmem:[#allocation4 + $0x1] sm:$0xff] %vm3826_vm5, %v3950_v14  ;;  %3983 = vst.msk [vmem:[#allocation4 + $0x9] sm:$0xff] %vm3826_vm5, %v3951_v15  ;;  %vm3955_vm14 = vcmp.gt.f32.partialorder %v3935_v9, 0.0  ;;  %v3960_v20 = vmul.f32 0.2, %v3935_v9  ;;  %v9346_v61 = vld [vmem:[%s11576_s5 + $0x30] sm:$0xff]  }
 0x47f   :  { %3984 = vst.msk [vmem:[#allocation4 + $0x11] sm:$0xff] %vm3826_vm5, %v3952_v17  ;;  %v3954_v19 = vsel %vm3944_vm13, %v3929_v11, %v3949_v12  ;;  %3985 = vst.msk [vmem:[#allocation4 + $0x19] sm:$0xff] %vm3826_vm5, %v3953_v18  ;;  %v9347_v63 = vld [vmem:[%s11576_s5 + $0x38] sm:$0xff]  }
 0x480   :  { %3986 = vst.msk [vmem:[#allocation4 + $0x21] sm:$0xff] %vm3826_vm5, %v3954_v19  ;;  %v3965_v22 = vsel %vm3955_vm14, %v3935_v9, %v3960_v20 }
 0x481   :  { %3987 = vst.msk [vmem:[#allocation4 + $0x2b] sm:$0xff] %vm3826_vm5, %v3965_v22 }
 0x483   :  { %v4323_v23 = vld [vmem:[#allocation4 + $0x3b] ss:$2 sm:$0xff]  ;;  %v4325_v29 = vld [vmem:[#allocation4 + $0x4b] ss:$2 sm:$0xf] }
 0x484   :  { %v4327_v3 = vpack.c.bf16 %v4325_v29, %v4325_v29  ;;  %v4315_v31 = vld [vmem:[#allocation4 + $0x3a] ss:$2 sm:$0xff]  ;;  %v4317_v42 = vld [vmem:[#allocation4 + $0x4a] ss:$2 sm:$0xf] }
 0x485   :  { %v4004_v24 = vld [vmem:[#allocation4 + $0x1] ss:$2 sm:$0xff]  ;;  %v3992_v59 = vld [vmem:[#allocation4] ss:$2 sm:$0xff]  ;;  %v4319_v41 = vpack.c.bf16 %v4317_v42, %v4317_v42 }
 0x486   :  { %v4006_v26 = vld [vmem:[#allocation4 + $0x11] ss:$2 sm:$0xff]  ;;  %v3994_v13 = vld [vmem:[#allocation4 + $0x10] ss:$2 sm:$0xff] }
 0x487   :  { %v4008_v36 = vld [vmem:[#allocation4 + $0x21] ss:$2 sm:$0xf]  ;;  %v4009_v62 = vpack.c.bf16 %v4006_v26, %v4004_v24  ;;  %v3997_v0 = vpack.c.bf16 %v3994_v13, %v3992_v59  ;;  %v3996_v32 = vld [vmem:[#allocation4 + $0x20] ss:$2 sm:$0xf] }
 0x488   :  { %v4010_v56 = vpack.c.bf16 %v4008_v36, %v4008_v36  ;;  %v4321_v10 = vld [vmem:[#allocation4 + $0x2b] ss:$2 sm:$0xff]  ;;  %v4313_v21 = vld [vmem:[#allocation4 + $0x2a] ss:$2 sm:$0xff]  ;;  %v3998_v50 = vpack.c.bf16 %v3996_v32, %v3996_v32 }
 0x489   :  { %8333 = vmatprep.mubr.msk.bf16.mxu0 %vm3826_vm5, %v4009_v62  ;;  %v4326_v45 = vpack.c.bf16 %v4323_v23, %v4321_v10  ;;  %v4318_v27 = vpack.c.bf16 %v4315_v31, %v4313_v21  ;;  %v4149_v53 = vld [vmem:[#allocation4 + $0x2] ss:$2 sm:$0xff]  ;;  %v4151_v16 = vld [vmem:[#allocation4 + $0x12] ss:$2 sm:$0xff]  ;;  %v4231_v49 = vld [vmem:[#allocation4 + $0x3] ss:$2 sm:$0xff] }
 0x48a   :  { %8334 = vmatmul.mubr.msk.bf16.vlgmr.msra.gmra.mrb[52].mxu0 %vm3826_vm5, %v4010_v56  ;;  %v4437_v30 = vld [vmem:[#allocation4 + $0x2c] ss:$2 sm:$0xff]  ;;  %v4439_v33 = vld [vmem:[#allocation4 + $0x3c] ss:$2 sm:$0xff]  ;;  %v4233_v60 = vld [vmem:[#allocation4 + $0x13] ss:$2 sm:$0xff] }
 0x48b   :  { %8365 = vmatprep.mubr.msk.bf16.mxu1 %vm3826_vm5, %v4326_v45  ;;  %8338 = vmatpush3.bf16.msra.mxu0 %v10802_v34  ;;  %v4442_v43 = vpack.c.bf16 %v4439_v33, %v4437_v30  ;;  %v4153_v47 = vld [vmem:[#allocation4 + $0x22] ss:$2 sm:$0xf]  ;;  %v4441_v51 = vld [vmem:[#allocation4 + $0x4c] ss:$2 sm:$0xf]  ;;  %v4236_v54 = vpack.c.bf16 %v4233_v60, %v4231_v49 }
 0x48c   :  { %8366 = vmatmul.mubr.msk.bf16.vlgmr.msra.gmra.mrb[52].mxu1 %vm3826_vm5, %v4327_v3  ;;  %8341 = vmatprep.mubr.msk.bf16.mxu0 %vm3826_vm5, %v3997_v0  ;;  %v4155_v25 = vpack.c.bf16 %v4153_v47, %v4153_v47  ;;  %v4502_v52 = vld [vmem:[#allocation4 + $0x2d] ss:$2 sm:$0xff]  ;;  %v4504_v57 = vld [vmem:[#allocation4 + $0x3d] ss:$2 sm:$0xff]  ;;  %v4443_v37 = vpack.c.bf16 %v4441_v51, %v4441_v51 }
 0x48d   :  { %8370 = vmatpush3.bf16.msra.mxu1 %v10802_v34  ;;  %8373 = vmatprep.mubr.msk.bf16.mxu1 %vm3826_vm5, %v4318_v27  ;;  %v4154_v34 = vpack.c.bf16 %v4151_v16, %v4149_v53  ;;  %v4507_v40 = vpack.c.bf16 %v4504_v57, %v4502_v52  ;;  %v4235_v5 = vld [vmem:[#allocation4 + $0x23] ss:$2 sm:$0xf]  ;;  %v4506_v55 = vld [vmem:[#allocation4 + $0x4d] ss:$2 sm:$0xf] }
 0x48e   :  { %8339 = vmatprep.subr.bf16.mxu0 %v9339_v44  ;;  %8371 = vmatprep.subr.bf16.mxu1 %v9339_v44  ;;  %v4237_v11 = vpack.c.bf16 %v4235_v5, %v4235_v5  ;;  %v4508_v58 = vpack.c.bf16 %v4506_v55, %v4506_v55 }
 0x48f   :  { %8340 = vmatpush3.bf16.msra.mxu0 %v9339_v44 }
 0x490   :  { %8345 = vmatprep.subr.bf16.mxu0 %v9340_v35 }
 0x491   :  { %8372 = vmatpush3.bf16.msra.mxu1 %v9339_v44 }
 0x492   :  { %8377 = vmatprep.subr.bf16.mxu1 %v9340_v35 }
 0x496   :  { %8342 = vmatmul.mubr.msk.bf16.vlgmr.msra.gmra.mrb[52].mxu0 %vm3826_vm5, %v3998_v50 }
 0x497   :  { %8346 = vmatpush3.bf16.msra.mxu0 %v9340_v35  ;;  %8349 = vmatprep.mubr.msk.bf16.mxu0 %vm3826_vm5, %v4154_v34 }
 0x498   :  { %8374 = vmatmul.mubr.msk.bf16.vlgmr.msra.gmra.mrb[52].mxu1 %vm3826_vm5, %v4319_v41  ;;  %8347 = vmatprep.subr.bf16.mxu0 %v9341_v38 }
 0x499   :  { %8378 = vmatpush3.bf16.msra.mxu1 %v9340_v35  ;;  %8381 = vmatprep.mubr.msk.bf16.mxu1 %vm3826_vm5, %v4442_v43 }
 0x49a   :  { %8379 = vmatprep.subr.bf16.mxu1 %v9341_v38 }
 0x49b   :  { %8348 = vmatpush3.bf16.msra.mxu0 %v9341_v38 }
 0x49c   :  { %8353 = vmatprep.subr.bf16.mxu0 %v9342_v46 }
 0x49d   :  { %8380 = vmatpush3.bf16.msra.mxu1 %v9341_v38 }
 0x49e   :  { %8385 = vmatprep.subr.bf16.mxu1 %v9342_v46 }
 0x4a2   :  { %8350 = vmatmul.mubr.msk.bf16.vlgmr.msra.gmra.mrb[52].mxu0 %vm3826_vm5, %v4155_v25 }
 0x4a3   :  { %8354 = vmatpush3.bf16.msra.mxu0 %v9342_v46  ;;  %8357 = vmatprep.mubr.msk.bf16.mxu0 %vm3826_vm5, %v4236_v54 }
 0x4a4   :  { %8382 = vmatmul.mubr.msk.bf16.vlgmr.msra.gmra.mrb[52].mxu1 %vm3826_vm5, %v4443_v37  ;;  %8355 = vmatprep.subr.bf16.mxu0 %v9343_v39 }
 0x4a5   :  { %8386 = vmatpush3.bf16.msra.mxu1 %v9342_v46  ;;  %8389 = vmatprep.mubr.msk.bf16.mxu1 %vm3826_vm5, %v4507_v40 }
 0x4a6   :  { %8387 = vmatprep.subr.bf16.mxu1 %v9343_v39 }
 0x4a7   :  { %8356 = vmatpush3.bf16.msra.mxu0 %v9343_v39 }
 0x4a8   :  { %8393 = vmatprep.subr.bf16.mxu0 %v9472_v28 }
 0x4a9   :  { %8388 = vmatpush3.bf16.msra.mxu1 %v9343_v39 }
 0x4aa   :  { %8441 = vmatprep.subr.bf16.mxu1 %v9472_v28 }
 0x4ae   :  { %8358 = vmatmul.mubr.msk.bf16.vlgmr.msra.gmra.mrb[52].mxu0 %vm3826_vm5, %v4237_v11 }
 0x4af   :  { %8401 = vmatprep.mubr.msk.bf16.mxu0 %vm9473_vm4, %v9472_v28  ;;  %8394 = vmatpush3.bf16.msra.mxu0 %v9344_v48 }
 0x4b0   :  { %8390 = vmatmul.mubr.msk.bf16.vlgmr.msra.gmra.mrb[52].mxu1 %vm3826_vm5, %v4508_v58  ;;  %8395 = vmatprep.subr.bf16.mxu0 %v9472_v28 }
 0x4b1   :  { %8449 = vmatprep.mubr.msk.bf16.mxu1 %vm9473_vm4, %v9472_v28  ;;  %8442 = vmatpush3.bf16.msra.mxu1 %v9344_v48 }
 0x4b2   :  { %8443 = vmatprep.subr.bf16.mxu1 %v9472_v28 }
 0x4b3   :  { %8396 = vmatpush3.bf16.msra.mxu0 %v9345_v7 }
 0x4b4   :  { %8397 = vmatprep.subr.bf16.mxu0 %v9472_v28 }
 0x4b5   :  { %8444 = vmatpush3.bf16.msra.mxu1 %v9345_v7 }
 0x4b6   :  { %8445 = vmatprep.subr.bf16.mxu1 %v9472_v28 }
 0x4b7   :  { %8398 = vmatpush3.bf16.msra.mxu0 %v9346_v61 }
 0x4b8   :  { %8399 = vmatprep.subr.bf16.mxu0 %v9472_v28 }
 0x4b9   :  { %8446 = vmatpush3.bf16.msra.mxu1 %v9346_v61 }
 0x4ba   :  { %8447 = vmatprep.subr.bf16.mxu1 %v9472_v28 }
 0x4bb   :  { %8400 = vmatpush3.bf16.msra.mxu0 %v9347_v63 }
 0x4bc   :  { %8405 = vmatprep.subr.bf16.mxu0 %v9472_v28 }
 0x4bd   :  { %8448 = vmatpush3.bf16.msra.mxu1 %v9347_v63 }
 0x4be   :  { %8453 = vmatprep.subr.bf16.mxu1 %v9472_v28 }
 0x581   :  { %v10973_v1 = vpop.f32.mrb[52].mxu0 }
 0x582   :  { %v10975_v2 = vpop.f32.mrb[53].mxu0  ;;  %v4571_v20 = vsel %vm4570_vm15, %v10973_v1, 0.0  ;;  %v4581_v22 = vmul.f32 %v10973_v1, %v10973_v1 }
 0x583   :  { %v10977_v4 = vpop.f32.mrb[52].mxu1  ;;  %v8360_v6 = vpop.f32.mrb[54].mxu0  ;;  %v4579_v9 = vmul.f32 %v10975_v2, %v10975_v2  ;;  %v4567_v15 = vsel %vm4566_vm1, %v10975_v2, 0.0 }
 0x584   :  { %v10981_v12 = vpop.f32.mrb[53].mxu1  ;;  %v10983_v14 = vpop.f32.mrb[55].mxu0  ;;  %v4607_v26 = vmul.f32 %v10977_v4, %v10977_v4  ;;  %v4596_v21 = vsel %vm4570_vm15, %v10977_v4, 0.0  ;;  %v4585_v44 = vsel %vm4570_vm15, %v4581_v22, 0.0 }
 0x585   :  { %v4605_v17 = vmul.f32 %v10981_v12, %v10981_v12  ;;  %v8392_v18 = vpop.f32.mrb[54].mxu1  ;;  %v4568_v19 = vsel %vm4566_vm1, %v10983_v14, 0.0  ;;  %v4580_v24 = vmul.f32 %v10983_v14, %v10983_v14  ;;  %v4593_v36 = vsel %vm4566_vm1, %v10981_v12, 0.0 }
 0x586   :  { %v4569_v23 = vadd.f32 %v4568_v19, %v4567_v15  ;;  %v4552_v29 = vpop.f32.mrb[55].mxu1  ;;  %v4582_v59 = vsel %vm4566_vm1, %v4579_v9, 0.0  ;;  %v4611_v53 = vsel %vm4570_vm15, %v4607_v26, 0.0 }
 0x587   :  { %v4594_v62 = vsel %vm4566_vm1, %v4552_v29, 0.0  ;;  %v4606_v56 = vmul.f32 %v4552_v29, %v4552_v29  ;;  %v4583_v10 = vsel %vm4566_vm1, %v4580_v24, 0.0  ;;  %v4608_v31 = vsel %vm4566_vm1, %v4605_v17, 0.0  ;;  %v4626_v17 = vld [vmem:[%s11580_s9] sm:$0x1] }
 0x588   :  { %v4572_v13 = vadd.f32 %v4571_v20, %v4569_v23  ;;  %v4595_v3 = vadd.f32 %v4594_v62, %v4593_v36  ;;  %v4584_v45 = vadd.f32 %v4583_v10, %v4582_v59  ;;  %v4628_v20 = vld [vmem:[%s11584_s13] sm:$0x1] }
 0x589   :  { %v4609_v0 = vsel %vm4566_vm1, %v4606_v56, 0.0 }
 0x58a   :  { %v4573_v27 = vrot.slane %v4572_v13, 4  ;;  %v4597_v35 = vadd.f32 %v4596_v21, %v4595_v3  ;;  %v4610_v32 = vadd.f32 %v4609_v0, %v4608_v31  ;;  %v4586_v16 = vadd.f32 %v4585_v44, %v4584_v45 }
 0x58c   :  { %v4574_v42 = vadd.f32 %v4573_v27, %v4572_v13  ;;  %v4598_v50 = vrot.slane %v4597_v35, 4  ;;  %v4612_v30 = vadd.f32 %v4611_v53, %v4610_v32  ;;  %v4587_v33 = vrot.slane %v4586_v16, 4 }
 0x58e   :  { %v4575_v38 = vrot.slane %v4574_v42, 2  ;;  %v4599_v34 = vadd.f32 %v4598_v50, %v4597_v35  ;;  %v4613_v41 = vrot.slane %v4612_v30, 4  ;;  %v4588_v43 = vadd.f32 %v4587_v33, %v4586_v16  ;;  %v9348_v33 = vld [vmem:[%s11576_s5] sm:$0xff]  }
 0x590   :  { %v4576_v46 = vadd.f32 %v4575_v38, %v4574_v42  ;;  %v4600_v47 = vrot.slane %v4599_v34, 2  ;;  %v4614_v49 = vadd.f32 %v4613_v41, %v4612_v30  ;;  %v4589_v60 = vrot.slane %v4588_v43, 2 }
 0x592   :  { %v4577_v51 = vrot.slane %v4576_v46, 1  ;;  %v4601_v25 = vadd.f32 %v4600_v47, %v4599_v34  ;;  %v4615_v52 = vrot.slane %v4614_v49, 2  ;;  %v4590_v57 = vadd.f32 %v4589_v60, %v4588_v43  ;;  %v9350_v47 = vld [vmem:[%s11576_s5 + $0x10] sm:$0xff]  }
 0x594   :  { %v4578_v39 = vadd.f32 %v4577_v51, %v4576_v46  ;;  %v4602_v54 = vrot.slane %v4601_v25, 1  ;;  %v4616_v37 = vadd.f32 %v4615_v52, %v4614_v49  ;;  %v4591_v40 = vrot.slane %v4590_v57, 1  ;;  %v9349_v46 = vld [vmem:[%s11576_s5 + $0x8] sm:$0xff]   ;;  %v9351_v49 = vld [vmem:[%s11576_s5 + $0x18] sm:$0xff]  }
 0x596   :  { %v4603_v5 = vadd.f32 %v4602_v54, %v4601_v25  ;;  %v4617_v55 = vrot.slane %v4616_v37, 1  ;;  %v4592_v11 = vadd.f32 %v4591_v40, %v4590_v57  ;;  %v9352_v57 = vld [vmem:[%s11576_s5 + $0x40] sm:$0xff]   ;;  %v9354_v40 = vld [vmem:[%s11576_s5 + $0x50] sm:$0xff]  }
 0x598   :  { %v4604_v58 = vadd.f32 %v4603_v5, %v4578_v39  ;;  %v4618_v48 = vadd.f32 %v4617_v55, %v4616_v37  ;;  %v9353_v37 = vld [vmem:[%s11576_s5 + $0x48] sm:$0xff]   ;;  %v9355_v5 = vld [vmem:[%s11576_s5 + $0x58] sm:$0xff]  }
 0x59a   :  { %v4619_v7 = vadd.f32 %v4618_v48, %v4592_v11  ;;  %v4620_v61 = vmul.f32 0.025, %v4604_v58 }
 0x59c   :  { %v4621_v63 = vmul.f32 0.025, %v4619_v7  ;;  %v4622_v6 = vmul.f32 %v4620_v61, %v4620_v61  ;;  %v9356_v7 = vld [vmem:[%s11576_s5 + $0x60] sm:$0xff]  }
 0x59e   :  { %v4623_v9 = vsub.f32 %v4621_v63, %v4622_v6  ;;  %v9357_v6 = vld [vmem:[%s11576_s5 + $0x68] sm:$0xff]  }
 0x5a0   :  { %v4624_v15 = vadd.f32 1e-05, %v4623_v9  ;;  %v9358_v9 = vld [vmem:[%s11576_s5 + $0x70] sm:$0xff]  }
 0x5a2   :  { %9444 = vrsqrt.f32 %v4624_v15  ;;  %v9359_v15 = vld [vmem:[%s11576_s5 + $0x78] sm:$0xff]  }
 0x5ac   :  { %v9445_v18 = vpop.eup %9444 }
 0x5ad   :  { %v4627_v19 = vmul.f32 %v9445_v18, %v4626_v17 }
 0x5af   :  { %v4629_v22 = vmul.f32 %v4627_v19, %v4620_v61  ;;  %v4634_v23 = vrot.slane %v4627_v19, %v10597_v8 }
 0x5b1   :  { %v4630_v24 = vsub.f32 %v4628_v20, %v4629_v22  ;;  %v4635_v26 = vmul.f32 %v4634_v23, %v10975_v2  ;;  %v4636_v36 = vmul.f32 %v4634_v23, %v10983_v14  ;;  %v4637_v62 = vmul.f32 %v10973_v1, %v4634_v23 }
 0x5b2   :  { %v4647_v56 = vmul.f32 %v4634_v23, %v10981_v12  ;;  %v4648_v59 = vmul.f32 %v4634_v23, %v4552_v29  ;;  %v4649_v13 = vmul.f32 %v10977_v4, %v4634_v23 }
 0x5b3   :  { %v4642_v10 = vrot.slane %v4630_v24, %v10597_v8  ;;  %v9360_v24 = vld [vmem:[%s11577_s6 + $0x40] sm:$0xff]  }
 0x5b5   :  { %v4644_v3 = vadd.f32 %v4642_v10, %v4635_v26  ;;  %v4645_v21 = vadd.f32 %v4642_v10, %v4636_v36  ;;  %v4646_v31 = vadd.f32 %v4642_v10, %v4637_v62  ;;  %v4650_v45 = vadd.f32 %v4647_v56, %v4642_v10  ;;  %v9361_v26 = vld [vmem:[%s11577_s6 + $0x48] sm:$0xff]   ;;  %v9362_v36 = vld [vmem:[%s11577_s6 + $0x50] sm:$0xff]   ;;  %v9363_v62 = vld [vmem:[%s11577_s6 + $0x58] sm:$0xff]  }
 0x5b6   :  { %v4651_v0 = vadd.f32 %v4648_v59, %v4642_v10  ;;  %v4652_v44 = vadd.f32 %v4649_v13, %v4642_v10  ;;  %v9364_v56 = vld [vmem:[%s11577_s6 + $0x60] sm:$0xff]   ;;  %v9365_v59 = vld [vmem:[%s11577_s6 + $0x68] sm:$0xff]   ;;  %v9366_v13 = vld [vmem:[%s11577_s6 + $0x70] sm:$0xff]  }
 0x5b7   :  { %vm4653_vm5 = vcmp.gt.f32.partialorder %v4644_v3, 0.0  ;;  %vm4654_vm2 = vcmp.gt.f32.partialorder %v4645_v21, 0.0  ;;  %vm4655_vm6 = vcmp.gt.f32.partialorder %v4646_v31, 0.0  ;;  %v4656_v2 = vmul.f32 0.2, %v4644_v3  ;;  %v9367_v10 = vld [vmem:[%s11577_s6 + $0x78] sm:$0xff]  }
 0x5b8   :  { %v4657_v14 = vmul.f32 0.2, %v4645_v21  ;;  %v4658_v27 = vmul.f32 0.2, %v4646_v31  ;;  %vm4662_vm7 = vcmp.gt.f32.partialorder %v4650_v45, 0.0  ;;  %vm4663_vm8 = vcmp.gt.f32.partialorder %v4651_v0, 0.0 }
 0x5b9   :  { %v4659_v1 = vsel %vm4653_vm5, %v4644_v3, %v4656_v2  ;;  %vm4664_vm9 = vcmp.gt.f32.partialorder %v4652_v44, 0.0  ;;  %v4665_v12 = vmul.f32 0.2, %v4650_v45  ;;  %v4666_v4 = vmul.f32 0.2, %v4651_v0 }
 0x5ba   :  { %v4660_v29 = vsel %vm4654_vm2, %v4645_v21, %v4657_v14  ;;  %v4661_v35 = vsel %vm4655_vm6, %v4646_v31, %v4658_v27  ;;  %v4667_v32 = vmul.f32 0.2, %v4652_v44  ;;  %4677 = vst.msk [vmem:[#allocation5 + $0x1] sm:$0xff] %vm4566_vm1, %v4659_v1 }
 0x5bb   :  { %v4668_v53 = vsel %vm4662_vm7, %v4650_v45, %v4665_v12  ;;  %v4669_v16 = vsel %vm4663_vm8, %v4651_v0, %v4666_v4  ;;  %4678 = vst.msk [vmem:[#allocation5 + $0x9] sm:$0xff] %vm4566_vm1, %v4660_v29 }
 0x5bc   :  { %4679 = vst.msk [vmem:[#allocation5 + $0x11] sm:$0xf] %vm4570_vm15, %v4661_v35  ;;  %v4670_v42 = vsel %vm4664_vm9, %v4652_v44, %v4667_v32 }
 0x5bd   :  { %4680 = vst.msk [vmem:[#allocation5 + $0x17] sm:$0xff] %vm4566_vm1, %v4668_v53  ;;  %4681 = vst.msk [vmem:[#allocation5 + $0x1f] sm:$0xff] %vm4566_vm1, %v4669_v16 }
 0x5be   :  { %4682 = vst.msk [vmem:[#allocation5 + $0x27] sm:$0xf] %vm4570_vm15, %v4670_v42 }
 0x5c2   :  { %v4696_v50 = vld [vmem:[#allocation5 + $0x1] ss:$2 sm:$0xff]  ;;  %v4683_v60 = vld [vmem:[#allocation5] ss:$2 sm:$0xff] }
 0x5c3   :  { %v4698_v30 = vld [vmem:[#allocation5 + $0x11] ss:$2 sm:$0x3]  ;;  %v4685_v51 = vld [vmem:[#allocation5 + $0x10] ss:$2 sm:$0x3] }
 0x5c4   :  { %v4699_v38 = vpack.c.bf16 %v4698_v30, %v4696_v50  ;;  %v5019_v34 = vld [vmem:[#allocation5 + $0x17] ss:$2 sm:$0xff]  ;;  %v5014_v25 = vld [vmem:[#allocation5 + $0x16] ss:$2 sm:$0xff]  ;;  %v4686_v39 = vpack.c.bf16 %v4685_v51, %v4683_v60 }
 0x5c5   :  { %v5021_v41 = vld [vmem:[#allocation5 + $0x27] ss:$2 sm:$0x3]  ;;  %v5016_v52 = vld [vmem:[#allocation5 + $0x26] ss:$2 sm:$0x3] }
 0x5c6   :  { %8402 = vmatmul.mubr.msk.bf16.vlgmr.msra.gmra.mrb[56].mxu0 %vm4566_vm1, %v4699_v38  ;;  %v5022_v43 = vpack.c.bf16 %v5021_v41, %v5019_v34  ;;  %v5017_v54 = vpack.c.bf16 %v5016_v52, %v5014_v25  ;;  %v4846_v55 = vld [vmem:[#allocation5 + $0x2] ss:$2 sm:$0xff]  ;;  %v4848_v11 = vld [vmem:[#allocation5 + $0x12] ss:$2 sm:$0x3] }
 0x5c7   :  { %8406 = vmatpush3.bf16.msra.mxu0 %v9348_v33  ;;  %8413 = vmatprep.mubr.msk.bf16.mxu0 %vm9473_vm4, %v9472_v28  ;;  %v5112_v58 = vld [vmem:[#allocation5 + $0x18] ss:$2 sm:$0xff]  ;;  %v5114_v48 = vld [vmem:[#allocation5 + $0x28] ss:$2 sm:$0x3]  ;;  %v4849_v61 = vpack.c.bf16 %v4848_v11, %v4846_v55 }
 0x5c8   :  { %8450 = vmatmul.mubr.msk.bf16.vlgmr.msra.gmra.mrb[56].mxu1 %vm4566_vm1, %v5022_v43  ;;  %8407 = vmatprep.subr.bf16.mxu0 %v9472_v28  ;;  %v5115_v63 = vpack.c.bf16 %v5114_v48, %v5112_v58  ;;  %v4930_v17 = vld [vmem:[#allocation5 + $0x3] ss:$2 sm:$0xff]  ;;  %v4932_v18 = vld [vmem:[#allocation5 + $0x13] ss:$2 sm:$0x3] }
 0x5c9   :  { %8454 = vmatpush3.bf16.msra.mxu1 %v9348_v33  ;;  %8461 = vmatprep.mubr.msk.bf16.mxu1 %vm9473_vm4, %v9472_v28  ;;  %v5163_v19 = vld [vmem:[#allocation5 + $0x19] ss:$2 sm:$0xff]  ;;  %v5165_v20 = vld [vmem:[#allocation5 + $0x29] ss:$2 sm:$0x3]  ;;  %v4933_v22 = vpack.c.bf16 %v4932_v18, %v4930_v17 }
 0x5ca   :  { %8455 = vmatprep.subr.bf16.mxu1 %v9472_v28  ;;  %v5166_v23 = vpack.c.bf16 %v5165_v20, %v5163_v19  ;;  %v5257_v20 = vld [vmem:[%s11581_s10] sm:$0x1]  ;;  %s6810_s10 = sshll.u32 %s9474_s16, 4  ;;  %s6811_s10 = int_to_ptr.vmem [resolvable:$true] %s6810_s10 }
 0x5cb   :  { %8408 = vmatpush3.bf16.msra.mxu0 %v9349_v46  ;;  %p9453_p1 = scmp.lt.s32.totalorder %s6811_s10, %s6811_s10 }
 0x5cc   :  { %8409 = vmatprep.subr.bf16.mxu0 %v9472_v28 }
 0x5cd   :  { %8456 = vmatpush3.bf16.msra.mxu1 %v9349_v46 }
 0x5ce   :  { %8457 = vmatprep.subr.bf16.mxu1 %v9472_v28 }
 0x5cf   :  { %8410 = vmatpush3.bf16.msra.mxu0 %v9350_v47 }
 0x5d0   :  { %8411 = vmatprep.subr.bf16.mxu0 %v9472_v28 }
 0x5d1   :  { %8458 = vmatpush3.bf16.msra.mxu1 %v9350_v47 }
 0x5d2   :  { %8459 = vmatprep.subr.bf16.mxu1 %v9472_v28 }
 0x5d3   :  { %8412 = vmatpush3.bf16.msra.mxu0 %v9351_v49 }
 0x5d4   :  { %8417 = vmatprep.subr.bf16.mxu0 %v9472_v28 }
 0x5d5   :  { %8460 = vmatpush3.bf16.msra.mxu1 %v9351_v49 }
 0x5d6   :  { %8414 = vmatmul.mubr.msk.bf16.vlgmr.msra.gmra.mrb[56].mxu0 %vm4566_vm1, %v4686_v39  ;;  %8465 = vmatprep.subr.bf16.mxu1 %v9472_v28 }
 0x5d7   :  { %8418 = vmatpush3.bf16.msra.mxu0 %v9352_v57  ;;  %8425 = vmatprep.mubr.msk.bf16.mxu0 %vm9473_vm4, %v9472_v28 }
 0x5d8   :  { %8462 = vmatmul.mubr.msk.bf16.vlgmr.msra.gmra.mrb[56].mxu1 %vm4566_vm1, %v5017_v54  ;;  %8419 = vmatprep.subr.bf16.mxu0 %v9472_v28 }
 0x5d9   :  { %8466 = vmatpush3.bf16.msra.mxu1 %v9352_v57  ;;  %8473 = vmatprep.mubr.msk.bf16.mxu1 %vm9473_vm4, %v9472_v28 }
 0x5da   :  { %8467 = vmatprep.subr.bf16.mxu1 %v9472_v28 }
 0x5db   :  { %8420 = vmatpush3.bf16.msra.mxu0 %v9353_v37 }
 0x5dc   :  { %8421 = vmatprep.subr.bf16.mxu0 %v9472_v28 }
 0x5dd   :  { %8468 = vmatpush3.bf16.msra.mxu1 %v9353_v37 }
 0x5de   :  { %8469 = vmatprep.subr.bf16.mxu1 %v9472_v28 }
 0x5df   :  { %8422 = vmatpush3.bf16.msra.mxu0 %v9354_v40 }
 0x5e0   :  { %8423 = vmatprep.subr.bf16.mxu0 %v9472_v28 }
 0x5e1   :  { %8470 = vmatpush3.bf16.msra.mxu1 %v9354_v40 }
 0x5e2   :  { %8471 = vmatprep.subr.bf16.mxu1 %v9472_v28 }
 0x5e3   :  { %8424 = vmatpush3.bf16.msra.mxu0 %v9355_v5 }
 0x5e4   :  { %8429 = vmatprep.subr.bf16.mxu0 %v9472_v28 }
 0x5e5   :  { %8472 = vmatpush3.bf16.msra.mxu1 %v9355_v5 }
 0x5e6   :  { %8426 = vmatmul.mubr.msk.bf16.vlgmr.msra.gmra.mrb[56].mxu0 %vm4566_vm1, %v4849_v61  ;;  %8477 = vmatprep.subr.bf16.mxu1 %v9472_v28 }
 0x5e7   :  { %8430 = vmatpush3.bf16.msra.mxu0 %v9356_v7  ;;  %8437 = vmatprep.mubr.msk.bf16.mxu0 %vm9473_vm4, %v9472_v28 }
 0x5e8   :  { %8474 = vmatmul.mubr.msk.bf16.vlgmr.msra.gmra.mrb[56].mxu1 %vm4566_vm1, %v5115_v63  ;;  %8431 = vmatprep.subr.bf16.mxu0 %v9472_v28 }
 0x5e9   :  { %8478 = vmatpush3.bf16.msra.mxu1 %v9356_v7  ;;  %8485 = vmatprep.mubr.msk.bf16.mxu1 %vm9473_vm4, %v9472_v28 }
 0x5ea   :  { %8479 = vmatprep.subr.bf16.mxu1 %v9472_v28 }
 0x5eb   :  { %8432 = vmatpush3.bf16.msra.mxu0 %v9357_v6 }
 0x5ec   :  { %8433 = vmatprep.subr.bf16.mxu0 %v9472_v28 }
 0x5ed   :  { %8480 = vmatpush3.bf16.msra.mxu1 %v9357_v6 }
 0x5ee   :  { %8481 = vmatprep.subr.bf16.mxu1 %v9472_v28 }
 0x5ef   :  { %8434 = vmatpush3.bf16.msra.mxu0 %v9358_v9 }
 0x5f0   :  { %8435 = vmatprep.subr.bf16.mxu0 %v9472_v28 }
 0x5f1   :  { %8482 = vmatpush3.bf16.msra.mxu1 %v9358_v9 }
 0x5f2   :  { %8483 = vmatprep.subr.bf16.mxu1 %v9472_v28 }
 0x5f3   :  { %8436 = vmatpush3.bf16.msra.mxu0 %v9359_v15 }
 0x5f4   :  { %8489 = vmatprep.subr.bf16.mxu0 %v9472_v28 }
 0x5f5   :  { %8484 = vmatpush3.bf16.msra.mxu1 %v9359_v15 }
 0x5f6   :  { %8438 = vmatmul.mubr.msk.bf16.vlgmr.msra.gmra.mrb[56].mxu0 %vm4566_vm1, %v4933_v22  ;;  %8689 = vmatprep.subr.bf16.mxu1 %v9472_v28 }
 0x5f7   :  { %8505 = vmatprep.mubr.msk.bf16.mxu0 %vm9473_vm4, %v9472_v28  ;;  %8490 = vmatpush3.bf16.msra.mxu0 %v9360_v24 }
 0x5f8   :  { %8486 = vmatmul.mubr.msk.bf16.vlgmr.msra.gmra.mrb[56].mxu1 %vm4566_vm1, %v5166_v23  ;;  %8491 = vmatprep.subr.bf16.mxu0 %v9472_v28 }
 0x5f9   :  { %8705 = vmatprep.mubr.msk.bf16.mxu1 %vm9473_vm4, %v9472_v28  ;;  %8690 = vmatpush3.bf16.msra.mxu1 %v9360_v24  ;;  %v5259_v24 = vld [vmem:[%s11585_s14] sm:$0x1] }
 0x5fa   :  { %8691 = vmatprep.subr.bf16.mxu1 %v9472_v28 }
 0x5fb   :  { %8492 = vmatpush3.bf16.msra.mxu0 %v9361_v26 }
 0x5fc   :  { %8493 = vmatprep.subr.bf16.mxu0 %v9472_v28 }
 0x5fd   :  { %8692 = vmatpush3.bf16.msra.mxu1 %v9361_v26 }
 0x5fe   :  { %8693 = vmatprep.subr.bf16.mxu1 %v9472_v28 }
 0x5ff   :  { %8494 = vmatpush3.bf16.msra.mxu0 %v9362_v36 }
 0x600   :  { %8495 = vmatprep.subr.bf16.mxu0 %v9472_v28 }
 0x601   :  { %8694 = vmatpush3.bf16.msra.mxu1 %v9362_v36 }
 0x602   :  { %8695 = vmatprep.subr.bf16.mxu1 %v9472_v28 }
 0x603   :  { %8496 = vmatpush3.bf16.msra.mxu0 %v9363_v62 }
 0x604   :  { %8497 = vmatprep.subr.bf16.mxu0 %v9472_v28 }
 0x605   :  { %8696 = vmatpush3.bf16.msra.mxu1 %v9363_v62 }
 0x606   :  { %8697 = vmatprep.subr.bf16.mxu1 %v9472_v28 }
 0x607   :  { %8498 = vmatpush3.bf16.msra.mxu0 %v9364_v56 }
 0x608   :  { %8499 = vmatprep.subr.bf16.mxu0 %v9472_v28 }
 0x609   :  { %8698 = vmatpush3.bf16.msra.mxu1 %v9364_v56 }
 0x60a   :  { %8699 = vmatprep.subr.bf16.mxu1 %v9472_v28 }
 0x60b   :  { %8500 = vmatpush3.bf16.msra.mxu0 %v9365_v59 }
 0x60c   :  { %8501 = vmatprep.subr.bf16.mxu0 %v9472_v28 }
 0x60d   :  { %8700 = vmatpush3.bf16.msra.mxu1 %v9365_v59 }
 0x60e   :  { %8701 = vmatprep.subr.bf16.mxu1 %v9472_v28 }
 0x60f   :  { %8502 = vmatpush3.bf16.msra.mxu0 %v9366_v13 }
 0x610   :  { %8503 = vmatprep.subr.bf16.mxu0 %v9472_v28 }
 0x611   :  { %8702 = vmatpush3.bf16.msra.mxu1 %v9366_v13 }
 0x612   :  { %8703 = vmatprep.subr.bf16.mxu1 %v9472_v28 }
 0x613   :  { %8504 = vmatpush3.bf16.msra.mxu0 %v9367_v10 }
 0x614   :  { %8509 = vmatprep.subr.bf16.mxu0 %v9472_v28 }
 0x615   :  { %8704 = vmatpush3.bf16.msra.mxu1 %v9367_v10 }
 0x616   :  { %8709 = vmatprep.subr.bf16.mxu1 %v9472_v28 }
 0x6c9   :  { %v5004_v3 = vpop.f32.mrb[56].mxu0 }
 0x6ca   :  { %v8439_v21 = vpop.f32.mrb[57].mxu0  ;;  %v5221_v27 = vmul.f32 %v5004_v3, %v5004_v3 }
 0x6cb   :  { %v5204_v31 = vpop.f32.mrb[56].mxu1  ;;  %v5007_v45 = vpop.f32.mrb[58].mxu0 }
 0x6cc   :  { %v8487_v0 = vpop.f32.mrb[57].mxu1  ;;  %v5213_v44 = vsel %vm185_vm0, %v5007_v45, 0.0  ;;  %v5222_v2 = vmul.f32 %v5007_v45, %v5007_v45  ;;  %v8440_v14 = vpop.f32.mrb[59].mxu0  ;;  %v5240_v53 = vmul.f32 %v5204_v31, %v5204_v31 }
 0x6cd   :  { %v5214_v1 = vadd.f32 %v5213_v44, %v5004_v3  ;;  %v5207_v12 = vpop.f32.mrb[58].mxu1 }
 0x6ce   :  { %v5223_v4 = vsel %vm185_vm0, %v5222_v2, 0.0  ;;  %v5231_v29 = vsel %vm185_vm0, %v5207_v12, 0.0  ;;  %v5241_v35 = vmul.f32 %v5207_v12, %v5207_v12  ;;  %v8488_v32 = vpop.f32.mrb[59].mxu1 }
 0x6cf   :  { %v5215_v16 = vrot.slane %v5214_v1, 4  ;;  %v5224_v42 = vadd.f32 %v5223_v4, %v5221_v27  ;;  %v5232_v50 = vadd.f32 %v5231_v29, %v5204_v31 }
 0x6d0   :  { %v5242_v30 = vsel %vm185_vm0, %v5241_v35, 0.0 }
 0x6d1   :  { %v5216_v33 = vadd.f32 %v5215_v16, %v5214_v1  ;;  %v5225_v38 = vrot.slane %v5224_v42, 4  ;;  %v5233_v34 = vrot.slane %v5232_v50, 4  ;;  %v5243_v41 = vadd.f32 %v5242_v30, %v5240_v53  ;;  %v9371_v30 = vld [vmem:[%s11577_s6 + $0x18] sm:$0xff]  }
 0x6d3   :  { %v5217_v43 = vrot.slane %v5216_v33, 2  ;;  %v5226_v46 = vadd.f32 %v5225_v38, %v5224_v42  ;;  %v5234_v47 = vadd.f32 %v5233_v34, %v5232_v50  ;;  %v5244_v49 = vrot.slane %v5243_v41, 4  ;;  %v9369_v42 = vld [vmem:[%s11577_s6 + $0x8] sm:$0xff]   ;;  %v9370_v50 = vld [vmem:[%s11577_s6 + $0x10] sm:$0xff]  }
 0x6d4   :  { %v9373_v38 = vld [vmem:[%s11577_s6 + $0x28] sm:$0xff]   ;;  %v9374_v34 = vld [vmem:[%s11577_s6 + $0x30] sm:$0xff]  }
 0x6d5   :  { %v5218_v60 = vadd.f32 %v5217_v43, %v5216_v33  ;;  %v5227_v51 = vrot.slane %v5226_v46, 2  ;;  %v5235_v25 = vrot.slane %v5234_v47, 2  ;;  %v5245_v52 = vadd.f32 %v5244_v49, %v5243_v41  ;;  %v9372_v33 = vld [vmem:[%s11577_s6 + $0x20] sm:$0xff]   ;;  %v9375_v41 = vld [vmem:[%s11577_s6 + $0x38] sm:$0xff]  }
 0x6d7   :  { %v5219_v57 = vrot.slane %v5218_v60, 1  ;;  %v5228_v39 = vadd.f32 %v5227_v51, %v5226_v46  ;;  %v5236_v54 = vadd.f32 %v5235_v25, %v5234_v47  ;;  %v5246_v37 = vrot.slane %v5245_v52, 2  ;;  %v9376_v47 = vld [vmem:[%s11577_s6 + $0x80] sm:$0xff]   ;;  %v9377_v51 = vld [vmem:[%s11577_s6 + $0x88] sm:$0xff]   ;;  %v9378_v25 = vld [vmem:[%s11577_s6 + $0x90] sm:$0xff]  }
 0x6d9   :  { %v5220_v40 = vadd.f32 %v5219_v57, %v5218_v60  ;;  %v5229_v5 = vrot.slane %v5228_v39, 1  ;;  %v5237_v55 = vrot.slane %v5236_v54, 1  ;;  %v5247_v11 = vadd.f32 %v5246_v37, %v5245_v52  ;;  %v9379_v52 = vld [vmem:[%s11577_s6 + $0x98] sm:$0xff]   ;;  %v9380_v57 = vld [vmem:[%s11577_s6 + $0xa0] sm:$0xff]  }
 0x6da   :  { %v9383_v37 = vld [vmem:[%s11577_s6 + $0xb8] sm:$0xff]  }
 0x6db   :  { %v5230_v58 = vadd.f32 %v5229_v5, %v5228_v39  ;;  %v5238_v48 = vadd.f32 %v5237_v55, %v5236_v54  ;;  %v5248_v7 = vrot.slane %v5247_v11, 1  ;;  %v9381_v39 = vld [vmem:[%s11577_s6 + $0xa8] sm:$0xff]   ;;  %v9382_v54 = vld [vmem:[%s11577_s6 + $0xb0] sm:$0xff]   ;;  %v9384_v55 = vld [vmem:[%s11577_s6 + $0xc0] sm:$0xff]  }
 0x6dd   :  { %v5239_v61 = vadd.f32 %v5238_v48, %v5220_v40  ;;  %v5249_v63 = vadd.f32 %v5248_v7, %v5247_v11  ;;  %v9385_v48 = vld [vmem:[%s11577_s6 + $0xc8] sm:$0xff]   ;;  %v9386_v7 = vld [vmem:[%s11577_s6 + $0xd0] sm:$0xff]  }
 0x6df   :  { %v5250_v6 = vadd.f32 %v5249_v63, %v5230_v58  ;;  %v5251_v9 = vmul.f32 0.05, %v5239_v61  ;;  %v9387_v61 = vld [vmem:[%s11577_s6 + $0xd8] sm:$0xff]   ;;  %v9388_v63 = vld [vmem:[%s11577_s6 + $0xe0] sm:$0xff]  }
 0x6e1   :  { %v5252_v15 = vmul.f32 0.05, %v5250_v6  ;;  %v5253_v17 = vmul.f32 %v5251_v9, %v5251_v9  ;;  %v9389_v6 = vld [vmem:[%s11577_s6 + $0xe8] sm:$0xff]  }
 0x6e3   :  { %v5254_v18 = vsub.f32 %v5252_v15, %v5253_v17  ;;  %v9391_v15 = vld [vmem:[%s11577_s6 + $0xf8] sm:$0xff]  }
 0x6e5   :  { %v5255_v19 = vadd.f32 1e-05, %v5254_v18 }
 0x6e7   :  { %9446 = vrsqrt.f32 %v5255_v19  ;;  %v9392_v19 = vld [vmem:[%s11577_s6 + $0x100] sm:$0xff]  }
 0x6f1   :  { %v9447_v22 = vpop.eup %9446 }
 0x6f2   :  { %v5258_v23 = vmul.f32 %v9447_v22, %v5257_v20 }
 0x6f4   :  { %v5260_v26 = vmul.f32 %v5258_v23, %v5251_v9  ;;  %v5265_v36 = vrot.slane %v5258_v23, %v10597_v8  ;;  %v9390_v9 = vld [vmem:[%s11577_s6 + $0xf0] sm:$0xff]   ;;  %v9393_v23 = vld [vmem:[%s11577_s6 + $0x108] sm:$0xff]  }
 0x6f6   :  { %v5261_v62 = vsub.f32 %v5259_v24, %v5260_v26  ;;  %v5266_v56 = vmul.f32 %v5265_v36, %v5004_v3  ;;  %v5267_v59 = vmul.f32 %v5265_v36, %v5007_v45  ;;  %v5276_v13 = vmul.f32 %v5265_v36, %v5204_v31  ;;  %v9368_v31 = vld [vmem:[%s11577_s6] sm:$0xff]   ;;  %v9394_v24 = vld [vmem:[%s11577_s6 + $0x110] sm:$0xff]   ;;  %v9395_v26 = vld [vmem:[%s11577_s6 + $0x118] sm:$0xff]  }
 0x6f7   :  { %v5277_v10 = vmul.f32 %v5265_v36, %v5207_v12  ;;  %v9396_v36 = vld [vmem:[%s11577_s6 + $0x120] sm:$0xff]  }
 0x6f8   :  { %v5272_v21 = vrot.slane %v5261_v62, %v10597_v8  ;;  %v9397_v62 = vld [vmem:[%s11577_s6 + $0x128] sm:$0xff]  }
 0x6fa   :  { %v5274_v0 = vadd.f32 %v5272_v21, %v5266_v56  ;;  %v5275_v44 = vadd.f32 %v5272_v21, %v5267_v59  ;;  %v5278_v2 = vadd.f32 %v5276_v13, %v5272_v21  ;;  %v5279_v14 = vadd.f32 %v5277_v10, %v5272_v21  ;;  %v9398_v56 = vld [vmem:[%s11577_s6 + $0x130] sm:$0xff]   ;;  %v9399_v59 = vld [vmem:[%s11577_s6 + $0x138] sm:$0xff]   ;;  %v9400_v21 = vld [vmem:[%s11577_s6 + $0x140] sm:$0xff]  }
 0x6fc   :  { %vm5280_vm0 = vcmp.gt.f32.partialorder %v5274_v0, 0.0  ;;  %vm5281_vm3 = vcmp.gt.f32.partialorder %v5275_v44, 0.0  ;;  %v5282_v27 = vmul.f32 0.2, %v5274_v0  ;;  %v5283_v1 = vmul.f32 0.2, %v5275_v44 }
 0x6fd   :  { %vm5286_vm10 = vcmp.gt.f32.partialorder %v5278_v2, 0.0  ;;  %vm5287_vm11 = vcmp.gt.f32.partialorder %v5279_v14, 0.0  ;;  %v5288_v4 = vmul.f32 0.2, %v5278_v2  ;;  %v5289_v29 = vmul.f32 0.2, %v5279_v14 }
 0x6fe   :  { %v5284_v35 = vsel %vm5280_vm0, %v5274_v0, %v5282_v27  ;;  %v5285_v32 = vsel %vm5281_vm3, %v5275_v44, %v5283_v1  ;;  %v9403_v27 = vld [vmem:[%s11577_s6 + $0x158] sm:$0xff]   ;;  %v9404_v1 = vld [vmem:[%s11577_s6 + $0x160] sm:$0xff]  }
 0x6ff   :  { %v5290_v3 = vsel %vm5286_vm10, %v5278_v2, %v5288_v4  ;;  %v5291_v45 = vsel %vm5287_vm11, %v5279_v14, %v5289_v29  ;;  %5292 = vst [vmem:[#allocation6] sm:$0xff] %v5284_v35  ;;  %5293 = vst [vmem:[#allocation6 + $0x8] sm:$0x3] %v5285_v32  ;;  %v9401_v2 = vld [vmem:[%s11577_s6 + $0x148] sm:$0xff]   ;;  %v9402_v14 = vld [vmem:[%s11577_s6 + $0x150] sm:$0xff]  }
 0x700   :  { %5294 = vst [vmem:[#allocation6 + $0xa] sm:$0xff] %v5290_v3  ;;  %5295 = vst [vmem:[#allocation6 + $0x12] sm:$0x3] %v5291_v45  ;;  %v9405_v4 = vld [vmem:[%s11577_s6 + $0x168] sm:$0xff]   ;;  %v9406_v29 = vld [vmem:[%s11577_s6 + $0x170] sm:$0xff]  }
 0x701   :  { %v9407_v35 = vld [vmem:[%s11577_s6 + $0x178] sm:$0xff]   ;;  %v9408_v45 = vld [vmem:[%s11577_s6 + $0x180] sm:$0xff]  }
 0x706   :  { %v5314_v8 = vld [vmem:[#allocation6 + $0x1] sm:$0x1]  ;;  %v5296_v43 = vld [vmem:[#allocation6] sm:$0x1]  ;;  %v5509_v40 = vld [vmem:[#allocation6 + $0x2] sm:$0x1] }
 0x707   :  { %v5315_v12 = vpack.c.bf16 %v5314_v8, %v5314_v8  ;;  %v6375_v53 = vld [vmem:[#allocation6 + $0xb] sm:$0x1]  ;;  %v6373_v46 = vld [vmem:[#allocation6 + $0xa] sm:$0x1]  ;;  %v5297_v49 = vpack.c.bf16 %v5296_v43, %v5296_v43  ;;  %v6457_v5 = vld [vmem:[#allocation6 + $0xc] sm:$0x1]  ;;  %v5510_v11 = vpack.c.bf16 %v5509_v40, %v5509_v40 }
 0x708   :  { %v6376_v16 = vpack.c.bf16 %v6375_v53, %v6375_v53  ;;  %v6374_v60 = vpack.c.bf16 %v6373_v46, %v6373_v46  ;;  %v6458_v58 = vpack.c.bf16 %v6457_v5, %v6457_v5  ;;  %v5617_v17 = vld [vmem:[#allocation6 + $0x3] sm:$0x1]  ;;  %v6500_v18 = vld [vmem:[#allocation6 + $0xd] sm:$0x1]  ;;  %v5725_v13 = vld [vmem:[#allocation6 + $0x4] sm:$0x1] }
 0x709   :  { %8506 = vmatmul.mubr.bf16.vlgmr.msra.gmra.mrb[60].mxu0 %v5315_v12  ;;  %v5618_v20 = vpack.c.bf16 %v5617_v17, %v5617_v17  ;;  %v6501_v22 = vpack.c.bf16 %v6500_v18, %v6500_v18  ;;  %v6543_v10 = vld [vmem:[#allocation6 + $0xe] sm:$0x1]  ;;  %v5726_v0 = vpack.c.bf16 %v5725_v13, %v5725_v13  ;;  %v5833_v32 = vld [vmem:[#allocation6 + $0x5] sm:$0x1]  ;;  %v6586_v3 = vld [vmem:[#allocation6 + $0xf] sm:$0x1] }
 0x70a   :  { %8510 = vmatpush3.bf16.msra.mxu0 %v9368_v31  ;;  %8706 = vmatmul.mubr.bf16.vlgmr.msra.gmra.mrb[60].mxu1 %v6376_v16  ;;  %v6544_v44 = vpack.c.bf16 %v6543_v10, %v6543_v10  ;;  %v5834_v8 = vpack.c.bf16 %v5833_v32, %v5833_v32  ;;  %v9409_v12 = vld [vmem:[%s11577_s6 + $0x188] sm:$0xff]   ;;  %v9410_v53 = vld [vmem:[%s11577_s6 + $0x190] sm:$0xff]   ;;  %v9411_v16 = vld [vmem:[%s11577_s6 + $0x198] sm:$0xff]  }
 0x70b   :  { %8710 = vmatpush3.bf16.msra.mxu1 %v9368_v31  ;;  %8511 = vmatprep.subr.bf16.mxu0 %v9472_v28  ;;  %v6587_v31 = vpack.c.bf16 %v6586_v3, %v6586_v3 }
 0x70c   :  { %8711 = vmatprep.subr.bf16.mxu1 %v9472_v28  ;;  %8525 = vmatprep.mubr.msk.bf16.mxu0 %vm9473_vm4, %v9472_v28 }
 0x70d   :  { %8725 = vmatprep.mubr.msk.bf16.mxu1 %vm9473_vm4, %v9472_v28 }
 0x70e   :  { %8512 = vmatpush3.bf16.msra.mxu0 %v9369_v42 }
 0x70f   :  { %8712 = vmatpush3.bf16.msra.mxu1 %v9369_v42  ;;  %8513 = vmatprep.subr.bf16.mxu0 %v9472_v28  ;;  %v9412_v42 = vld [vmem:[%s11577_s6 + $0x1a0] sm:$0xff]  }
 0x710   :  { %8713 = vmatprep.subr.bf16.mxu1 %v9472_v28 }
 0x712   :  { %8514 = vmatpush3.bf16.msra.mxu0 %v9370_v50 }
 0x713   :  { %8714 = vmatpush3.bf16.msra.mxu1 %v9370_v50  ;;  %8515 = vmatprep.subr.bf16.mxu0 %v9472_v28  ;;  %v9413_v50 = vld [vmem:[%s11577_s6 + $0x1a8] sm:$0xff]  }
 0x714   :  { %8715 = vmatprep.subr.bf16.mxu1 %v9472_v28 }
 0x716   :  { %8516 = vmatpush3.bf16.msra.mxu0 %v9371_v30 }
 0x717   :  { %8716 = vmatpush3.bf16.msra.mxu1 %v9371_v30  ;;  %8517 = vmatprep.subr.bf16.mxu0 %v9472_v28  ;;  %v9414_v30 = vld [vmem:[%s11577_s6 + $0x1b0] sm:$0xff]  }
 0x718   :  { %8717 = vmatprep.subr.bf16.mxu1 %v9472_v28 }
 0x71a   :  { %8518 = vmatpush3.bf16.msra.mxu0 %v9372_v33 }
 0x71b   :  { %8718 = vmatpush3.bf16.msra.mxu1 %v9372_v33  ;;  %8519 = vmatprep.subr.bf16.mxu0 %v9472_v28  ;;  %v9415_v33 = vld [vmem:[%s11577_s6 + $0x1b8] sm:$0xff]  }
 0x71c   :  { %8719 = vmatprep.subr.bf16.mxu1 %v9472_v28 }
 0x71e   :  { %8520 = vmatpush3.bf16.msra.mxu0 %v9373_v38 }
 0x71f   :  { %8720 = vmatpush3.bf16.msra.mxu1 %v9373_v38  ;;  %8521 = vmatprep.subr.bf16.mxu0 %v9472_v28  ;;  %v5941_v38 = vld [vmem:[#allocation6 + $0x6] sm:$0x1] }
 0x720   :  { %8721 = vmatprep.subr.bf16.mxu1 %v9472_v28  ;;  %v5942_v43 = vpack.c.bf16 %v5941_v38, %v5941_v38 }
 0x722   :  { %8522 = vmatpush3.bf16.msra.mxu0 %v9374_v34 }
 0x723   :  { %8722 = vmatpush3.bf16.msra.mxu1 %v9374_v34  ;;  %8523 = vmatprep.subr.bf16.mxu0 %v9472_v28  ;;  %v6629_v34 = vld [vmem:[#allocation6 + $0x10] sm:$0x1] }
 0x724   :  { %8723 = vmatprep.subr.bf16.mxu1 %v9472_v28  ;;  %v6630_v46 = vpack.c.bf16 %v6629_v34, %v6629_v34 }
 0x726   :  { %8524 = vmatpush3.bf16.msra.mxu0 %v9375_v41 }
 0x727   :  { %8724 = vmatpush3.bf16.msra.mxu1 %v9375_v41  ;;  %8529 = vmatprep.subr.bf16.mxu0 %v9472_v28  ;;  %v9416_v41 = vld [vmem:[%s11577_s6 + $0x1c0] sm:$0xff]  }
 0x728   :  { %8729 = vmatprep.subr.bf16.mxu1 %v9472_v28 }
 0x729   :  { %8526 = vmatmul.mubr.bf16.vlgmr.msra.gmra.mrb[60].mxu0 %v5297_v49  ;;  %v9418_v49 = vld [vmem:[%s11577_s6 + $0x1d0] sm:$0xff]  }
 0x72a   :  { %8726 = vmatmul.mubr.bf16.vlgmr.msra.gmra.mrb[60].mxu1 %v6374_v60  ;;  %8530 = vmatpush3.bf16.msra.mxu0 %v9376_v47  ;;  %v9419_v60 = vld [vmem:[%s11577_s6 + $0x1d8] sm:$0xff]  }
 0x72b   :  { %8730 = vmatpush3.bf16.msra.mxu1 %v9376_v47  ;;  %8531 = vmatprep.subr.bf16.mxu0 %v9472_v28  ;;  %v9417_v47 = vld [vmem:[%s11577_s6 + $0x1c8] sm:$0xff]  }
 0x72c   :  { %8731 = vmatprep.subr.bf16.mxu1 %v9472_v28  ;;  %8545 = vmatprep.mubr.msk.bf16.mxu0 %vm9473_vm4, %v9472_v28 }
 0x72d   :  { %8745 = vmatprep.mubr.msk.bf16.mxu1 %vm9473_vm4, %v9472_v28 }
 0x72e   :  { %8532 = vmatpush3.bf16.msra.mxu0 %v9377_v51 }
 0x72f   :  { %8732 = vmatpush3.bf16.msra.mxu1 %v9377_v51  ;;  %8533 = vmatprep.subr.bf16.mxu0 %v9472_v28  ;;  %v9420_v51 = vld [vmem:[%s11577_s6 + $0x1e0] sm:$0xff]  }
 0x730   :  { %8733 = vmatprep.subr.bf16.mxu1 %v9472_v28 }
 0x732   :  { %8534 = vmatpush3.bf16.msra.mxu0 %v9378_v25 }
 0x733   :  { %8734 = vmatpush3.bf16.msra.mxu1 %v9378_v25  ;;  %8535 = vmatprep.subr.bf16.mxu0 %v9472_v28  ;;  %v9421_v25 = vld [vmem:[%s11577_s6 + $0x1e8] sm:$0xff]  }
 0x734   :  { %8735 = vmatprep.subr.bf16.mxu1 %v9472_v28 }
 0x736   :  { %8536 = vmatpush3.bf16.msra.mxu0 %v9379_v52 }
 0x737   :  { %8736 = vmatpush3.bf16.msra.mxu1 %v9379_v52  ;;  %8537 = vmatprep.subr.bf16.mxu0 %v9472_v28  ;;  %v9422_v52 = vld [vmem:[%s11577_s6 + $0x1f0] sm:$0xff]  }
 0x738   :  { %8737 = vmatprep.subr.bf16.mxu1 %v9472_v28 }
 0x73a   :  { %8538 = vmatpush3.bf16.msra.mxu0 %v9380_v57 }
 0x73b   :  { %8738 = vmatpush3.bf16.msra.mxu1 %v9380_v57  ;;  %8539 = vmatprep.subr.bf16.mxu0 %v9472_v28  ;;  %v9423_v57 = vld [vmem:[%s11577_s6 + $0x1f8] sm:$0xff]  }
 0x73c   :  { %8739 = vmatprep.subr.bf16.mxu1 %v9472_v28 }
 0x73e   :  { %8540 = vmatpush3.bf16.msra.mxu0 %v9381_v39 }
 0x73f   :  { %8740 = vmatpush3.bf16.msra.mxu1 %v9381_v39  ;;  %8541 = vmatprep.subr.bf16.mxu0 %v9472_v28  ;;  %v6049_v39 = vld [vmem:[#allocation6 + $0x7] sm:$0x1] }
 0x740   :  { %8741 = vmatprep.subr.bf16.mxu1 %v9472_v28  ;;  %v6050_v40 = vpack.c.bf16 %v6049_v39, %v6049_v39 }
 0x742   :  { %8542 = vmatpush3.bf16.msra.mxu0 %v9382_v54 }
 0x743   :  { %8742 = vmatpush3.bf16.msra.mxu1 %v9382_v54  ;;  %8543 = vmatprep.subr.bf16.mxu0 %v9472_v28  ;;  %v6672_v54 = vld [vmem:[#allocation6 + $0x11] sm:$0x1] }
 0x744   :  { %8743 = vmatprep.subr.bf16.mxu1 %v9472_v28  ;;  %v6673_v5 = vpack.c.bf16 %v6672_v54, %v6672_v54 }
 0x746   :  { %8544 = vmatpush3.bf16.msra.mxu0 %v9383_v37 }
 0x747   :  { %8744 = vmatpush3.bf16.msra.mxu1 %v9383_v37  ;;  %8549 = vmatprep.subr.bf16.mxu0 %v9472_v28  ;;  %v9424_v37 = vld [vmem:[%s11577_s6 + $0x200] sm:$0xff]  }
 0x748   :  { %8749 = vmatprep.subr.bf16.mxu1 %v9472_v28 }
 0x749   :  { %8546 = vmatmul.mubr.bf16.vlgmr.msra.gmra.mrb[60].mxu0 %v5510_v11  ;;  %v9426_v11 = vld [vmem:[%s11577_s6 + $0x210] sm:$0xff]  }
 0x74a   :  { %8746 = vmatmul.mubr.bf16.vlgmr.msra.gmra.mrb[60].mxu1 %v6458_v58  ;;  %8550 = vmatpush3.bf16.msra.mxu0 %v9384_v55  ;;  %v9427_v58 = vld [vmem:[%s11577_s6 + $0x218] sm:$0xff]  }
 0x74b   :  { %8750 = vmatpush3.bf16.msra.mxu1 %v9384_v55  ;;  %8551 = vmatprep.subr.bf16.mxu0 %v9472_v28  ;;  %v9425_v55 = vld [vmem:[%s11577_s6 + $0x208] sm:$0xff]  }
 0x74c   :  { %8751 = vmatprep.subr.bf16.mxu1 %v9472_v28  ;;  %8565 = vmatprep.mubr.msk.bf16.mxu0 %vm9473_vm4, %v9472_v28 }
 0x74d   :  { %8765 = vmatprep.mubr.msk.bf16.mxu1 %vm9473_vm4, %v9472_v28 }
 0x74e   :  { %8552 = vmatpush3.bf16.msra.mxu0 %v9385_v48 }
 0x74f   :  { %8752 = vmatpush3.bf16.msra.mxu1 %v9385_v48  ;;  %8553 = vmatprep.subr.bf16.mxu0 %v9472_v28  ;;  %v9428_v48 = vld [vmem:[%s11577_s6 + $0x220] sm:$0xff]  }
 0x750   :  { %8753 = vmatprep.subr.bf16.mxu1 %v9472_v28 }
 0x752   :  { %8554 = vmatpush3.bf16.msra.mxu0 %v9386_v7 }
 0x753   :  { %8754 = vmatpush3.bf16.msra.mxu1 %v9386_v7  ;;  %8555 = vmatprep.subr.bf16.mxu0 %v9472_v28  ;;  %v9429_v7 = vld [vmem:[%s11577_s6 + $0x228] sm:$0xff]  }
 0x754   :  { %8755 = vmatprep.subr.bf16.mxu1 %v9472_v28 }
 0x756   :  { %8556 = vmatpush3.bf16.msra.mxu0 %v9387_v61 }
 0x757   :  { %8756 = vmatpush3.bf16.msra.mxu1 %v9387_v61  ;;  %8557 = vmatprep.subr.bf16.mxu0 %v9472_v28  ;;  %v9430_v61 = vld [vmem:[%s11577_s6 + $0x230] sm:$0xff]  }
 0x758   :  { %8757 = vmatprep.subr.bf16.mxu1 %v9472_v28 }
 0x75a   :  { %8558 = vmatpush3.bf16.msra.mxu0 %v9388_v63 }
 0x75b   :  { %8758 = vmatpush3.bf16.msra.mxu1 %v9388_v63  ;;  %8559 = vmatprep.subr.bf16.mxu0 %v9472_v28  ;;  %v9431_v63 = vld [vmem:[%s11577_s6 + $0x238] sm:$0xff]  }
 0x75c   :  { %8759 = vmatprep.subr.bf16.mxu1 %v9472_v28 }
 0x75e   :  { %8560 = vmatpush3.bf16.msra.mxu0 %v9389_v6 }
 0x75f   :  { %8760 = vmatpush3.bf16.msra.mxu1 %v9389_v6  ;;  %8561 = vmatprep.subr.bf16.mxu0 %v9472_v28  ;;  %v6157_v6 = vld [vmem:[#allocation6 + $0x8] sm:$0x1] }
 0x760   :  { %8761 = vmatprep.subr.bf16.mxu1 %v9472_v28  ;;  %v6158_v17 = vpack.c.bf16 %v6157_v6, %v6157_v6 }
 0x762   :  { %8562 = vmatpush3.bf16.msra.mxu0 %v9390_v9 }
 0x763   :  { %8762 = vmatpush3.bf16.msra.mxu1 %v9390_v9  ;;  %8563 = vmatprep.subr.bf16.mxu0 %v9472_v28  ;;  %v6715_v9 = vld [vmem:[#allocation6 + $0x12] sm:$0x1] }
 0x764   :  { %8763 = vmatprep.subr.bf16.mxu1 %v9472_v28  ;;  %v6716_v18 = vpack.c.bf16 %v6715_v9, %v6715_v9 }
 0x766   :  { %8564 = vmatpush3.bf16.msra.mxu0 %v9391_v15 }
 0x767   :  { %8764 = vmatpush3.bf16.msra.mxu1 %v9391_v15  ;;  %8569 = vmatprep.subr.bf16.mxu0 %v9472_v28  ;;  %v9432_v15 = vld [vmem:[%s11577_s6 + $0x240] sm:$0xff]  }
 0x768   :  { %8769 = vmatprep.subr.bf16.mxu1 %v9472_v28 }
 0x769   :  { %8566 = vmatmul.mubr.bf16.vlgmr.msra.gmra.mrb[60].mxu0 %v5618_v20  ;;  %v9434_v20 = vld [vmem:[%s11577_s6 + $0x250] sm:$0xff]  }
 0x76a   :  { %8766 = vmatmul.mubr.bf16.vlgmr.msra.gmra.mrb[60].mxu1 %v6501_v22  ;;  %8570 = vmatpush3.bf16.msra.mxu0 %v9392_v19  ;;  %v9435_v22 = vld [vmem:[%s11577_s6 + $0x258] sm:$0xff]  }
 0x76b   :  { %8770 = vmatpush3.bf16.msra.mxu1 %v9392_v19  ;;  %8571 = vmatprep.subr.bf16.mxu0 %v9472_v28  ;;  %v9433_v19 = vld [vmem:[%s11577_s6 + $0x248] sm:$0xff]  }
 0x76c   :  { %8771 = vmatprep.subr.bf16.mxu1 %v9472_v28  ;;  %8585 = vmatprep.mubr.msk.bf16.mxu0 %vm9473_vm4, %v9472_v28 }
 0x76d   :  { %8785 = vmatprep.mubr.msk.bf16.mxu1 %vm9473_vm4, %v9472_v28 }
 0x76e   :  { %8572 = vmatpush3.bf16.msra.mxu0 %v9393_v23 }
 0x76f   :  { %8772 = vmatpush3.bf16.msra.mxu1 %v9393_v23  ;;  %8573 = vmatprep.subr.bf16.mxu0 %v9472_v28  ;;  %v9436_v23 = vld [vmem:[%s11577_s6 + $0x260] sm:$0xff]  }
 0x770   :  { %8773 = vmatprep.subr.bf16.mxu1 %v9472_v28 }
 0x772   :  { %8574 = vmatpush3.bf16.msra.mxu0 %v9394_v24 }
 0x773   :  { %8774 = vmatpush3.bf16.msra.mxu1 %v9394_v24  ;;  %8575 = vmatprep.subr.bf16.mxu0 %v9472_v28  ;;  %v9437_v24 = vld [vmem:[%s11577_s6 + $0x268] sm:$0xff]  }
 0x774   :  { %8775 = vmatprep.subr.bf16.mxu1 %v9472_v28 }
 0x776   :  { %8576 = vmatpush3.bf16.msra.mxu0 %v9395_v26 }
 0x777   :  { %8776 = vmatpush3.bf16.msra.mxu1 %v9395_v26  ;;  %8577 = vmatprep.subr.bf16.mxu0 %v9472_v28  ;;  %v9438_v26 = vld [vmem:[%s11577_s6 + $0x270] sm:$0xff]  }
 0x778   :  { %8777 = vmatprep.subr.bf16.mxu1 %v9472_v28 }
 0x77a   :  { %8578 = vmatpush3.bf16.msra.mxu0 %v9396_v36 }
 0x77b   :  { %8778 = vmatpush3.bf16.msra.mxu1 %v9396_v36  ;;  %8579 = vmatprep.subr.bf16.mxu0 %v9472_v28  ;;  %v9439_v36 = vld [vmem:[%s11577_s6 + $0x278] sm:$0xff]   ;;  %s9448_s6 = scalar_lea.vmem %s6811_s10, 32 }
 0x77c   :  { %8779 = vmatprep.subr.bf16.mxu1 %v9472_v28  ;;  %p9449_p0 = scmp.ne.s32.totalorder %s6811_s10, %s9448_s6  ;;  %p9454_p2 = scmp.lt.s32.totalorder %s9448_s6, %s9448_s6 }
 0x77e   :  { %8580 = vmatpush3.bf16.msra.mxu0 %v9397_v62  ;;  %p9455_p3 = por %p9454_p2, %p9453_p1 }
 0x77f   :  { %8780 = vmatpush3.bf16.msra.mxu1 %v9397_v62  ;;  %8581 = vmatprep.subr.bf16.mxu0 %v9472_v28  ;;  %v6265_v62 = vld [vmem:[#allocation6 + $0x9] sm:$0x1] }
 0x780   :  { %8781 = vmatprep.subr.bf16.mxu1 %v9472_v28  ;;  %p9456_p4 = pnand %p9455_p3, %p9449_p0 }
 0x782   :  { %8582 = vmatpush3.bf16.msra.mxu0 %v9398_v56 }
 0x783   :  { %8782 = vmatpush3.bf16.msra.mxu1 %v9398_v56  ;;  %8583 = vmatprep.subr.bf16.mxu0 %v9472_v28  ;;  %v6758_v56 = vld [vmem:[#allocation6 + $0x13] sm:$0x1] }
 0x784   :  { %8783 = vmatprep.subr.bf16.mxu1 %v9472_v28  ;;  %v6759_v13 = vpack.c.bf16 %v6758_v56, %v6758_v56 }
 0x786   :  { %8584 = vmatpush3.bf16.msra.mxu0 %v9399_v59 }
 0x787   :  { %8784 = vmatpush3.bf16.msra.mxu1 %v9399_v59  ;;  %8589 = vmatprep.subr.bf16.mxu0 %v9472_v28  ;;  %v6266_v59 = vpack.c.bf16 %v6265_v62, %v6265_v62 }
 0x788   :  { %8789 = vmatprep.subr.bf16.mxu1 %v9472_v28 }
 0x789   :  { %8586 = vmatmul.mubr.bf16.vlgmr.msra.gmra.mrb[60].mxu0 %v5726_v0 }
 0x78a   :  { %8786 = vmatmul.mubr.bf16.vlgmr.msra.gmra.mrb[60].mxu1 %v6544_v44  ;;  %8590 = vmatpush3.bf16.msra.mxu0 %v9400_v21 }
 0x78b   :  { %8790 = vmatpush3.bf16.msra.mxu1 %v9400_v21  ;;  %8591 = vmatprep.subr.bf16.mxu0 %v9472_v28 }
 0x78c   :  { %8791 = vmatprep.subr.bf16.mxu1 %v9472_v28  ;;  %8605 = vmatprep.mubr.msk.bf16.mxu0 %vm9473_vm4, %v9472_v28 }
 0x78d   :  { %8805 = vmatprep.mubr.msk.bf16.mxu1 %vm9473_vm4, %v9472_v28 }
 0x78e   :  { %8592 = vmatpush3.bf16.msra.mxu0 %v9401_v2 }
 0x78f   :  { %8792 = vmatpush3.bf16.msra.mxu1 %v9401_v2  ;;  %8593 = vmatprep.subr.bf16.mxu0 %v9472_v28 }
 0x790   :  { %8793 = vmatprep.subr.bf16.mxu1 %v9472_v28 }
 0x792   :  { %8594 = vmatpush3.bf16.msra.mxu0 %v9402_v14 }
 0x793   :  { %8794 = vmatpush3.bf16.msra.mxu1 %v9402_v14  ;;  %8595 = vmatprep.subr.bf16.mxu0 %v9472_v28 }
 0x794   :  { %8795 = vmatprep.subr.bf16.mxu1 %v9472_v28 }
 0x796   :  { %8596 = vmatpush3.bf16.msra.mxu0 %v9403_v27 }
 0x797   :  { %8796 = vmatpush3.bf16.msra.mxu1 %v9403_v27  ;;  %8597 = vmatprep.subr.bf16.mxu0 %v9472_v28 }
 0x798   :  { %8797 = vmatprep.subr.bf16.mxu1 %v9472_v28 }
 0x79a   :  { %8598 = vmatpush3.bf16.msra.mxu0 %v9404_v1 }
 0x79b   :  { %8798 = vmatpush3.bf16.msra.mxu1 %v9404_v1  ;;  %8599 = vmatprep.subr.bf16.mxu0 %v9472_v28 }
 0x79c   :  { %8799 = vmatprep.subr.bf16.mxu1 %v9472_v28 }
 0x79e   :  { %8600 = vmatpush3.bf16.msra.mxu0 %v9405_v4 }
 0x79f   :  { %8800 = vmatpush3.bf16.msra.mxu1 %v9405_v4  ;;  %8601 = vmatprep.subr.bf16.mxu0 %v9472_v28 }
 0x7a0   :  { %8801 = vmatprep.subr.bf16.mxu1 %v9472_v28 }
 0x7a2   :  { %8602 = vmatpush3.bf16.msra.mxu0 %v9406_v29 }
 0x7a3   :  { %8802 = vmatpush3.bf16.msra.mxu1 %v9406_v29  ;;  %8603 = vmatprep.subr.bf16.mxu0 %v9472_v28 }
 0x7a4   :  { %8803 = vmatprep.subr.bf16.mxu1 %v9472_v28 }
 0x7a6   :  { %8604 = vmatpush3.bf16.msra.mxu0 %v9407_v35 }
 0x7a7   :  { %8804 = vmatpush3.bf16.msra.mxu1 %v9407_v35  ;;  %8609 = vmatprep.subr.bf16.mxu0 %v9472_v28 }
 0x7a8   :  { %8809 = vmatprep.subr.bf16.mxu1 %v9472_v28 }
 0x7a9   :  { %8606 = vmatmul.mubr.bf16.vlgmr.msra.gmra.mrb[60].mxu0 %v5834_v8 }
 0x7aa   :  { %8806 = vmatmul.mubr.bf16.vlgmr.msra.gmra.mrb[60].mxu1 %v6587_v31  ;;  %8610 = vmatpush3.bf16.msra.mxu0 %v9408_v45 }
 0x7ab   :  { %8810 = vmatpush3.bf16.msra.mxu1 %v9408_v45  ;;  %8611 = vmatprep.subr.bf16.mxu0 %v9472_v28 }
 0x7ac   :  { %8811 = vmatprep.subr.bf16.mxu1 %v9472_v28  ;;  %8625 = vmatprep.mubr.msk.bf16.mxu0 %vm9473_vm4, %v9472_v28 }
 0x7ad   :  { %8825 = vmatprep.mubr.msk.bf16.mxu1 %vm9473_vm4, %v9472_v28 }
 0x7ae   :  { %8612 = vmatpush3.bf16.msra.mxu0 %v9409_v12 }
 0x7af   :  { %8812 = vmatpush3.bf16.msra.mxu1 %v9409_v12  ;;  %8613 = vmatprep.subr.bf16.mxu0 %v9472_v28 }
 0x7b0   :  { %8813 = vmatprep.subr.bf16.mxu1 %v9472_v28 }
 0x7b2   :  { %8614 = vmatpush3.bf16.msra.mxu0 %v9410_v53 }
 0x7b3   :  { %8814 = vmatpush3.bf16.msra.mxu1 %v9410_v53  ;;  %8615 = vmatprep.subr.bf16.mxu0 %v9472_v28 }
 0x7b4   :  { %8815 = vmatprep.subr.bf16.mxu1 %v9472_v28 }
 0x7b6   :  { %8616 = vmatpush3.bf16.msra.mxu0 %v9411_v16 }
 0x7b7   :  { %8816 = vmatpush3.bf16.msra.mxu1 %v9411_v16  ;;  %8617 = vmatprep.subr.bf16.mxu0 %v9472_v28 }
 0x7b8   :  { %8817 = vmatprep.subr.bf16.mxu1 %v9472_v28 }
 0x7ba   :  { %8618 = vmatpush3.bf16.msra.mxu0 %v9412_v42 }
 0x7bb   :  { %8818 = vmatpush3.bf16.msra.mxu1 %v9412_v42  ;;  %8619 = vmatprep.subr.bf16.mxu0 %v9472_v28 }
 0x7bc   :  { %8819 = vmatprep.subr.bf16.mxu1 %v9472_v28 }
 0x7be   :  { %8620 = vmatpush3.bf16.msra.mxu0 %v9413_v50 }
 0x7bf   :  { %8820 = vmatpush3.bf16.msra.mxu1 %v9413_v50  ;;  %8621 = vmatprep.subr.bf16.mxu0 %v9472_v28 }
 0x7c0   :  { %8821 = vmatprep.subr.bf16.mxu1 %v9472_v28 }
 0x7c2   :  { %8622 = vmatpush3.bf16.msra.mxu0 %v9414_v30 }
 0x7c3   :  { %8822 = vmatpush3.bf16.msra.mxu1 %v9414_v30  ;;  %8623 = vmatprep.subr.bf16.mxu0 %v9472_v28 }
 0x7c4   :  { %8823 = vmatprep.subr.bf16.mxu1 %v9472_v28 }
 0x7c6   :  { %8624 = vmatpush3.bf16.msra.mxu0 %v9415_v33 }
 0x7c7   :  { %8824 = vmatpush3.bf16.msra.mxu1 %v9415_v33  ;;  %8629 = vmatprep.subr.bf16.mxu0 %v9472_v28 }
 0x7c8   :  { %8829 = vmatprep.subr.bf16.mxu1 %v9472_v28 }
 0x7c9   :  { %8626 = vmatmul.mubr.bf16.vlgmr.msra.gmra.mrb[60].mxu0 %v5942_v43 }
 0x7ca   :  { %8826 = vmatmul.mubr.bf16.vlgmr.msra.gmra.mrb[60].mxu1 %v6630_v46  ;;  %8630 = vmatpush3.bf16.msra.mxu0 %v9416_v41 }
 0x7cb   :  { %8830 = vmatpush3.bf16.msra.mxu1 %v9416_v41  ;;  %8631 = vmatprep.subr.bf16.mxu0 %v9472_v28 }
 0x7cc   :  { %8831 = vmatprep.subr.bf16.mxu1 %v9472_v28  ;;  %8645 = vmatprep.mubr.msk.bf16.mxu0 %vm9473_vm4, %v9472_v28 }
 0x7cd   :  { %8845 = vmatprep.mubr.msk.bf16.mxu1 %vm9473_vm4, %v9472_v28 }
 0x7ce   :  { %8632 = vmatpush3.bf16.msra.mxu0 %v9417_v47 }
 0x7cf   :  { %8832 = vmatpush3.bf16.msra.mxu1 %v9417_v47  ;;  %8633 = vmatprep.subr.bf16.mxu0 %v9472_v28 }
 0x7d0   :  { %8833 = vmatprep.subr.bf16.mxu1 %v9472_v28 }
 0x7d2   :  { %8634 = vmatpush3.bf16.msra.mxu0 %v9418_v49 }
 0x7d3   :  { %8834 = vmatpush3.bf16.msra.mxu1 %v9418_v49  ;;  %8635 = vmatprep.subr.bf16.mxu0 %v9472_v28 }
 0x7d4   :  { %8835 = vmatprep.subr.bf16.mxu1 %v9472_v28 }
 0x7d6   :  { %8636 = vmatpush3.bf16.msra.mxu0 %v9419_v60 }
 0x7d7   :  { %8836 = vmatpush3.bf16.msra.mxu1 %v9419_v60  ;;  %8637 = vmatprep.subr.bf16.mxu0 %v9472_v28 }
 0x7d8   :  { %8837 = vmatprep.subr.bf16.mxu1 %v9472_v28 }
 0x7da   :  { %8638 = vmatpush3.bf16.msra.mxu0 %v9420_v51 }
 0x7db   :  { %8838 = vmatpush3.bf16.msra.mxu1 %v9420_v51  ;;  %8639 = vmatprep.subr.bf16.mxu0 %v9472_v28 }
 0x7dc   :  { %8839 = vmatprep.subr.bf16.mxu1 %v9472_v28 }
 0x7de   :  { %8640 = vmatpush3.bf16.msra.mxu0 %v9421_v25 }
 0x7df   :  { %8840 = vmatpush3.bf16.msra.mxu1 %v9421_v25  ;;  %8641 = vmatprep.subr.bf16.mxu0 %v9472_v28 }
 0x7e0   :  { %8841 = vmatprep.subr.bf16.mxu1 %v9472_v28 }
 0x7e2   :  { %8642 = vmatpush3.bf16.msra.mxu0 %v9422_v52 }
 0x7e3   :  { %8842 = vmatpush3.bf16.msra.mxu1 %v9422_v52  ;;  %8643 = vmatprep.subr.bf16.mxu0 %v9472_v28 }
 0x7e4   :  { %8843 = vmatprep.subr.bf16.mxu1 %v9472_v28 }
 0x7e6   :  { %8644 = vmatpush3.bf16.msra.mxu0 %v9423_v57 }
 0x7e7   :  { %8844 = vmatpush3.bf16.msra.mxu1 %v9423_v57  ;;  %8649 = vmatprep.subr.bf16.mxu0 %v9472_v28 }
 0x7e8   :  { %8849 = vmatprep.subr.bf16.mxu1 %v9472_v28 }
 0x7e9   :  { %8646 = vmatmul.mubr.bf16.vlgmr.msra.gmra.mrb[60].mxu0 %v6050_v40 }
 0x7ea   :  { %8846 = vmatmul.mubr.bf16.vlgmr.msra.gmra.mrb[60].mxu1 %v6673_v5  ;;  %8650 = vmatpush3.bf16.msra.mxu0 %v9424_v37 }
 0x7eb   :  { %8850 = vmatpush3.bf16.msra.mxu1 %v9424_v37  ;;  %8651 = vmatprep.subr.bf16.mxu0 %v9472_v28 }
 0x7ec   :  { %8851 = vmatprep.subr.bf16.mxu1 %v9472_v28  ;;  %8665 = vmatprep.mubr.msk.bf16.mxu0 %vm9473_vm4, %v9472_v28 }
 0x7ed   :  { %8865 = vmatprep.mubr.msk.bf16.mxu1 %vm9473_vm4, %v9472_v28 }
 0x7ee   :  { %8652 = vmatpush3.bf16.msra.mxu0 %v9425_v55 }
 0x7ef   :  { %8852 = vmatpush3.bf16.msra.mxu1 %v9425_v55  ;;  %8653 = vmatprep.subr.bf16.mxu0 %v9472_v28 }
 0x7f0   :  { %8853 = vmatprep.subr.bf16.mxu1 %v9472_v28 }
 0x7f2   :  { %8654 = vmatpush3.bf16.msra.mxu0 %v9426_v11 }
 0x7f3   :  { %8854 = vmatpush3.bf16.msra.mxu1 %v9426_v11  ;;  %8655 = vmatprep.subr.bf16.mxu0 %v9472_v28 }
 0x7f4   :  { %8855 = vmatprep.subr.bf16.mxu1 %v9472_v28 }
 0x7f6   :  { %8656 = vmatpush3.bf16.msra.mxu0 %v9427_v58 }
 0x7f7   :  { %8856 = vmatpush3.bf16.msra.mxu1 %v9427_v58  ;;  %8657 = vmatprep.subr.bf16.mxu0 %v9472_v28 }
 0x7f8   :  { %8857 = vmatprep.subr.bf16.mxu1 %v9472_v28 }
 0x7fa   :  { %8658 = vmatpush3.bf16.msra.mxu0 %v9428_v48 }
 0x7fb   :  { %8858 = vmatpush3.bf16.msra.mxu1 %v9428_v48  ;;  %8659 = vmatprep.subr.bf16.mxu0 %v9472_v28 }
 0x7fc   :  { %8859 = vmatprep.subr.bf16.mxu1 %v9472_v28 }
 0x7fe   :  { %8660 = vmatpush3.bf16.msra.mxu0 %v9429_v7 }
 0x7ff   :  { %8860 = vmatpush3.bf16.msra.mxu1 %v9429_v7  ;;  %8661 = vmatprep.subr.bf16.mxu0 %v9472_v28 }
 0x800   :  { %8861 = vmatprep.subr.bf16.mxu1 %v9472_v28 }
 0x802   :  { %8662 = vmatpush3.bf16.msra.mxu0 %v9430_v61 }
 0x803   :  { %8862 = vmatpush3.bf16.msra.mxu1 %v9430_v61  ;;  %8663 = vmatprep.subr.bf16.mxu0 %v9472_v28 }
 0x804   :  { %8863 = vmatprep.subr.bf16.mxu1 %v9472_v28 }
 0x806   :  { %8664 = vmatpush3.bf16.msra.mxu0 %v9431_v63 }
 0x807   :  { %8864 = vmatpush3.bf16.msra.mxu1 %v9431_v63  ;;  %8669 = vmatprep.subr.bf16.mxu0 %v9472_v28 }
 0x808   :  { %8869 = vmatprep.subr.bf16.mxu1 %v9472_v28 }
 0x809   :  { %8666 = vmatmul.mubr.bf16.vlgmr.msra.gmra.mrb[60].mxu0 %v6158_v17 }
 0x80a   :  { %8866 = vmatmul.mubr.bf16.vlgmr.msra.gmra.mrb[60].mxu1 %v6716_v18  ;;  %8670 = vmatpush3.bf16.msra.mxu0 %v9432_v15 }
 0x80b   :  { %8870 = vmatpush3.bf16.msra.mxu1 %v9432_v15  ;;  %8671 = vmatprep.subr.bf16.mxu0 %v9472_v28 }
 0x80c   :  { %8871 = vmatprep.subr.bf16.mxu1 %v9472_v28  ;;  %8685 = vmatprep.mubr.msk.bf16.mxu0 %vm9473_vm4, %v9472_v28 }
 0x80d   :  { %8885 = vmatprep.mubr.msk.bf16.mxu1 %vm9473_vm4, %v9472_v28  ;;  %vm6801_vm4 = vcmask 122880  }
 0x80e   :  { %8672 = vmatpush3.bf16.msra.mxu0 %v9433_v19 }
 0x80f   :  { %8872 = vmatpush3.bf16.msra.mxu1 %v9433_v19  ;;  %8673 = vmatprep.subr.bf16.mxu0 %v9472_v28 }
 0x810   :  { %8873 = vmatprep.subr.bf16.mxu1 %v9472_v28 }
 0x812   :  { %8674 = vmatpush3.bf16.msra.mxu0 %v9434_v20 }
 0x813   :  { %8874 = vmatpush3.bf16.msra.mxu1 %v9434_v20  ;;  %8675 = vmatprep.subr.bf16.mxu0 %v9472_v28 }
 0x814   :  { %8875 = vmatprep.subr.bf16.mxu1 %v9472_v28 }
 0x816   :  { %8676 = vmatpush3.bf16.msra.mxu0 %v9435_v22 }
 0x817   :  { %8876 = vmatpush3.bf16.msra.mxu1 %v9435_v22  ;;  %8677 = vmatprep.subr.bf16.mxu0 %v9472_v28 }
 0x818   :  { %8877 = vmatprep.subr.bf16.mxu1 %v9472_v28 }
 0x81a   :  { %8678 = vmatpush3.bf16.msra.mxu0 %v9436_v23 }
 0x81b   :  { %8878 = vmatpush3.bf16.msra.mxu1 %v9436_v23  ;;  %8679 = vmatprep.subr.bf16.mxu0 %v9472_v28 }
 0x81c   :  { %8879 = vmatprep.subr.bf16.mxu1 %v9472_v28 }
 0x81e   :  { %8680 = vmatpush3.bf16.msra.mxu0 %v9437_v24 }
 0x81f   :  { %8880 = vmatpush3.bf16.msra.mxu1 %v9437_v24  ;;  %8681 = vmatprep.subr.bf16.mxu0 %v9472_v28 }
 0x820   :  { %8881 = vmatprep.subr.bf16.mxu1 %v9472_v28 }
 0x822   :  { %8682 = vmatpush3.bf16.msra.mxu0 %v9438_v26 }
 0x823   :  { %8882 = vmatpush3.bf16.msra.mxu1 %v9438_v26  ;;  %8683 = vmatprep.subr.bf16.mxu0 %v9472_v28 }
 0x824   :  { %8883 = vmatprep.subr.bf16.mxu1 %v9472_v28 }
 0x826   :  { %8684 = vmatpush3.bf16.msra.mxu0 %v9439_v36 }
 0x827   :  { %8884 = vmatpush3.bf16.msra.mxu1 %v9439_v36 }
 0x829   :  { %8686 = vmatmul.mubr.bf16.vlgmr.msra.gmra.mrb[60].mxu0 %v6266_v59 }
 0x82a   :  { %8886 = vmatmul.mubr.bf16.vlgmr.msra.gmra.mrb[60].mxu1 %v6759_v13 }
 0x8fc   :  { %v6366_v10 = vpop.f32.mrb[60].mxu0 }
 0x8fd   :  { %6802 = vst.msk [vmem:[#allocation7] sm:$0x1] %vm6801_vm4, %v6366_v10  ;;  %v6794_v21 = vpop.f32.mrb[60].mxu1  ;;  %v8687_v0 = vpop.f32.mrb[61].mxu0 }
 0x8fe   :  { %6803 = vst.msk [vmem:[#allocation7 + $0x1] sm:$0x1] %vm6801_vm4, %v6794_v21  ;;  %v8887_v44 = vpop.f32.mrb[61].mxu1  ;;  %v6369_v2 = vpop.f32.mrb[62].mxu0 }
 0x8ff   :  { %v6797_v28 = vpop.f32.mrb[62].mxu1  ;;  %v8688_v14 = vpop.f32.mrb[63].mxu0 }
 0x900   :  { %9459 = shalt.err (!%p9456_p4)
}
 0x901   :  { %s9460_s3 = scalar_lea.hbm %s11586_s15, 32 }
 0x902   :  { %p9461_p5 = scmp.ne.s32.totalorder %s11586_s15, %s9460_s3  ;;  %p9464_p6 = scmp.lt.u32.totalorder %s9460_s3, %s11586_s15 }
 0x904   :  { %p9466_p7 = pnand %p9464_p6, %p9461_p5 }
 0x906   :  { %9469 = shalt.err (!%p9466_p7)
}
 0x907   :  { %6813 = dma.vmem_to_hbm [thread:$0]  %s6811_s10, 32, %s11586_s15, [#allocation8]   ;;  %v8888_v27 = vpop.f32.mrb[63].mxu1 }
 0x908   :  { %9470 = dma.done.wait [#allocation8], 32  }
 0x909   :  { %9471 = vsyncadd [#allocation8], 4294967264 }
 0x90a   :  { %6817 = vsyncpa [#allocation8], 1 }

</bundles_post_ra>
